<compile_context>
chip_gen: v6e
topology: v6e:2x2x1
jax: 0.10.0
libtpu: 0.0.40
codegen_flags: <defaults>
</compile_context>

<pallas_src>
import functools

import numpy as np
import jax
import jax.numpy as jnp
from jax import lax
from jax.experimental import pallas as pl
from jax.experimental.pallas import tpu as pltpu

# ---- hyper-parameters (mirror EarlyFusionTransformer, small demo hidden) ----
EMBED_DIM = 9                 # EarlyFusionTransformer.embed_dim
NUM_HEADS = 3                 # nn.TransformerEncoderLayer(nhead=3)
HEAD_DIM = EMBED_DIM // NUM_HEADS
FFN_DIM = 2048                # torch TransformerEncoderLayer default dim_feedforward
NUM_LAYERS = 3                # nn.TransformerEncoder(num_layers=3)
LN_EPS = 1e-5
HIDDEN_DIM = 32               # small stand-in for hidden_dim=256
NUM_MODALITIES = 2
OUTPUT_DIM = 3

# ---- packed / padded widths used inside the kernel ----
D_RES = 16                    # residual-stream lane width (9 real + 7 zero lanes)
HEAD_SLAB = 128               # per-head lane slab inside the fused qkv projection
QKV_W = 3 * NUM_HEADS * HEAD_SLAB   # q heads | k heads | folded v->out heads
O_PAD = 128                   # lane-dense output head width (real 3)

HP = lax.Precision.HIGHEST    # used only by the pure-JAX reference


def _mm(a, b):
    """a @ b on the MXU: activations cast to the (bf16) weight dtype, f32 acc."""
    return lax.dot_general(a.astype(b.dtype), b, (((1,), (0,)), ((), ())),
                           preferred_element_type=jnp.float32)


def _ln(x, w, b, feat_mask):
    """LayerNorm over the EMBED_DIM real lanes of a zero-padded [N, D_RES] row.

    Two-pass (masked centered) variance; padded output lanes stay exactly 0
    because w/b padding is zero and the centered term is masked.
    """
    inv_d = 1.0 / EMBED_DIM
    mu = jnp.sum(x, axis=-1, keepdims=True) * inv_d       # pads are zero
    d = (x - mu) * feat_mask
    var = jnp.sum(d * d, axis=-1, keepdims=True) * inv_d
    return d * lax.rsqrt(var + LN_EPS) * w + b


# ---------------------------------------------------------------------------
# Pallas kernel
# ---------------------------------------------------------------------------
def early_fusion_kernel(x_ref, mask_ref, conv_w_ref, qkv_w_ref, qkv_b_ref,
                        ff1_w_ref, ff1_b_ref, ff2_w_ref, vecs_ref,
                        lin_w_ref, lin_b_ref, o_ref, *, B, S):
    H, HS, Dr = NUM_HEADS, HEAD_SLAB, D_RES

    # Feature mask (first EMBED_DIM lanes are real), hoisted out of the loop.
    feat_mask = (lax.broadcasted_iota(jnp.int32, (1, Dr), 1)
                 < EMBED_DIM).astype(jnp.float32)
    attn_mask = mask_ref[...]                                  # [N, N], 0 / -1e30

    # Conv1d(C, 9, kernel_size=1, bias=False) == per-token matmul into the
    # 16-lane residual slab (lanes 9..15 stay zero).
    x = _mm(x_ref[...], conv_w_ref[...])                       # [N, Dr] f32

    for l in range(NUM_LAYERS):
        vec = vecs_ref[l]                                       # [8, Dr] f32

        # ----- fused q | k | (v @ out_proj) projection: one matmul ----------
        # Lane layout: q head h at [h*128, +3), k head h at [(3+h)*128, +3),
        # folded v->out head h at [(6+h)*128, +9). 1/sqrt(head_dim) and
        # out_proj are folded host-side.
        qkv = _mm(x, qkv_w_ref[l]) + qkv_b_ref[l]               # [N, QKV_W]

        attn = None
        for h in range(H):                                      # 3 heads, static
            qh = qkv[:, h * HS:(h + 1) * HS]
            kh = qkv[:, (H + h) * HS:(H + h + 1) * HS]
            vh = qkv[:, (2 * H + h) * HS:(2 * H + h + 1) * HS]
            # One flat [N, N] score matmul, block-diagonal mask over batches.
            s = lax.dot_general(qh, kh, (((1,), (1,)), ((), ())),
                                preferred_element_type=jnp.float32) + attn_mask
            s = s - jnp.max(s, axis=-1, keepdims=True)
            p = jnp.exp(s)
            p = p * pl.reciprocal(jnp.sum(p, axis=-1, keepdims=True),
                                  approx=True)
            contrib = lax.dot_general(p, vh, (((1,), (0,)), ((), ())),
                                      preferred_element_type=jnp.float32)
            attn = contrib if attn is None else attn + contrib  # [N, HS]
        attn = attn[:, :Dr] + vec[0:1, :]        # + (v_bias @ Wo + out_bias)
        x = _ln(x + attn, vec[1:2, :], vec[2:3, :], feat_mask)

        # ----- feed-forward (ReLU), contraction/output de-padded to 16 ------
        hdn = jnp.maximum(_mm(x, ff1_w_ref[l]) + ff1_b_ref[l], 0.0)  # [N, F]
        ff = _mm(hdn, ff2_w_ref[l]) + vec[3:4, :]                    # [N, Dr]
        x = _ln(x + ff, vec[4:5, :], vec[5:6, :], feat_mask)

    # torch: transformer(x)[-1] -> last sequence position of every batch.
    last = x.reshape(B, S, Dr)[:, S - 1, :]                     # [B, Dr]
    o_ref[...] = _mm(last, lin_w_ref[...]) + lin_b_ref[...]     # [B, O_PAD]


KERNEL_PARAM_ORDER = ("conv_w", "qkv_w", "qkv_b", "ff1_w", "ff1_b", "ff2_w",
                      "vecs", "lin_w", "lin_b")


def early_fusion_forward(modalities, padded_params):
    """ConcatEarly + 1x1 Conv1d + 3-layer Transformer encoder + Linear head."""
    x = jnp.concatenate(modalities, axis=2)            # ConcatEarly (dim 2)
    B, S, C = x.shape
    N = B * S
    xf = x.reshape(N, C)                               # token-major [N, C]
    # Block-diagonal batch mask for the flat [N, N] attention scores.
    bid = jnp.arange(N, dtype=jnp.int32) // S
    attn_mask = jnp.where(bid[:, None] == bid[None, :], 0.0,
                          -1e30).astype(jnp.float32)
    args = (xf, attn_mask) + tuple(padded_params[n] for n in KERNEL_PARAM_ORDER)
    kernel = functools.partial(early_fusion_kernel, B=B, S=S)
    out_p = pl.pallas_call(
        kernel,
        out_shape=jax.ShapeDtypeStruct((B, O_PAD), jnp.float32),
        in_specs=[pl.BlockSpec(memory_space=pltpu.MemorySpace.VMEM)
                  for _ in args],
        out_specs=pl.BlockSpec(memory_space=pltpu.MemorySpace.VMEM),
        compiler_params=pltpu.CompilerParams(
            vmem_limit_bytes=32 * 1024 * 1024),        # <2 MiB used; headroom
    )(*args)
    return out_p[:, :OUTPUT_DIM]                       # strip lane padding in XLA


# ---------------------------------------------------------------------------
# Host-side parameter handling
# ---------------------------------------------------------------------------
def init_params(key):
    """Deterministic synthetic parameters with the torch module's shapes."""
    D, F, L, O = EMBED_DIM, FFN_DIM, NUM_LAYERS, OUTPUT_DIM
    C = HIDDEN_DIM * NUM_MODALITIES
    ks = jax.random.split(key, 12)

    def u(k, shape, fan_in):
        bound = 1.0 / (fan_in ** 0.5)
        return jax.random.uniform(k, shape, jnp.float32, -bound, bound)

    return dict(
        conv_w=u(ks[0], (D, C), C),                  # Conv1d weight [out, in] (k=1)
        in_w=u(ks[1], (L, 3 * D, D), D),             # MHA in_proj_weight
        in_b=u(ks[2], (L, 1, 3 * D), D),             # MHA in_proj_bias
        out_w=u(ks[3], (L, D, D), D),                # MHA out_proj.weight
        out_b=u(ks[4], (L, 1, D), D),                # MHA out_proj.bias
        ln1_w=jnp.ones((L, 1, D), jnp.float32),
        ln1_b=jnp.zeros((L, 1, D), jnp.float32),
        ff1_w=u(ks[5], (L, F, D), D),                # linear1.weight
        ff1_b=u(ks[6], (L, 1, F), D),                # linear1.bias
        ff2_w=u(ks[7], (L, D, F), F),                # linear2.weight
        ff2_b=u(ks[8], (L, 1, D), F),                # linear2.bias
        ln2_w=jnp.ones((L, 1, D), jnp.float32),
        ln2_b=jnp.zeros((L, 1, D), jnp.float32),
        lin_w=u(ks[9], (O, D), D),                   # final Linear.weight
        lin_b=u(ks[10], (1, O), D),                  # final Linear.bias
    )


def prepare_padded_params(p):
    """Repack torch-shaped params host-side:
       * pre-transpose so the kernel only runs `a @ b`,
       * zero-pad the 9 real features to 16 lanes (residual) / 3 to a 128-lane
         per-head slab (q/k/folded-v),
       * fold 1/sqrt(head_dim) into q, fold W_v through out_proj (and the
         v/out biases into one constant vector),
       * store all large weights as bf16, tiny biases/LN params as f32.
    Done once, outside the kernel."""
    pn = {k: np.asarray(v, np.float32) for k, v in p.items()}
    D, Dr, H, hd, HS = EMBED_DIM, D_RES, NUM_HEADS, HEAD_DIM, HEAD_SLAB
    F, L, O, Op = FFN_DIM, NUM_LAYERS, OUTPUT_DIM, O_PAD
    C = pn["conv_w"].shape[1]
    scale = float(hd) ** -0.5

    conv_w = np.zeros((C, Dr), np.float32)
    conv_w[:, :D] = pn["conv_w"].T

    qkv_w = np.zeros((L, Dr, QKV_W), np.float32)
    qkv_b = np.zeros((L, 1, QKV_W), np.float32)
    vecs = np.zeros((L, 8, Dr), np.float32)
    for l in range(L):
        w_in, b_in = pn["in_w"][l], pn["in_b"][l, 0]       # [3D, D], [3D]
        w_o, b_o = pn["out_w"][l], pn["out_b"][l, 0]       # [D, D], [D]
        wq, wk, wv = w_in[:D], w_in[D:2 * D], w_in[2 * D:]
        bq, bk, bv = b_in[:D], b_in[D:2 * D], b_in[2 * D:]
        for h in range(H):
            rows = slice(h * hd, (h + 1) * hd)
            # q head h (scale folded in)
            qkv_w[l, :D, h * HS:h * HS + hd] = (wq[rows] * scale).T
            qkv_b[l, 0, h * HS:h * HS + hd] = bq[rows] * scale
            # k head h
            qkv_w[l, :D, (H + h) * HS:(H + h) * HS + hd] = wk[rows].T
            qkv_b[l, 0, (H + h) * HS:(H + h) * HS + hd] = bk[rows]
            # v head h folded through its out_proj block:
            #   (P_h @ x @ Wv_h^T) @ Wo_h == P_h @ x @ (Wv_h^T @ Wo_h)
            w_o_block = w_o[:, rows].T                     # [hd, D]
            qkv_w[l, :D, (2 * H + h) * HS:(2 * H + h) * HS + D] = \
                wv[rows].T @ w_o_block
        # v-bias passes through softmax unchanged (rows sum to 1) -> constant.
        vecs[l, 0, :D] = bv @ w_o.T + b_o
        vecs[l, 1, :D] = pn["ln1_w"][l, 0]
        vecs[l, 2, :D] = pn["ln1_b"][l, 0]
        vecs[l, 3, :D] = pn["ff2_b"][l, 0]
        vecs[l, 4, :D] = pn["ln2_w"][l, 0]
        vecs[l, 5, :D] = pn["ln2_b"][l, 0]

    ff1_w = np.zeros((L, Dr, F), np.float32)
    ff1_w[:, :D, :] = np.transpose(pn["ff1_w"], (0, 2, 1))
    ff2_w = np.zeros((L, F, Dr), np.float32)
    ff2_w[:, :, :D] = np.transpose(pn["ff2_w"], (0, 2, 1))

    lin_w = np.zeros((Dr, Op), np.float32)
    lin_w[:D, :O] = pn["lin_w"].T
    lin_b = np.zeros((1, Op), np.float32)
    lin_b[0, :O] = pn["lin_b"][0]

    # The padded-lane LayerNorm relies on every padded entry being exactly 0.
    assert not conv_w[:, D:].any()
    assert not qkv_w[:, D:, :].any()
    assert not ff1_w[:, D:, :].any() and not ff2_w[:, :, D:].any()
    assert not vecs[:, :, D:].any() and not vecs[:, 6:, :].any()
    assert not lin_w[D:, :].any() and not lin_w[:, O:].any()

    bf16, f32 = jnp.bfloat16, jnp.float32
    return dict(
        conv_w=jnp.asarray(conv_w, bf16),
        qkv_w=jnp.asarray(qkv_w, bf16),
        qkv_b=jnp.asarray(qkv_b, f32),
        ff1_w=jnp.asarray(ff1_w, bf16),
        ff1_b=jnp.asarray(pn["ff1_b"], f32),
        ff2_w=jnp.asarray(ff2_w, bf16),
        vecs=jnp.asarray(vecs, f32),
        lin_w=jnp.asarray(lin_w, bf16),
        lin_b=jnp.asarray(lin_b, f32),
    )


# ---------------------------------------------------------------------------
# Pure-JAX reference (unpadded, HIGHEST precision, compiled by XLA)
# ---------------------------------------------------------------------------
def _ln_ref(x, w, b):
    mu = jnp.mean(x, axis=-1, keepdims=True)
    var = jnp.mean((x - mu) ** 2, axis=-1, keepdims=True)
    return (x - mu) * lax.rsqrt(var + LN_EPS) * w + b


def _reference_forward(x, params):
    B, S, _ = x.shape
    D, H, hd = EMBED_DIM, NUM_HEADS, HEAD_DIM
    xf = x.reshape(B * S, -1)
    h = jnp.einsum('nc,dc->nd', xf, params['conv_w'], precision=HP)
    for l in range(NUM_LAYERS):
        qkv = jnp.einsum('nd,ed->ne', h, params['in_w'][l],
                         precision=HP) + params['in_b'][l]
        q, k, v = qkv[:, :D], qkv[:, D:2 * D], qkv[:, 2 * D:]
        q = q.reshape(B, S, H, hd).transpose(0, 2, 1, 3) * (hd ** -0.5)
        k = k.reshape(B, S, H, hd).transpose(0, 2, 1, 3)
        v = v.reshape(B, S, H, hd).transpose(0, 2, 1, 3)
        s = jnp.einsum('bhqd,bhkd->bhqk', q, k, precision=HP)
        p = jax.nn.softmax(s, axis=-1)
        o = jnp.einsum('bhqk,bhkd->bhqd', p, v, precision=HP)
        o = o.transpose(0, 2, 1, 3).reshape(B * S, D)
        attn = jnp.einsum('nd,ed->ne', o, params['out_w'][l],
                          precision=HP) + params['out_b'][l]
        h = _ln_ref(h + attn, params['ln1_w'][l], params['ln1_b'][l])
        f = jnp.maximum(jnp.einsum('nd,fd->nf', h, params['ff1_w'][l],
                                   precision=HP) + params['ff1_b'][l], 0.0)
        f = jnp.einsum('nf,df->nd', f, params['ff2_w'][l],
                       precision=HP) + params['ff2_b'][l]
        h = _ln_ref(h + f, params['ln2_w'][l], params['ln2_b'][l])
    last = h.reshape(B, S, D)[:, -1, :]
    return jnp.einsum('nd,od->no', last, params['lin_w'],
                      precision=HP) + params['lin_b']


if __name__ == "__main__":
    key = jax.random.PRNGKey(0)
    kp, k0, k1 = jax.random.split(key, 3)
    B, S = 2, 8
    m0 = jax.random.normal(k0, (B, S, HIDDEN_DIM), jnp.float32)
    m1 = jax.random.normal(k1, (B, S, HIDDEN_DIM), jnp.float32)

    params = init_params(kp)
    padded = prepare_padded_params(params)

    out = early_fusion_forward((m0, m1), padded)
    out = jax.block_until_ready(out)

    ref = _reference_forward(jnp.concatenate((m0, m1), axis=2), params)
    ref = jax.block_until_ready(ref)

    assert out.shape == (B, OUTPUT_DIM), out.shape
    # Kernel uses bf16 weights + single-pass MXU; reference is HIGHEST f32.
    assert jnp.allclose(out, ref, rtol=2e-2, atol=2e-2), (out, ref)
    print("KERNEL_OK")
</pallas_src>

<mosaic_0001>
module attributes {stable_mosaic.version = 11 : i64} {
  func.func @early_fusion_kernel(%arg0: memref<16x64xf32, #tpu.memory_space<vmem>>, %arg1: memref<16x16xf32, #tpu.memory_space<vmem>>, %arg2: memref<64x16xbf16, #tpu.memory_space<vmem>>, %arg3: memref<3x16x1152xbf16, #tpu.memory_space<vmem>>, %arg4: memref<3x1x1152xf32, #tpu.memory_space<vmem>>, %arg5: memref<3x16x2048xbf16, #tpu.memory_space<vmem>>, %arg6: memref<3x1x2048xf32, #tpu.memory_space<vmem>>, %arg7: memref<3x2048x16xbf16, #tpu.memory_space<vmem>>, %arg8: memref<3x8x16xf32, #tpu.memory_space<vmem>>, %arg9: memref<16x128xbf16, #tpu.memory_space<vmem>>, %arg10: memref<1x128xf32, #tpu.memory_space<vmem>>, %arg11: memref<2x128xf32, #tpu.memory_space<vmem>>) attributes {dimension_semantics = [], scalar_prefetch = 0 : i64, scratch_operands = 0 : i64, tpu.core_type = #tpu.core_type<tc>} {
    %0 = tpu.iota {dimensions = array<i32: 1>} : vector<1x16xi32>
    %c9_i32 = arith.constant 9 : i32
    %1 = vector.broadcast %c9_i32 : i32 to vector<1x16xi32>
    %2 = arith.cmpi slt, %0, %1 : vector<1x16xi32>
    %3 = arith.extui %2 : vector<1x16xi1> to vector<1x16xi32>
    %4 = arith.sitofp %3 : vector<1x16xi32> to vector<1x16xf32>
    %c0 = arith.constant 0 : index
    %c0_0 = arith.constant 0 : index
    %5 = vector.load %arg1[%c0, %c0_0] : memref<16x16xf32, #tpu.memory_space<vmem>>, vector<16x16xf32>
    %c0_1 = arith.constant 0 : index
    %c0_2 = arith.constant 0 : index
    %6 = vector.load %arg0[%c0_1, %c0_2] : memref<16x64xf32, #tpu.memory_space<vmem>>, vector<16x64xf32>
    %c0_3 = arith.constant 0 : index
    %c0_4 = arith.constant 0 : index
    %7 = vector.load %arg2[%c0_3, %c0_4] : memref<64x16xbf16, #tpu.memory_space<vmem>>, vector<64x16xbf16>
    %8 = arith.truncf %6 : vector<16x64xf32> to vector<16x64xbf16>
    %cst = arith.constant dense<0.000000e+00> : vector<16x16xf32>
    %9 = tpu.matmul %8, %7, %cst {dimension_numbers = #tpu.dot_dimension_numbers<[1], [0], [0], [1], [0, 0, 1, 1], [], []>} : vector<16x64xbf16>, vector<64x16xbf16>, vector<16x16xf32> -> vector<16x16xf32>
    %c0_5 = arith.constant 0 : index
    %c0_6 = arith.constant 0 : index
    %c0_7 = arith.constant 0 : index
    %10 = vector.load %arg8[%c0_5, %c0_6, %c0_7] : memref<3x8x16xf32, #tpu.memory_space<vmem>>, vector<1x8x16xf32>
    %11 = vector.shape_cast %10 : vector<1x8x16xf32> to vector<8x16xf32>
    %c0_8 = arith.constant 0 : index
    %c0_9 = arith.constant 0 : index
    %c0_10 = arith.constant 0 : index
    %12 = vector.load %arg3[%c0_8, %c0_9, %c0_10] : memref<3x16x1152xbf16, #tpu.memory_space<vmem>>, vector<1x16x1152xbf16>
    %13 = vector.shape_cast %12 : vector<1x16x1152xbf16> to vector<16x1152xbf16>
    %14 = arith.truncf %9 : vector<16x16xf32> to vector<16x16xbf16>
    %cst_11 = arith.constant dense<0.000000e+00> : vector<16x1152xf32>
    %15 = tpu.matmul %14, %13, %cst_11 {dimension_numbers = #tpu.dot_dimension_numbers<[1], [0], [0], [1], [0, 0, 1, 1], [], []>} : vector<16x16xbf16>, vector<16x1152xbf16>, vector<16x1152xf32> -> vector<16x1152xf32>
    %c0_12 = arith.constant 0 : index
    %c0_13 = arith.constant 0 : index
    %c0_14 = arith.constant 0 : index
    %16 = vector.load %arg4[%c0_12, %c0_13, %c0_14] : memref<3x1x1152xf32, #tpu.memory_space<vmem>>, vector<1x1x1152xf32>
    %17 = vector.shape_cast %16 : vector<1x1x1152xf32> to vector<1x1152xf32>
    %18 = vector.broadcast %17 : vector<1x1152xf32> to vector<16x1152xf32>
    %19 = arith.addf %15, %18 : vector<16x1152xf32>
    %20 = vector.extract_strided_slice %19 {offsets = [0, 0], sizes = [16, 128], strides = [1, 1]} : vector<16x1152xf32> to vector<16x128xf32>
    %21 = vector.extract_strided_slice %19 {offsets = [0, 384], sizes = [16, 128], strides = [1, 1]} : vector<16x1152xf32> to vector<16x128xf32>
    %22 = vector.extract_strided_slice %19 {offsets = [0, 768], sizes = [16, 128], strides = [1, 1]} : vector<16x1152xf32> to vector<16x128xf32>
    %cst_15 = arith.constant dense<0.000000e+00> : vector<16x16xf32>
    %23 = tpu.matmul %20, %21, %cst_15 {dimension_numbers = #tpu.dot_dimension_numbers<[1], [1], [0], [0], [0, 0, 1, 0], [], []>} : vector<16x128xf32>, vector<16x128xf32>, vector<16x16xf32> -> vector<16x16xf32>
    %24 = arith.addf %23, %5 : vector<16x16xf32>
    %cst_16 = arith.constant dense<0xFF800000> : vector<16xf32>
    %25 = vector.multi_reduction <maximumf>, %24, %cst_16 [1] : vector<16x16xf32> to vector<16xf32>
    %26 = vector.shape_cast %25 : vector<16xf32> to vector<16x1xf32>
    %27 = vector.broadcast %26 : vector<16x1xf32> to vector<16x16xf32>
    %28 = arith.subf %24, %27 : vector<16x16xf32>
    %29 = math.exp %28 : vector<16x16xf32>
    %cst_17 = arith.constant dense<0.000000e+00> : vector<16xf32>
    %30 = vector.multi_reduction <add>, %29, %cst_17 [1] : vector<16x16xf32> to vector<16xf32>
    %31 = vector.shape_cast %30 : vector<16xf32> to vector<16x1xf32>
    %32 = tpu.reciprocal %31 {approx = true} : vector<16x1xf32> -> vector<16x1xf32>
    %33 = vector.broadcast %32 : vector<16x1xf32> to vector<16x16xf32>
    %34 = arith.mulf %29, %33 : vector<16x16xf32>
    %cst_18 = arith.constant dense<0.000000e+00> : vector<16x128xf32>
    %35 = tpu.matmul %34, %22, %cst_18 {dimension_numbers = #tpu.dot_dimension_numbers<[1], [0], [0], [1], [0, 0, 1, 1], [], []>} : vector<16x16xf32>, vector<16x128xf32>, vector<16x128xf32> -> vector<16x128xf32>
    %36 = vector.extract_strided_slice %19 {offsets = [0, 128], sizes = [16, 128], strides = [1, 1]} : vector<16x1152xf32> to vector<16x128xf32>
    %37 = vector.extract_strided_slice %19 {offsets = [0, 512], sizes = [16, 128], strides = [1, 1]} : vector<16x1152xf32> to vector<16x128xf32>
    %38 = vector.extract_strided_slice %19 {offsets = [0, 896], sizes = [16, 128], strides = [1, 1]} : vector<16x1152xf32> to vector<16x128xf32>
    %cst_19 = arith.constant dense<0.000000e+00> : vector<16x16xf32>
    %39 = tpu.matmul %36, %37, %cst_19 {dimension_numbers = #tpu.dot_dimension_numbers<[1], [1], [0], [0], [0, 0, 1, 0], [], []>} : vector<16x128xf32>, vector<16x128xf32>, vector<16x16xf32> -> vector<16x16xf32>
    %40 = arith.addf %39, %5 : vector<16x16xf32>
    %cst_20 = arith.constant dense<0xFF800000> : vector<16xf32>
    %41 = vector.multi_reduction <maximumf>, %40, %cst_20 [1] : vector<16x16xf32> to vector<16xf32>
    %42 = vector.shape_cast %41 : vector<16xf32> to vector<16x1xf32>
    %43 = vector.broadcast %42 : vector<16x1xf32> to vector<16x16xf32>
    %44 = arith.subf %40, %43 : vector<16x16xf32>
    %45 = math.exp %44 : vector<16x16xf32>
    %cst_21 = arith.constant dense<0.000000e+00> : vector<16xf32>
    %46 = vector.multi_reduction <add>, %45, %cst_21 [1] : vector<16x16xf32> to vector<16xf32>
    %47 = vector.shape_cast %46 : vector<16xf32> to vector<16x1xf32>
    %48 = tpu.reciprocal %47 {approx = true} : vector<16x1xf32> -> vector<16x1xf32>
    %49 = vector.broadcast %48 : vector<16x1xf32> to vector<16x16xf32>
    %50 = arith.mulf %45, %49 : vector<16x16xf32>
    %cst_22 = arith.constant dense<0.000000e+00> : vector<16x128xf32>
    %51 = tpu.matmul %50, %38, %cst_22 {dimension_numbers = #tpu.dot_dimension_numbers<[1], [0], [0], [1], [0, 0, 1, 1], [], []>} : vector<16x16xf32>, vector<16x128xf32>, vector<16x128xf32> -> vector<16x128xf32>
    %52 = arith.addf %35, %51 : vector<16x128xf32>
    %53 = vector.extract_strided_slice %19 {offsets = [0, 256], sizes = [16, 128], strides = [1, 1]} : vector<16x1152xf32> to vector<16x128xf32>
    %54 = vector.extract_strided_slice %19 {offsets = [0, 640], sizes = [16, 128], strides = [1, 1]} : vector<16x1152xf32> to vector<16x128xf32>
    %55 = vector.extract_strided_slice %19 {offsets = [0, 1024], sizes = [16, 128], strides = [1, 1]} : vector<16x1152xf32> to vector<16x128xf32>
    %cst_23 = arith.constant dense<0.000000e+00> : vector<16x16xf32>
    %56 = tpu.matmul %53, %54, %cst_23 {dimension_numbers = #tpu.dot_dimension_numbers<[1], [1], [0], [0], [0, 0, 1, 0], [], []>} : vector<16x128xf32>, vector<16x128xf32>, vector<16x16xf32> -> vector<16x16xf32>
    %57 = arith.addf %56, %5 : vector<16x16xf32>
    %cst_24 = arith.constant dense<0xFF800000> : vector<16xf32>
    %58 = vector.multi_reduction <maximumf>, %57, %cst_24 [1] : vector<16x16xf32> to vector<16xf32>
    %59 = vector.shape_cast %58 : vector<16xf32> to vector<16x1xf32>
    %60 = vector.broadcast %59 : vector<16x1xf32> to vector<16x16xf32>
    %61 = arith.subf %57, %60 : vector<16x16xf32>
    %62 = math.exp %61 : vector<16x16xf32>
    %cst_25 = arith.constant dense<0.000000e+00> : vector<16xf32>
    %63 = vector.multi_reduction <add>, %62, %cst_25 [1] : vector<16x16xf32> to vector<16xf32>
    %64 = vector.shape_cast %63 : vector<16xf32> to vector<16x1xf32>
    %65 = tpu.reciprocal %64 {approx = true} : vector<16x1xf32> -> vector<16x1xf32>
    %66 = vector.broadcast %65 : vector<16x1xf32> to vector<16x16xf32>
    %67 = arith.mulf %62, %66 : vector<16x16xf32>
    %cst_26 = arith.constant dense<0.000000e+00> : vector<16x128xf32>
    %68 = tpu.matmul %67, %55, %cst_26 {dimension_numbers = #tpu.dot_dimension_numbers<[1], [0], [0], [1], [0, 0, 1, 1], [], []>} : vector<16x16xf32>, vector<16x128xf32>, vector<16x128xf32> -> vector<16x128xf32>
    %69 = arith.addf %52, %68 : vector<16x128xf32>
    %70 = vector.extract_strided_slice %69 {offsets = [0, 0], sizes = [16, 16], strides = [1, 1]} : vector<16x128xf32> to vector<16x16xf32>
    %71 = vector.extract_strided_slice %11 {offsets = [0, 0], sizes = [1, 16], strides = [1, 1]} : vector<8x16xf32> to vector<1x16xf32>
    %72 = vector.broadcast %71 : vector<1x16xf32> to vector<16x16xf32>
    %73 = arith.addf %70, %72 : vector<16x16xf32>
    %74 = arith.addf %9, %73 : vector<16x16xf32>
    %75 = vector.extract_strided_slice %11 {offsets = [1, 0], sizes = [1, 16], strides = [1, 1]} : vector<8x16xf32> to vector<1x16xf32>
    %76 = vector.extract_strided_slice %11 {offsets = [2, 0], sizes = [1, 16], strides = [1, 1]} : vector<8x16xf32> to vector<1x16xf32>
    %cst_27 = arith.constant dense<0.000000e+00> : vector<16xf32>
    %77 = vector.multi_reduction <add>, %74, %cst_27 [1] : vector<16x16xf32> to vector<16xf32>
    %78 = vector.shape_cast %77 : vector<16xf32> to vector<16x1xf32>
    %cst_28 = arith.constant 0.111111112 : f32
    %79 = vector.broadcast %cst_28 : f32 to vector<16x1xf32>
    %80 = arith.mulf %78, %79 : vector<16x1xf32>
    %81 = vector.broadcast %80 : vector<16x1xf32> to vector<16x16xf32>
    %82 = arith.subf %74, %81 : vector<16x16xf32>
    %83 = vector.broadcast %4 : vector<1x16xf32> to vector<16x16xf32>
    %84 = arith.mulf %82, %83 : vector<16x16xf32>
    %85 = arith.mulf %84, %84 : vector<16x16xf32>
    %cst_29 = arith.constant dense<0.000000e+00> : vector<16xf32>
    %86 = vector.multi_reduction <add>, %85, %cst_29 [1] : vector<16x16xf32> to vector<16xf32>
    %87 = vector.shape_cast %86 : vector<16xf32> to vector<16x1xf32>
    %cst_30 = arith.constant 0.111111112 : f32
    %88 = vector.broadcast %cst_30 : f32 to vector<16x1xf32>
    %89 = arith.mulf %87, %88 : vector<16x1xf32>
    %cst_31 = arith.constant 9.99999974E-6 : f32
    %90 = vector.broadcast %cst_31 : f32 to vector<16x1xf32>
    %91 = arith.addf %89, %90 : vector<16x1xf32>
    %92 = math.rsqrt %91 : vector<16x1xf32>
    %93 = vector.broadcast %92 : vector<16x1xf32> to vector<16x16xf32>
    %94 = arith.mulf %84, %93 : vector<16x16xf32>
    %95 = vector.broadcast %75 : vector<1x16xf32> to vector<16x16xf32>
    %96 = arith.mulf %94, %95 : vector<16x16xf32>
    %97 = vector.broadcast %76 : vector<1x16xf32> to vector<16x16xf32>
    %98 = arith.addf %96, %97 : vector<16x16xf32>
    %c0_32 = arith.constant 0 : index
    %c0_33 = arith.constant 0 : index
    %c0_34 = arith.constant 0 : index
    %99 = vector.load %arg5[%c0_32, %c0_33, %c0_34] : memref<3x16x2048xbf16, #tpu.memory_space<vmem>>, vector<1x16x2048xbf16>
    %100 = vector.shape_cast %99 : vector<1x16x2048xbf16> to vector<16x2048xbf16>
    %101 = arith.truncf %98 : vector<16x16xf32> to vector<16x16xbf16>
    %cst_35 = arith.constant dense<0.000000e+00> : vector<16x2048xf32>
    %102 = tpu.matmul %101, %100, %cst_35 {dimension_numbers = #tpu.dot_dimension_numbers<[1], [0], [0], [1], [0, 0, 1, 1], [], []>} : vector<16x16xbf16>, vector<16x2048xbf16>, vector<16x2048xf32> -> vector<16x2048xf32>
    %c0_36 = arith.constant 0 : index
    %c0_37 = arith.constant 0 : index
    %c0_38 = arith.constant 0 : index
    %103 = vector.load %arg6[%c0_36, %c0_37, %c0_38] : memref<3x1x2048xf32, #tpu.memory_space<vmem>>, vector<1x1x2048xf32>
    %104 = vector.shape_cast %103 : vector<1x1x2048xf32> to vector<1x2048xf32>
    %105 = vector.broadcast %104 : vector<1x2048xf32> to vector<16x2048xf32>
    %106 = arith.addf %102, %105 : vector<16x2048xf32>
    %cst_39 = arith.constant 0.000000e+00 : f32
    %107 = vector.broadcast %cst_39 : f32 to vector<16x2048xf32>
    %108 = arith.maximumf %106, %107 : vector<16x2048xf32>
    %c0_40 = arith.constant 0 : index
    %c0_41 = arith.constant 0 : index
    %c0_42 = arith.constant 0 : index
    %109 = vector.load %arg7[%c0_40, %c0_41, %c0_42] : memref<3x2048x16xbf16, #tpu.memory_space<vmem>>, vector<1x2048x16xbf16>
    %110 = vector.shape_cast %109 : vector<1x2048x16xbf16> to vector<2048x16xbf16>
    %111 = arith.truncf %108 : vector<16x2048xf32> to vector<16x2048xbf16>
    %cst_43 = arith.constant dense<0.000000e+00> : vector<16x16xf32>
    %112 = tpu.matmul %111, %110, %cst_43 {dimension_numbers = #tpu.dot_dimension_numbers<[1], [0], [0], [1], [0, 0, 1, 1], [], []>} : vector<16x2048xbf16>, vector<2048x16xbf16>, vector<16x16xf32> -> vector<16x16xf32>
    %113 = vector.extract_strided_slice %11 {offsets = [3, 0], sizes = [1, 16], strides = [1, 1]} : vector<8x16xf32> to vector<1x16xf32>
    %114 = vector.broadcast %113 : vector<1x16xf32> to vector<16x16xf32>
    %115 = arith.addf %112, %114 : vector<16x16xf32>
    %116 = arith.addf %98, %115 : vector<16x16xf32>
    %117 = vector.extract_strided_slice %11 {offsets = [4, 0], sizes = [1, 16], strides = [1, 1]} : vector<8x16xf32> to vector<1x16xf32>
    %118 = vector.extract_strided_slice %11 {offsets = [5, 0], sizes = [1, 16], strides = [1, 1]} : vector<8x16xf32> to vector<1x16xf32>
    %cst_44 = arith.constant dense<0.000000e+00> : vector<16xf32>
    %119 = vector.multi_reduction <add>, %116, %cst_44 [1] : vector<16x16xf32> to vector<16xf32>
    %120 = vector.shape_cast %119 : vector<16xf32> to vector<16x1xf32>
    %cst_45 = arith.constant 0.111111112 : f32
    %121 = vector.broadcast %cst_45 : f32 to vector<16x1xf32>
    %122 = arith.mulf %120, %121 : vector<16x1xf32>
    %123 = vector.broadcast %122 : vector<16x1xf32> to vector<16x16xf32>
    %124 = arith.subf %116, %123 : vector<16x16xf32>
    %125 = vector.broadcast %4 : vector<1x16xf32> to vector<16x16xf32>
    %126 = arith.mulf %124, %125 : vector<16x16xf32>
    %127 = arith.mulf %126, %126 : vector<16x16xf32>
    %cst_46 = arith.constant dense<0.000000e+00> : vector<16xf32>
    %128 = vector.multi_reduction <add>, %127, %cst_46 [1] : vector<16x16xf32> to vector<16xf32>
    %129 = vector.shape_cast %128 : vector<16xf32> to vector<16x1xf32>
    %cst_47 = arith.constant 0.111111112 : f32
    %130 = vector.broadcast %cst_47 : f32 to vector<16x1xf32>
    %131 = arith.mulf %129, %130 : vector<16x1xf32>
    %cst_48 = arith.constant 9.99999974E-6 : f32
    %132 = vector.broadcast %cst_48 : f32 to vector<16x1xf32>
    %133 = arith.addf %131, %132 : vector<16x1xf32>
    %134 = math.rsqrt %133 : vector<16x1xf32>
    %135 = vector.broadcast %134 : vector<16x1xf32> to vector<16x16xf32>
    %136 = arith.mulf %126, %135 : vector<16x16xf32>
    %137 = vector.broadcast %117 : vector<1x16xf32> to vector<16x16xf32>
    %138 = arith.mulf %136, %137 : vector<16x16xf32>
    %139 = vector.broadcast %118 : vector<1x16xf32> to vector<16x16xf32>
    %140 = arith.addf %138, %139 : vector<16x16xf32>
    %c1 = arith.constant 1 : index
    %c0_49 = arith.constant 0 : index
    %c0_50 = arith.constant 0 : index
    %141 = vector.load %arg8[%c1, %c0_49, %c0_50] : memref<3x8x16xf32, #tpu.memory_space<vmem>>, vector<1x8x16xf32>
    %142 = vector.shape_cast %141 : vector<1x8x16xf32> to vector<8x16xf32>
    %c1_51 = arith.constant 1 : index
    %c0_52 = arith.constant 0 : index
    %c0_53 = arith.constant 0 : index
    %143 = vector.load %arg3[%c1_51, %c0_52, %c0_53] : memref<3x16x1152xbf16, #tpu.memory_space<vmem>>, vector<1x16x1152xbf16>
    %144 = vector.shape_cast %143 : vector<1x16x1152xbf16> to vector<16x1152xbf16>
    %145 = arith.truncf %140 : vector<16x16xf32> to vector<16x16xbf16>
    %cst_54 = arith.constant dense<0.000000e+00> : vector<16x1152xf32>
    %146 = tpu.matmul %145, %144, %cst_54 {dimension_numbers = #tpu.dot_dimension_numbers<[1], [0], [0], [1], [0, 0, 1, 1], [], []>} : vector<16x16xbf16>, vector<16x1152xbf16>, vector<16x1152xf32> -> vector<16x1152xf32>
    %c1_55 = arith.constant 1 : index
    %c0_56 = arith.constant 0 : index
    %c0_57 = arith.constant 0 : index
    %147 = vector.load %arg4[%c1_55, %c0_56, %c0_57] : memref<3x1x1152xf32, #tpu.memory_space<vmem>>, vector<1x1x1152xf32>
    %148 = vector.shape_cast %147 : vector<1x1x1152xf32> to vector<1x1152xf32>
    %149 = vector.broadcast %148 : vector<1x1152xf32> to vector<16x1152xf32>
    %150 = arith.addf %146, %149 : vector<16x1152xf32>
    %151 = vector.extract_strided_slice %150 {offsets = [0, 0], sizes = [16, 128], strides = [1, 1]} : vector<16x1152xf32> to vector<16x128xf32>
    %152 = vector.extract_strided_slice %150 {offsets = [0, 384], sizes = [16, 128], strides = [1, 1]} : vector<16x1152xf32> to vector<16x128xf32>
    %153 = vector.extract_strided_slice %150 {offsets = [0, 768], sizes = [16, 128], strides = [1, 1]} : vector<16x1152xf32> to vector<16x128xf32>
    %cst_58 = arith.constant dense<0.000000e+00> : vector<16x16xf32>
    %154 = tpu.matmul %151, %152, %cst_58 {dimension_numbers = #tpu.dot_dimension_numbers<[1], [1], [0], [0], [0, 0, 1, 0], [], []>} : vector<16x128xf32>, vector<16x128xf32>, vector<16x16xf32> -> vector<16x16xf32>
    %155 = arith.addf %154, %5 : vector<16x16xf32>
    %cst_59 = arith.constant dense<0xFF800000> : vector<16xf32>
    %156 = vector.multi_reduction <maximumf>, %155, %cst_59 [1] : vector<16x16xf32> to vector<16xf32>
    %157 = vector.shape_cast %156 : vector<16xf32> to vector<16x1xf32>
    %158 = vector.broadcast %157 : vector<16x1xf32> to vector<16x16xf32>
    %159 = arith.subf %155, %158 : vector<16x16xf32>
    %160 = math.exp %159 : vector<16x16xf32>
    %cst_60 = arith.constant dense<0.000000e+00> : vector<16xf32>
    %161 = vector.multi_reduction <add>, %160, %cst_60 [1] : vector<16x16xf32> to vector<16xf32>
    %162 = vector.shape_cast %161 : vector<16xf32> to vector<16x1xf32>
    %163 = tpu.reciprocal %162 {approx = true} : vector<16x1xf32> -> vector<16x1xf32>
    %164 = vector.broadcast %163 : vector<16x1xf32> to vector<16x16xf32>
    %165 = arith.mulf %160, %164 : vector<16x16xf32>
    %cst_61 = arith.constant dense<0.000000e+00> : vector<16x128xf32>
    %166 = tpu.matmul %165, %153, %cst_61 {dimension_numbers = #tpu.dot_dimension_numbers<[1], [0], [0], [1], [0, 0, 1, 1], [], []>} : vector<16x16xf32>, vector<16x128xf32>, vector<16x128xf32> -> vector<16x128xf32>
    %167 = vector.extract_strided_slice %150 {offsets = [0, 128], sizes = [16, 128], strides = [1, 1]} : vector<16x1152xf32> to vector<16x128xf32>
    %168 = vector.extract_strided_slice %150 {offsets = [0, 512], sizes = [16, 128], strides = [1, 1]} : vector<16x1152xf32> to vector<16x128xf32>
    %169 = vector.extract_strided_slice %150 {offsets = [0, 896], sizes = [16, 128], strides = [1, 1]} : vector<16x1152xf32> to vector<16x128xf32>
    %cst_62 = arith.constant dense<0.000000e+00> : vector<16x16xf32>
    %170 = tpu.matmul %167, %168, %cst_62 {dimension_numbers = #tpu.dot_dimension_numbers<[1], [1], [0], [0], [0, 0, 1, 0], [], []>} : vector<16x128xf32>, vector<16x128xf32>, vector<16x16xf32> -> vector<16x16xf32>
    %171 = arith.addf %170, %5 : vector<16x16xf32>
    %cst_63 = arith.constant dense<0xFF800000> : vector<16xf32>
    %172 = vector.multi_reduction <maximumf>, %171, %cst_63 [1] : vector<16x16xf32> to vector<16xf32>
    %173 = vector.shape_cast %172 : vector<16xf32> to vector<16x1xf32>
    %174 = vector.broadcast %173 : vector<16x1xf32> to vector<16x16xf32>
    %175 = arith.subf %171, %174 : vector<16x16xf32>
    %176 = math.exp %175 : vector<16x16xf32>
    %cst_64 = arith.constant dense<0.000000e+00> : vector<16xf32>
    %177 = vector.multi_reduction <add>, %176, %cst_64 [1] : vector<16x16xf32> to vector<16xf32>
    %178 = vector.shape_cast %177 : vector<16xf32> to vector<16x1xf32>
    %179 = tpu.reciprocal %178 {approx = true} : vector<16x1xf32> -> vector<16x1xf32>
    %180 = vector.broadcast %179 : vector<16x1xf32> to vector<16x16xf32>
    %181 = arith.mulf %176, %180 : vector<16x16xf32>
    %cst_65 = arith.constant dense<0.000000e+00> : vector<16x128xf32>
    %182 = tpu.matmul %181, %169, %cst_65 {dimension_numbers = #tpu.dot_dimension_numbers<[1], [0], [0], [1], [0, 0, 1, 1], [], []>} : vector<16x16xf32>, vector<16x128xf32>, vector<16x128xf32> -> vector<16x128xf32>
    %183 = arith.addf %166, %182 : vector<16x128xf32>
    %184 = vector.extract_strided_slice %150 {offsets = [0, 256], sizes = [16, 128], strides = [1, 1]} : vector<16x1152xf32> to vector<16x128xf32>
    %185 = vector.extract_strided_slice %150 {offsets = [0, 640], sizes = [16, 128], strides = [1, 1]} : vector<16x1152xf32> to vector<16x128xf32>
    %186 = vector.extract_strided_slice %150 {offsets = [0, 1024], sizes = [16, 128], strides = [1, 1]} : vector<16x1152xf32> to vector<16x128xf32>
    %cst_66 = arith.constant dense<0.000000e+00> : vector<16x16xf32>
    %187 = tpu.matmul %184, %185, %cst_66 {dimension_numbers = #tpu.dot_dimension_numbers<[1], [1], [0], [0], [0, 0, 1, 0], [], []>} : vector<16x128xf32>, vector<16x128xf32>, vector<16x16xf32> -> vector<16x16xf32>
    %188 = arith.addf %187, %5 : vector<16x16xf32>
    %cst_67 = arith.constant dense<0xFF800000> : vector<16xf32>
    %189 = vector.multi_reduction <maximumf>, %188, %cst_67 [1] : vector<16x16xf32> to vector<16xf32>
    %190 = vector.shape_cast %189 : vector<16xf32> to vector<16x1xf32>
    %191 = vector.broadcast %190 : vector<16x1xf32> to vector<16x16xf32>
    %192 = arith.subf %188, %191 : vector<16x16xf32>
    %193 = math.exp %192 : vector<16x16xf32>
    %cst_68 = arith.constant dense<0.000000e+00> : vector<16xf32>
    %194 = vector.multi_reduction <add>, %193, %cst_68 [1] : vector<16x16xf32> to vector<16xf32>
    %195 = vector.shape_cast %194 : vector<16xf32> to vector<16x1xf32>
    %196 = tpu.reciprocal %195 {approx = true} : vector<16x1xf32> -> vector<16x1xf32>
    %197 = vector.broadcast %196 : vector<16x1xf32> to vector<16x16xf32>
    %198 = arith.mulf %193, %197 : vector<16x16xf32>
    %cst_69 = arith.constant dense<0.000000e+00> : vector<16x128xf32>
    %199 = tpu.matmul %198, %186, %cst_69 {dimension_numbers = #tpu.dot_dimension_numbers<[1], [0], [0], [1], [0, 0, 1, 1], [], []>} : vector<16x16xf32>, vector<16x128xf32>, vector<16x128xf32> -> vector<16x128xf32>
    %200 = arith.addf %183, %199 : vector<16x128xf32>
    %201 = vector.extract_strided_slice %200 {offsets = [0, 0], sizes = [16, 16], strides = [1, 1]} : vector<16x128xf32> to vector<16x16xf32>
    %202 = vector.extract_strided_slice %142 {offsets = [0, 0], sizes = [1, 16], strides = [1, 1]} : vector<8x16xf32> to vector<1x16xf32>
    %203 = vector.broadcast %202 : vector<1x16xf32> to vector<16x16xf32>
    %204 = arith.addf %201, %203 : vector<16x16xf32>
    %205 = arith.addf %140, %204 : vector<16x16xf32>
    %206 = vector.extract_strided_slice %142 {offsets = [1, 0], sizes = [1, 16], strides = [1, 1]} : vector<8x16xf32> to vector<1x16xf32>
    %207 = vector.extract_strided_slice %142 {offsets = [2, 0], sizes = [1, 16], strides = [1, 1]} : vector<8x16xf32> to vector<1x16xf32>
    %cst_70 = arith.constant dense<0.000000e+00> : vector<16xf32>
    %208 = vector.multi_reduction <add>, %205, %cst_70 [1] : vector<16x16xf32> to vector<16xf32>
    %209 = vector.shape_cast %208 : vector<16xf32> to vector<16x1xf32>
    %cst_71 = arith.constant 0.111111112 : f32
    %210 = vector.broadcast %cst_71 : f32 to vector<16x1xf32>
    %211 = arith.mulf %209, %210 : vector<16x1xf32>
    %212 = vector.broadcast %211 : vector<16x1xf32> to vector<16x16xf32>
    %213 = arith.subf %205, %212 : vector<16x16xf32>
    %214 = vector.broadcast %4 : vector<1x16xf32> to vector<16x16xf32>
    %215 = arith.mulf %213, %214 : vector<16x16xf32>
    %216 = arith.mulf %215, %215 : vector<16x16xf32>
    %cst_72 = arith.constant dense<0.000000e+00> : vector<16xf32>
    %217 = vector.multi_reduction <add>, %216, %cst_72 [1] : vector<16x16xf32> to vector<16xf32>
    %218 = vector.shape_cast %217 : vector<16xf32> to vector<16x1xf32>
    %cst_73 = arith.constant 0.111111112 : f32
    %219 = vector.broadcast %cst_73 : f32 to vector<16x1xf32>
    %220 = arith.mulf %218, %219 : vector<16x1xf32>
    %cst_74 = arith.constant 9.99999974E-6 : f32
    %221 = vector.broadcast %cst_74 : f32 to vector<16x1xf32>
    %222 = arith.addf %220, %221 : vector<16x1xf32>
    %223 = math.rsqrt %222 : vector<16x1xf32>
    %224 = vector.broadcast %223 : vector<16x1xf32> to vector<16x16xf32>
    %225 = arith.mulf %215, %224 : vector<16x16xf32>
    %226 = vector.broadcast %206 : vector<1x16xf32> to vector<16x16xf32>
    %227 = arith.mulf %225, %226 : vector<16x16xf32>
    %228 = vector.broadcast %207 : vector<1x16xf32> to vector<16x16xf32>
    %229 = arith.addf %227, %228 : vector<16x16xf32>
    %c1_75 = arith.constant 1 : index
    %c0_76 = arith.constant 0 : index
    %c0_77 = arith.constant 0 : index
    %230 = vector.load %arg5[%c1_75, %c0_76, %c0_77] : memref<3x16x2048xbf16, #tpu.memory_space<vmem>>, vector<1x16x2048xbf16>
    %231 = vector.shape_cast %230 : vector<1x16x2048xbf16> to vector<16x2048xbf16>
    %232 = arith.truncf %229 : vector<16x16xf32> to vector<16x16xbf16>
    %cst_78 = arith.constant dense<0.000000e+00> : vector<16x2048xf32>
    %233 = tpu.matmul %232, %231, %cst_78 {dimension_numbers = #tpu.dot_dimension_numbers<[1], [0], [0], [1], [0, 0, 1, 1], [], []>} : vector<16x16xbf16>, vector<16x2048xbf16>, vector<16x2048xf32> -> vector<16x2048xf32>
    %c1_79 = arith.constant 1 : index
    %c0_80 = arith.constant 0 : index
    %c0_81 = arith.constant 0 : index
    %234 = vector.load %arg6[%c1_79, %c0_80, %c0_81] : memref<3x1x2048xf32, #tpu.memory_space<vmem>>, vector<1x1x2048xf32>
    %235 = vector.shape_cast %234 : vector<1x1x2048xf32> to vector<1x2048xf32>
    %236 = vector.broadcast %235 : vector<1x2048xf32> to vector<16x2048xf32>
    %237 = arith.addf %233, %236 : vector<16x2048xf32>
    %cst_82 = arith.constant 0.000000e+00 : f32
    %238 = vector.broadcast %cst_82 : f32 to vector<16x2048xf32>
    %239 = arith.maximumf %237, %238 : vector<16x2048xf32>
    %c1_83 = arith.constant 1 : index
    %c0_84 = arith.constant 0 : index
    %c0_85 = arith.constant 0 : index
    %240 = vector.load %arg7[%c1_83, %c0_84, %c0_85] : memref<3x2048x16xbf16, #tpu.memory_space<vmem>>, vector<1x2048x16xbf16>
    %241 = vector.shape_cast %240 : vector<1x2048x16xbf16> to vector<2048x16xbf16>
    %242 = arith.truncf %239 : vector<16x2048xf32> to vector<16x2048xbf16>
    %cst_86 = arith.constant dense<0.000000e+00> : vector<16x16xf32>
    %243 = tpu.matmul %242, %241, %cst_86 {dimension_numbers = #tpu.dot_dimension_numbers<[1], [0], [0], [1], [0, 0, 1, 1], [], []>} : vector<16x2048xbf16>, vector<2048x16xbf16>, vector<16x16xf32> -> vector<16x16xf32>
    %244 = vector.extract_strided_slice %142 {offsets = [3, 0], sizes = [1, 16], strides = [1, 1]} : vector<8x16xf32> to vector<1x16xf32>
    %245 = vector.broadcast %244 : vector<1x16xf32> to vector<16x16xf32>
    %246 = arith.addf %243, %245 : vector<16x16xf32>
    %247 = arith.addf %229, %246 : vector<16x16xf32>
    %248 = vector.extract_strided_slice %142 {offsets = [4, 0], sizes = [1, 16], strides = [1, 1]} : vector<8x16xf32> to vector<1x16xf32>
    %249 = vector.extract_strided_slice %142 {offsets = [5, 0], sizes = [1, 16], strides = [1, 1]} : vector<8x16xf32> to vector<1x16xf32>
    %cst_87 = arith.constant dense<0.000000e+00> : vector<16xf32>
    %250 = vector.multi_reduction <add>, %247, %cst_87 [1] : vector<16x16xf32> to vector<16xf32>
    %251 = vector.shape_cast %250 : vector<16xf32> to vector<16x1xf32>
    %cst_88 = arith.constant 0.111111112 : f32
    %252 = vector.broadcast %cst_88 : f32 to vector<16x1xf32>
    %253 = arith.mulf %251, %252 : vector<16x1xf32>
    %254 = vector.broadcast %253 : vector<16x1xf32> to vector<16x16xf32>
    %255 = arith.subf %247, %254 : vector<16x16xf32>
    %256 = vector.broadcast %4 : vector<1x16xf32> to vector<16x16xf32>
    %257 = arith.mulf %255, %256 : vector<16x16xf32>
    %258 = arith.mulf %257, %257 : vector<16x16xf32>
    %cst_89 = arith.constant dense<0.000000e+00> : vector<16xf32>
    %259 = vector.multi_reduction <add>, %258, %cst_89 [1] : vector<16x16xf32> to vector<16xf32>
    %260 = vector.shape_cast %259 : vector<16xf32> to vector<16x1xf32>
    %cst_90 = arith.constant 0.111111112 : f32
    %261 = vector.broadcast %cst_90 : f32 to vector<16x1xf32>
    %262 = arith.mulf %260, %261 : vector<16x1xf32>
    %cst_91 = arith.constant 9.99999974E-6 : f32
    %263 = vector.broadcast %cst_91 : f32 to vector<16x1xf32>
    %264 = arith.addf %262, %263 : vector<16x1xf32>
    %265 = math.rsqrt %264 : vector<16x1xf32>
    %266 = vector.broadcast %265 : vector<16x1xf32> to vector<16x16xf32>
    %267 = arith.mulf %257, %266 : vector<16x16xf32>
    %268 = vector.broadcast %248 : vector<1x16xf32> to vector<16x16xf32>
    %269 = arith.mulf %267, %268 : vector<16x16xf32>
    %270 = vector.broadcast %249 : vector<1x16xf32> to vector<16x16xf32>
    %271 = arith.addf %269, %270 : vector<16x16xf32>
    %c2 = arith.constant 2 : index
    %c0_92 = arith.constant 0 : index
    %c0_93 = arith.constant 0 : index
    %272 = vector.load %arg8[%c2, %c0_92, %c0_93] : memref<3x8x16xf32, #tpu.memory_space<vmem>>, vector<1x8x16xf32>
    %273 = vector.shape_cast %272 : vector<1x8x16xf32> to vector<8x16xf32>
    %c2_94 = arith.constant 2 : index
    %c0_95 = arith.constant 0 : index
    %c0_96 = arith.constant 0 : index
    %274 = vector.load %arg3[%c2_94, %c0_95, %c0_96] : memref<3x16x1152xbf16, #tpu.memory_space<vmem>>, vector<1x16x1152xbf16>
    %275 = vector.shape_cast %274 : vector<1x16x1152xbf16> to vector<16x1152xbf16>
    %276 = arith.truncf %271 : vector<16x16xf32> to vector<16x16xbf16>
    %cst_97 = arith.constant dense<0.000000e+00> : vector<16x1152xf32>
    %277 = tpu.matmul %276, %275, %cst_97 {dimension_numbers = #tpu.dot_dimension_numbers<[1], [0], [0], [1], [0, 0, 1, 1], [], []>} : vector<16x16xbf16>, vector<16x1152xbf16>, vector<16x1152xf32> -> vector<16x1152xf32>
    %c2_98 = arith.constant 2 : index
    %c0_99 = arith.constant 0 : index
    %c0_100 = arith.constant 0 : index
    %278 = vector.load %arg4[%c2_98, %c0_99, %c0_100] : memref<3x1x1152xf32, #tpu.memory_space<vmem>>, vector<1x1x1152xf32>
    %279 = vector.shape_cast %278 : vector<1x1x1152xf32> to vector<1x1152xf32>
    %280 = vector.broadcast %279 : vector<1x1152xf32> to vector<16x1152xf32>
    %281 = arith.addf %277, %280 : vector<16x1152xf32>
    %282 = vector.extract_strided_slice %281 {offsets = [0, 0], sizes = [16, 128], strides = [1, 1]} : vector<16x1152xf32> to vector<16x128xf32>
    %283 = vector.extract_strided_slice %281 {offsets = [0, 384], sizes = [16, 128], strides = [1, 1]} : vector<16x1152xf32> to vector<16x128xf32>
    %284 = vector.extract_strided_slice %281 {offsets = [0, 768], sizes = [16, 128], strides = [1, 1]} : vector<16x1152xf32> to vector<16x128xf32>
    %cst_101 = arith.constant dense<0.000000e+00> : vector<16x16xf32>
    %285 = tpu.matmul %282, %283, %cst_101 {dimension_numbers = #tpu.dot_dimension_numbers<[1], [1], [0], [0], [0, 0, 1, 0], [], []>} : vector<16x128xf32>, vector<16x128xf32>, vector<16x16xf32> -> vector<16x16xf32>
    %286 = arith.addf %285, %5 : vector<16x16xf32>
    %cst_102 = arith.constant dense<0xFF800000> : vector<16xf32>
    %287 = vector.multi_reduction <maximumf>, %286, %cst_102 [1] : vector<16x16xf32> to vector<16xf32>
    %288 = vector.shape_cast %287 : vector<16xf32> to vector<16x1xf32>
    %289 = vector.broadcast %288 : vector<16x1xf32> to vector<16x16xf32>
    %290 = arith.subf %286, %289 : vector<16x16xf32>
    %291 = math.exp %290 : vector<16x16xf32>
    %cst_103 = arith.constant dense<0.000000e+00> : vector<16xf32>
    %292 = vector.multi_reduction <add>, %291, %cst_103 [1] : vector<16x16xf32> to vector<16xf32>
    %293 = vector.shape_cast %292 : vector<16xf32> to vector<16x1xf32>
    %294 = tpu.reciprocal %293 {approx = true} : vector<16x1xf32> -> vector<16x1xf32>
    %295 = vector.broadcast %294 : vector<16x1xf32> to vector<16x16xf32>
    %296 = arith.mulf %291, %295 : vector<16x16xf32>
    %cst_104 = arith.constant dense<0.000000e+00> : vector<16x128xf32>
    %297 = tpu.matmul %296, %284, %cst_104 {dimension_numbers = #tpu.dot_dimension_numbers<[1], [0], [0], [1], [0, 0, 1, 1], [], []>} : vector<16x16xf32>, vector<16x128xf32>, vector<16x128xf32> -> vector<16x128xf32>
    %298 = vector.extract_strided_slice %281 {offsets = [0, 128], sizes = [16, 128], strides = [1, 1]} : vector<16x1152xf32> to vector<16x128xf32>
    %299 = vector.extract_strided_slice %281 {offsets = [0, 512], sizes = [16, 128], strides = [1, 1]} : vector<16x1152xf32> to vector<16x128xf32>
    %300 = vector.extract_strided_slice %281 {offsets = [0, 896], sizes = [16, 128], strides = [1, 1]} : vector<16x1152xf32> to vector<16x128xf32>
    %cst_105 = arith.constant dense<0.000000e+00> : vector<16x16xf32>
    %301 = tpu.matmul %298, %299, %cst_105 {dimension_numbers = #tpu.dot_dimension_numbers<[1], [1], [0], [0], [0, 0, 1, 0], [], []>} : vector<16x128xf32>, vector<16x128xf32>, vector<16x16xf32> -> vector<16x16xf32>
    %302 = arith.addf %301, %5 : vector<16x16xf32>
    %cst_106 = arith.constant dense<0xFF800000> : vector<16xf32>
    %303 = vector.multi_reduction <maximumf>, %302, %cst_106 [1] : vector<16x16xf32> to vector<16xf32>
    %304 = vector.shape_cast %303 : vector<16xf32> to vector<16x1xf32>
    %305 = vector.broadcast %304 : vector<16x1xf32> to vector<16x16xf32>
    %306 = arith.subf %302, %305 : vector<16x16xf32>
    %307 = math.exp %306 : vector<16x16xf32>
    %cst_107 = arith.constant dense<0.000000e+00> : vector<16xf32>
    %308 = vector.multi_reduction <add>, %307, %cst_107 [1] : vector<16x16xf32> to vector<16xf32>
    %309 = vector.shape_cast %308 : vector<16xf32> to vector<16x1xf32>
    %310 = tpu.reciprocal %309 {approx = true} : vector<16x1xf32> -> vector<16x1xf32>
    %311 = vector.broadcast %310 : vector<16x1xf32> to vector<16x16xf32>
    %312 = arith.mulf %307, %311 : vector<16x16xf32>
    %cst_108 = arith.constant dense<0.000000e+00> : vector<16x128xf32>
    %313 = tpu.matmul %312, %300, %cst_108 {dimension_numbers = #tpu.dot_dimension_numbers<[1], [0], [0], [1], [0, 0, 1, 1], [], []>} : vector<16x16xf32>, vector<16x128xf32>, vector<16x128xf32> -> vector<16x128xf32>
    %314 = arith.addf %297, %313 : vector<16x128xf32>
    %315 = vector.extract_strided_slice %281 {offsets = [0, 256], sizes = [16, 128], strides = [1, 1]} : vector<16x1152xf32> to vector<16x128xf32>
    %316 = vector.extract_strided_slice %281 {offsets = [0, 640], sizes = [16, 128], strides = [1, 1]} : vector<16x1152xf32> to vector<16x128xf32>
    %317 = vector.extract_strided_slice %281 {offsets = [0, 1024], sizes = [16, 128], strides = [1, 1]} : vector<16x1152xf32> to vector<16x128xf32>
    %cst_109 = arith.constant dense<0.000000e+00> : vector<16x16xf32>
    %318 = tpu.matmul %315, %316, %cst_109 {dimension_numbers = #tpu.dot_dimension_numbers<[1], [1], [0], [0], [0, 0, 1, 0], [], []>} : vector<16x128xf32>, vector<16x128xf32>, vector<16x16xf32> -> vector<16x16xf32>
    %319 = arith.addf %318, %5 : vector<16x16xf32>
    %cst_110 = arith.constant dense<0xFF800000> : vector<16xf32>
    %320 = vector.multi_reduction <maximumf>, %319, %cst_110 [1] : vector<16x16xf32> to vector<16xf32>
    %321 = vector.shape_cast %320 : vector<16xf32> to vector<16x1xf32>
    %322 = vector.broadcast %321 : vector<16x1xf32> to vector<16x16xf32>
    %323 = arith.subf %319, %322 : vector<16x16xf32>
    %324 = math.exp %323 : vector<16x16xf32>
    %cst_111 = arith.constant dense<0.000000e+00> : vector<16xf32>
    %325 = vector.multi_reduction <add>, %324, %cst_111 [1] : vector<16x16xf32> to vector<16xf32>
    %326 = vector.shape_cast %325 : vector<16xf32> to vector<16x1xf32>
    %327 = tpu.reciprocal %326 {approx = true} : vector<16x1xf32> -> vector<16x1xf32>
    %328 = vector.broadcast %327 : vector<16x1xf32> to vector<16x16xf32>
    %329 = arith.mulf %324, %328 : vector<16x16xf32>
    %cst_112 = arith.constant dense<0.000000e+00> : vector<16x128xf32>
    %330 = tpu.matmul %329, %317, %cst_112 {dimension_numbers = #tpu.dot_dimension_numbers<[1], [0], [0], [1], [0, 0, 1, 1], [], []>} : vector<16x16xf32>, vector<16x128xf32>, vector<16x128xf32> -> vector<16x128xf32>
    %331 = arith.addf %314, %330 : vector<16x128xf32>
    %332 = vector.extract_strided_slice %331 {offsets = [0, 0], sizes = [16, 16], strides = [1, 1]} : vector<16x128xf32> to vector<16x16xf32>
    %333 = vector.extract_strided_slice %273 {offsets = [0, 0], sizes = [1, 16], strides = [1, 1]} : vector<8x16xf32> to vector<1x16xf32>
    %334 = vector.broadcast %333 : vector<1x16xf32> to vector<16x16xf32>
    %335 = arith.addf %332, %334 : vector<16x16xf32>
    %336 = arith.addf %271, %335 : vector<16x16xf32>
    %337 = vector.extract_strided_slice %273 {offsets = [1, 0], sizes = [1, 16], strides = [1, 1]} : vector<8x16xf32> to vector<1x16xf32>
    %338 = vector.extract_strided_slice %273 {offsets = [2, 0], sizes = [1, 16], strides = [1, 1]} : vector<8x16xf32> to vector<1x16xf32>
    %cst_113 = arith.constant dense<0.000000e+00> : vector<16xf32>
    %339 = vector.multi_reduction <add>, %336, %cst_113 [1] : vector<16x16xf32> to vector<16xf32>
    %340 = vector.shape_cast %339 : vector<16xf32> to vector<16x1xf32>
    %cst_114 = arith.constant 0.111111112 : f32
    %341 = vector.broadcast %cst_114 : f32 to vector<16x1xf32>
    %342 = arith.mulf %340, %341 : vector<16x1xf32>
    %343 = vector.broadcast %342 : vector<16x1xf32> to vector<16x16xf32>
    %344 = arith.subf %336, %343 : vector<16x16xf32>
    %345 = vector.broadcast %4 : vector<1x16xf32> to vector<16x16xf32>
    %346 = arith.mulf %344, %345 : vector<16x16xf32>
    %347 = arith.mulf %346, %346 : vector<16x16xf32>
    %cst_115 = arith.constant dense<0.000000e+00> : vector<16xf32>
    %348 = vector.multi_reduction <add>, %347, %cst_115 [1] : vector<16x16xf32> to vector<16xf32>
    %349 = vector.shape_cast %348 : vector<16xf32> to vector<16x1xf32>
    %cst_116 = arith.constant 0.111111112 : f32
    %350 = vector.broadcast %cst_116 : f32 to vector<16x1xf32>
    %351 = arith.mulf %349, %350 : vector<16x1xf32>
    %cst_117 = arith.constant 9.99999974E-6 : f32
    %352 = vector.broadcast %cst_117 : f32 to vector<16x1xf32>
    %353 = arith.addf %351, %352 : vector<16x1xf32>
    %354 = math.rsqrt %353 : vector<16x1xf32>
    %355 = vector.broadcast %354 : vector<16x1xf32> to vector<16x16xf32>
    %356 = arith.mulf %346, %355 : vector<16x16xf32>
    %357 = vector.broadcast %337 : vector<1x16xf32> to vector<16x16xf32>
    %358 = arith.mulf %356, %357 : vector<16x16xf32>
    %359 = vector.broadcast %338 : vector<1x16xf32> to vector<16x16xf32>
    %360 = arith.addf %358, %359 : vector<16x16xf32>
    %c2_118 = arith.constant 2 : index
    %c0_119 = arith.constant 0 : index
    %c0_120 = arith.constant 0 : index
    %361 = vector.load %arg5[%c2_118, %c0_119, %c0_120] : memref<3x16x2048xbf16, #tpu.memory_space<vmem>>, vector<1x16x2048xbf16>
    %362 = vector.shape_cast %361 : vector<1x16x2048xbf16> to vector<16x2048xbf16>
    %363 = arith.truncf %360 : vector<16x16xf32> to vector<16x16xbf16>
    %cst_121 = arith.constant dense<0.000000e+00> : vector<16x2048xf32>
    %364 = tpu.matmul %363, %362, %cst_121 {dimension_numbers = #tpu.dot_dimension_numbers<[1], [0], [0], [1], [0, 0, 1, 1], [], []>} : vector<16x16xbf16>, vector<16x2048xbf16>, vector<16x2048xf32> -> vector<16x2048xf32>
    %c2_122 = arith.constant 2 : index
    %c0_123 = arith.constant 0 : index
    %c0_124 = arith.constant 0 : index
    %365 = vector.load %arg6[%c2_122, %c0_123, %c0_124] : memref<3x1x2048xf32, #tpu.memory_space<vmem>>, vector<1x1x2048xf32>
    %366 = vector.shape_cast %365 : vector<1x1x2048xf32> to vector<1x2048xf32>
    %367 = vector.broadcast %366 : vector<1x2048xf32> to vector<16x2048xf32>
    %368 = arith.addf %364, %367 : vector<16x2048xf32>
    %cst_125 = arith.constant 0.000000e+00 : f32
    %369 = vector.broadcast %cst_125 : f32 to vector<16x2048xf32>
    %370 = arith.maximumf %368, %369 : vector<16x2048xf32>
    %c2_126 = arith.constant 2 : index
    %c0_127 = arith.constant 0 : index
    %c0_128 = arith.constant 0 : index
    %371 = vector.load %arg7[%c2_126, %c0_127, %c0_128] : memref<3x2048x16xbf16, #tpu.memory_space<vmem>>, vector<1x2048x16xbf16>
    %372 = vector.shape_cast %371 : vector<1x2048x16xbf16> to vector<2048x16xbf16>
    %373 = arith.truncf %370 : vector<16x2048xf32> to vector<16x2048xbf16>
    %cst_129 = arith.constant dense<0.000000e+00> : vector<16x16xf32>
    %374 = tpu.matmul %373, %372, %cst_129 {dimension_numbers = #tpu.dot_dimension_numbers<[1], [0], [0], [1], [0, 0, 1, 1], [], []>} : vector<16x2048xbf16>, vector<2048x16xbf16>, vector<16x16xf32> -> vector<16x16xf32>
    %375 = vector.extract_strided_slice %273 {offsets = [3, 0], sizes = [1, 16], strides = [1, 1]} : vector<8x16xf32> to vector<1x16xf32>
    %376 = vector.broadcast %375 : vector<1x16xf32> to vector<16x16xf32>
    %377 = arith.addf %374, %376 : vector<16x16xf32>
    %378 = arith.addf %360, %377 : vector<16x16xf32>
    %379 = vector.extract_strided_slice %273 {offsets = [4, 0], sizes = [1, 16], strides = [1, 1]} : vector<8x16xf32> to vector<1x16xf32>
    %380 = vector.extract_strided_slice %273 {offsets = [5, 0], sizes = [1, 16], strides = [1, 1]} : vector<8x16xf32> to vector<1x16xf32>
    %cst_130 = arith.constant dense<0.000000e+00> : vector<16xf32>
    %381 = vector.multi_reduction <add>, %378, %cst_130 [1] : vector<16x16xf32> to vector<16xf32>
    %382 = vector.shape_cast %381 : vector<16xf32> to vector<16x1xf32>
    %cst_131 = arith.constant 0.111111112 : f32
    %383 = vector.broadcast %cst_131 : f32 to vector<16x1xf32>
    %384 = arith.mulf %382, %383 : vector<16x1xf32>
    %385 = vector.broadcast %384 : vector<16x1xf32> to vector<16x16xf32>
    %386 = arith.subf %378, %385 : vector<16x16xf32>
    %387 = vector.broadcast %4 : vector<1x16xf32> to vector<16x16xf32>
    %388 = arith.mulf %386, %387 : vector<16x16xf32>
    %389 = arith.mulf %388, %388 : vector<16x16xf32>
    %cst_132 = arith.constant dense<0.000000e+00> : vector<16xf32>
    %390 = vector.multi_reduction <add>, %389, %cst_132 [1] : vector<16x16xf32> to vector<16xf32>
    %391 = vector.shape_cast %390 : vector<16xf32> to vector<16x1xf32>
    %cst_133 = arith.constant 0.111111112 : f32
    %392 = vector.broadcast %cst_133 : f32 to vector<16x1xf32>
    %393 = arith.mulf %391, %392 : vector<16x1xf32>
    %cst_134 = arith.constant 9.99999974E-6 : f32
    %394 = vector.broadcast %cst_134 : f32 to vector<16x1xf32>
    %395 = arith.addf %393, %394 : vector<16x1xf32>
    %396 = math.rsqrt %395 : vector<16x1xf32>
    %397 = vector.broadcast %396 : vector<16x1xf32> to vector<16x16xf32>
    %398 = arith.mulf %388, %397 : vector<16x16xf32>
    %399 = vector.broadcast %379 : vector<1x16xf32> to vector<16x16xf32>
    %400 = arith.mulf %398, %399 : vector<16x16xf32>
    %401 = vector.broadcast %380 : vector<1x16xf32> to vector<16x16xf32>
    %402 = arith.addf %400, %401 : vector<16x16xf32>
    %403 = vector.shape_cast %402 : vector<16x16xf32> to vector<2x8x16xf32>
    %404 = vector.extract_strided_slice %403 {offsets = [0, 7, 0], sizes = [2, 1, 16], strides = [1, 1, 1]} : vector<2x8x16xf32> to vector<2x1x16xf32>
    %405 = vector.shape_cast %404 : vector<2x1x16xf32> to vector<2x16xf32>
    %c0_135 = arith.constant 0 : index
    %c0_136 = arith.constant 0 : index
    %406 = vector.load %arg9[%c0_135, %c0_136] : memref<16x128xbf16, #tpu.memory_space<vmem>>, vector<16x128xbf16>
    %407 = arith.truncf %405 : vector<2x16xf32> to vector<2x16xbf16>
    %cst_137 = arith.constant dense<0.000000e+00> : vector<2x128xf32>
    %408 = tpu.matmul %407, %406, %cst_137 {dimension_numbers = #tpu.dot_dimension_numbers<[1], [0], [0], [1], [0, 0, 1, 1], [], []>} : vector<2x16xbf16>, vector<16x128xbf16>, vector<2x128xf32> -> vector<2x128xf32>
    %c0_138 = arith.constant 0 : index
    %c0_139 = arith.constant 0 : index
    %409 = vector.load %arg10[%c0_138, %c0_139] : memref<1x128xf32, #tpu.memory_space<vmem>>, vector<1x128xf32>
    %410 = vector.broadcast %409 : vector<1x128xf32> to vector<2x128xf32>
    %411 = arith.addf %408, %410 : vector<2x128xf32>
    %c0_140 = arith.constant 0 : index
    %c0_141 = arith.constant 0 : index
    %412 = vector.load %arg11[%c0_140, %c0_141] : memref<2x128xf32, #tpu.memory_space<vmem>>, vector<2x128xf32>
    tpu.vector_store %arg11[%c0_140, %c0_141], %411 {strides = array<i32>} : memref<2x128xf32, #tpu.memory_space<vmem>>, vector<2x128xf32>,
    return
  }
}

</mosaic_0001>

<bundles_post_ra>
// kernel: tpu_custom_call.1
= control target key start
LH: loop header
LB: loop body
LE: loop exit
PB: predicated region body
PF: predicated region fallthrough
CT: control target
= control target key end

     0   :  { %v11301_v1 = vmov 0.0   ;;  %vm11302_vm0 = vmmov 0   ;;  %vm82_vm1 = vcmask 523264   ;;  %v11303_v12 = vmov 0   ;;  %s13452_s0 = inlined_call_operand.vmem [shape: f32[16,64], index: 0, kind: input, shape index: {}]   ;;  %s13453_s1 = inlined_call_operand.vmem [shape: f32[16,16], index: 1, kind: input, shape index: {}]   ;;  %s13454_s2 = inlined_call_operand.vmem [shape: bf16[64,16], index: 2, kind: input, shape index: {}]   ;;  %s13455_s3 = inlined_call_operand.vmem [shape: bf16[3,16,1152], index: 3, kind: input, shape index: {}]   ;;  %s13456_s4 = inlined_call_operand.vmem [shape: f32[3,1,1152], index: 4, kind: input, shape index: {}]   ;;  %s13457_s5 = inlined_call_operand.vmem [shape: bf16[3,16,2048], index: 5, kind: input, shape index: {}]   ;;  %s13458_s6 = inlined_call_operand.vmem [shape: f32[3,1,2048], index: 6, kind: input, shape index: {}]   ;;  %s13459_s7 = inlined_call_operand.vmem [shape: bf16[3,2048,16], index: 7, kind: input, shape index: {}]   ;;  %s13460_s8 = inlined_call_operand.vmem [shape: f32[3,8,16], index: 8, kind: input, shape index: {}]   ;;  %s13461_s9 = inlined_call_operand.vmem [shape: bf16[16,128], index: 9, kind: input, shape index: {}]   ;;  %s13462_s10 = inlined_call_operand.vmem [shape: f32[1,128], index: 10, kind: input, shape index: {}]   ;;  %s13463_s11 = inlined_call_operand.hbm [shape: f32[2,128], index: 11, kind: output, shape index: {}]  }
   0x1   :  { %v10748_v0 = vld [vmem:[%s13454_s2 + $0x18] sm:$0xff]   ;;  %10582 = vmatprep.subr.bf16.mxu0 %v11301_v1  ;;  %v10749_v2 = vld [vmem:[%s13454_s2 + $0x10] sm:$0xff]   ;;  %10590 = vmatprep.mubr.msk.bf16.mxu0 %vm11302_vm0, %v11301_v1  ;;  %v10750_v3 = vld [vmem:[%s13454_s2 + $0x8] sm:$0xff]   ;;  %vm234_vm2 = vcmask 130048  }
   0x2   :  { %10583 = vmatpush3.bf16.msra.mxu0 %v10748_v0  ;;  %v10751_v4 = vld [vmem:[%s13454_s2] sm:$0xff]   ;;  %v48_v6 = vld [vmem:[%s13452_s0 + $0x8] sm:$0xff]  ;;  %v10754_v10 = vld [vmem:[%s13455_s3 + $0x18] ss:$36 sps:$4 sm:$0xff]   ;;  %270 = vmatprep.mubr.bf16.mxu1 %v11303_v12 }
   0x3   :  { %10584 = vmatprep.subr.bf16.mxu0 %v11301_v1  ;;  %v47_v5 = vld [vmem:[%s13452_s0] sm:$0xff]  ;;  %v10760_v13 = vld [vmem:[%s13455_s3 + $0xc] ss:$36 sps:$4 sm:$0xff]   ;;  %v10763_v17 = vld [vmem:[%s13455_s3 + $0x14] ss:$36 sps:$4 sm:$0xff]  }
   0x4   :  { %v57_v7 = vpack.c.bf16 %v48_v6, %v47_v5  ;;  %v10752_v8 = vld [vmem:[%s13455_s3 + $0x4] ss:$36 sps:$4 sm:$0xff]   ;;  %v10756_v9 = vld [vmem:[%s13455_s3 + $0x1c] ss:$36 sps:$4 sm:$0xff]   ;;  %v10761_v21 = vld [vmem:[%s13455_s3 + $0x10] ss:$36 sps:$4 sm:$0xff]  }
   0x5   :  { %v10757_v11 = vld [vmem:[%s13455_s3] ss:$36 sps:$4 sm:$0xff]   ;;  %252 = vmatprep.subr.bf16.mxu1 %v10752_v8  ;;  %v10758_v16 = vld [vmem:[%s13455_s3 + $0x8] ss:$36 sps:$4 sm:$0xff]  }
   0x6   :  { %10585 = vmatpush3.bf16.msra.mxu0 %v10749_v2  ;;  %253 = vmatpush1.bf16.msra.mxu1 %v10757_v11  ;;  %v10764_v22 = vld [vmem:[%s13455_s3 + $0x20] ss:$36 sps:$4 sm:$0xff]  }
   0x7   :  { %10586 = vmatprep.subr.bf16.mxu0 %v11301_v1  ;;  %295 = vmatprep.subr.bf16.mxu1 %v10760_v13 }
   0xa   :  { %10587 = vmatpush3.bf16.msra.mxu0 %v10750_v3 }
   0xb   :  { %10588 = vmatprep.subr.bf16.mxu0 %v11301_v1 }
   0xe   :  { %10589 = vmatpush3.bf16.msra.mxu0 %v10751_v4 }
   0xf   :  { %381 = vmatprep.subr.bf16.mxu0 %v10756_v9 }
  0x11   :  { %10591 = vmatmul.mubr.msk.bf16.vlgmr.msra.gmra.mxu0 %vm82_vm1, %v57_v7 }
  0x12   :  { %382 = vmatpush1.bf16.msra.mxu0 %v10754_v10  ;;  %399 = vmatprep.mubr.bf16.mxu0 %v11303_v12 }
  0xd1   :  { %v11406_v14 = vpop.f32.mrf.mxu0 }
  0xd3   :  { %v10592_v15 = vpop.f32.mrf.mxu0 }
  0xd5   :  { %v11414_v18 = vpop.f32.mrf.mxu0 }
  0xd6   :  { %v138_v19 = vpack.c.bf16 %v11414_v18, %v11406_v14 }
  0xd7   :  { %v10593_v20 = vpop.f32.mrf.mxu0 }
  0xd8   :  { %8883 = vmatmul.mubr.msk.bf16.vlgmr.msra.gmra.mxu1 %vm234_vm2, %v138_v19  ;;  %8886 = vmatmul.mubr.msk.bf16.vlgmr.msra.gmra.mxu0 %vm234_vm2, %v138_v19 }
  0xd9   :  { %296 = vmatpush1.bf16.msra.mxu1 %v10758_v16  ;;  %313 = vmatprep.mubr.bf16.mxu1 %v11303_v12 }
  0xda   :  { %338 = vmatprep.subr.bf16.mxu1 %v10763_v17 }
  0xe0   :  { %8884 = vmatmul.mubr.msk.bf16.vlgmr.msra.gmra.mxu1 %vm234_vm2, %v138_v19 }
  0xe1   :  { %339 = vmatpush1.bf16.msra.mxu1 %v10761_v21  ;;  %356 = vmatprep.mubr.bf16.mxu1 %v11303_v12 }
  0xe2   :  { %10594 = vmatprep.subr.bf16.mxu1 %v11301_v1 }
  0xe8   :  { %8885 = vmatmul.mubr.msk.bf16.vlgmr.msra.gmra.mxu1 %vm234_vm2, %v138_v19 }
  0xe9   :  { %10595 = vmatpush3.bf16.msra.mxu1 %v10764_v22  ;;  %10596 = vmatprep.mubr.msk.bf16.mxu1 %vm11302_vm0, %v11301_v1 }
  0xf0   :  { %10597 = vmatmul.mubr.msk.bf16.vlgmr.msra.gmra.mxu1 %vm234_vm2, %v138_v19 }
  0xf1   :  { %16 = vsyncpa [#allocation3], 0  ;;  %v40_v23 = vlaneseq  ;;  %v11443_v26 = vld [vmem:[%s13456_s4] sm:$0xff]  ;;  %v8873_v58 = vld [vmem:[%s13456_s4 + $0x8] ss:$0 sm:$0xff]  ;;  %vm8800_vm4 = vcmask 1041409  }
  0xf2   :  { %v11494_v17 = vld [vmem:[%s13453_s1] sm:$0xff]  ;;  %v46_v21 = vld [vmem:[%s13453_s1 + $0x8] sm:$0xff]  ;;  %s11304_s19 = smov [#allocation2]  }
  0xf3   :  { %v11435_v24 = vshrl.u32 %v40_v23, 7  ;;  %s8859_s20 = sshll.u32 %s11304_s19, 4  ;;  %s8860_s20 = int_to_ptr.vmem [resolvable:$true] %s8859_s20 }
  0xf4   :  { %p11284_p1 = scmp.lt.s32.totalorder %s8860_s20, %s8860_s20 }
  0xf5   :  { %v11438_v25 = vsub.s32 0, %v11435_v24  ;;  %v11446_v27 = vsub.s32 1, %v11435_v24  ;;  %v11455_v37 = vsub.s32 3, %v11435_v24  ;;  %v11462_v44 = vsub.s32 6, %v11435_v24 }
  0xf6   :  { %v11465_v46 = vsub.s32 4, %v11435_v24  ;;  %v11474_v54 = vsub.s32 7, %v11435_v24  ;;  %v11484_v5 = vsub.s32 5, %v11435_v24 }
  0xf7   :  { %v146_v28 = vrot.slane %v11443_v26, %v11438_v25  ;;  %v150_v29 = vrot.slane %v11443_v26, %v11446_v27  ;;  %v158_v41 = vrot.slane %v11443_v26, %v11455_v37  ;;  %v170_v51 = vrot.slane %v11443_v26, %v11462_v44 }
  0xf8   :  { %v162_v52 = vrot.slane %v11443_v26, %v11465_v46  ;;  %v174_v0 = vrot.slane %v11443_v26, %v11474_v54  ;;  %v166_v11 = vrot.slane %v11443_v26, %v11484_v5 }
 0x198   :  { %v272_v30 = vpop.f32.mrf.mxu1  ;;  %v401_v38 = vpop.f32.mrf.mxu0 }
 0x199   :  { %v273_v31 = vadd.f32 %v272_v30, %v146_v28  ;;  %v402_v63 = vadd.f32 %v401_v38, %v170_v51 }
 0x19a   :  { %v274_v32 = vpop.f32.mrf.mxu1  ;;  %v403_v42 = vpop.f32.mrf.mxu0 }
 0x19b   :  { %v275_v33 = vadd.f32 %v274_v32, %v150_v29  ;;  %10604 = vmatprep.mubr.f32.mxu0 %v273_v31  ;;  %v404_v10 = vadd.f32 %v403_v42, %v174_v0 }
 0x19c   :  { %v276_v34 = vpop.f32.mrf.mxu1  ;;  %v405_v49 = vpop.f32.mrf.mxu0 }
 0x19d   :  { %10611 = vmatprep.mubr.f32.mxu1 %v275_v33  ;;  %v406_v55 = vadd.f32 %v405_v49, %v170_v51  ;;  %v277_v59 = vadd.f32 %v276_v34, %v146_v28 }
 0x19e   :  { %v278_v35 = vpop.f32.mrf.mxu1  ;;  %v407_v61 = vpop.f32.mrf.mxu0 }
 0x19f   :  { %v408_v4 = vadd.f32 %v407_v61, %v174_v0  ;;  %v279_v7 = vadd.f32 %v278_v35, %v150_v29 }
 0x1a0   :  { %v11452_v36 = vpop.f32.mrf.mxu1 }
 0x1a2   :  { %v317_v39 = vpop.f32.mrf.mxu1 }
 0x1a3   :  { %v318_v48 = vadd.f32 %v317_v39, %v158_v41 }
 0x1a4   :  { %v11457_v40 = vpop.f32.mrf.mxu1 }
 0x1a6   :  { %v321_v43 = vpop.f32.mrf.mxu1 }
 0x1a7   :  { %v322_v45 = vadd.f32 %v321_v43, %v158_v41 }
 0x1a8   :  { %v358_v47 = vpop.f32.mrf.mxu1 }
 0x1a9   :  { %10600 = vmatprep.subr.mxu0 %v322_v45  ;;  %v359_v60 = vadd.f32 %v358_v47, %v162_v52 }
 0x1aa   :  { %v11467_v50 = vpop.f32.mrf.mxu1  ;;  %10601 = vmatpush3.xpose.msra.mxu0 %v322_v45 }
 0x1ab   :  { %10602 = vmatprep.subr.mxu0 %v318_v48  ;;  %v361_v61 = vadd.f32 %v11467_v50, %v166_v11 }
 0x1ac   :  { %v362_v53 = vpop.f32.mrf.mxu1 }
 0x1ad   :  { %v363_v56 = vadd.f32 %v362_v53, %v162_v52  ;;  %v11508_v53 = vsub.s32 2, %v11435_v24 }
 0x1ae   :  { %v364_v57 = vpop.f32.mrf.mxu1  ;;  %10603 = vmatpush3.xpose.msra.mxu0 %v318_v48 }
 0x1af   :  { %10607 = vmatprep.subr.mxu1 %v363_v56  ;;  %10621 = vmatprep.subr.mxu0 %v406_v55  ;;  %v365_v13 = vadd.f32 %v364_v57, %v166_v11  ;;  %v154_v57 = vrot.slane %v11443_v26, %v11508_v53 }
 0x1b0   :  { %v444_v62 = vpop.f32.mrf.mxu1  ;;  %10608 = vmatpush3.xpose.msra.mxu1 %v363_v56 }
 0x1b1   :  { %v11481_v2 = vadd.f32 %v8873_v58, %v444_v62  ;;  %10605 = vmatmul.mubr.f32.vlgmr.msra.gmra.mxu0 %v277_v59  ;;  %10609 = vmatprep.subr.mxu1 %v359_v60  ;;  %v320_v24 = vadd.f32 %v11457_v40, %v154_v57 }
 0x1b2   :  { %v10598_v3 = vpop.f32.mrf.mxu1  ;;  %10622 = vmatpush3.msra.mxu0 %v406_v55 }
 0x1b3   :  { %10623 = vmatprep.subr.mxu0 %v402_v63 }
 0x1b4   :  { %v447_v6 = vpop.f32.mrf.mxu1  ;;  %10610 = vmatpush3.xpose.msra.mxu1 %v359_v60  ;;  %10624 = vmatpush3.msra.mxu0 %v402_v63  ;;  %v316_v60 = vadd.f32 %v11452_v36, %v154_v57 }
 0x1b5   :  { %v11486_v8 = vadd.f32 %v8873_v58, %v447_v6  ;;  %10614 = vmatprep.subr.mxu1 %v408_v4 }
 0x1b6   :  { %v10599_v9 = vpop.f32.mrf.mxu1 }
 0x1b7   :  { %10612 = vmatmul.mubr.f32.vlgmr.msra.gmra.mxu1 %v279_v7  ;;  %10635 = vmatprep.subr.mxu0 %v11486_v8 }
 0x1b8   :  { %10615 = vmatpush3.msra.mxu1 %v408_v4 }
 0x1b9   :  { %10616 = vmatprep.subr.mxu1 %v404_v10 }
 0x1ba   :  { %10617 = vmatpush3.msra.mxu1 %v404_v10 }
 0x1bb   :  { %10628 = vmatprep.subr.mxu1 %v365_v13 }
 0x271   :  { %v10606_v16 = vpop.f32.mrf.mxu0 }
 0x272   :  { %v523_v47 = vadd.f32 %v10606_v16, %v46_v21 }
 0x273   :  { %v517_v29 = vpop.f32.mrf.mxu0 }
 0x274   :  { %v518_v30 = vadd.f32 %v517_v29, %v11494_v17  ;;  %v529_v49 = vsel %vm234_vm2, %v523_v47, -inf }
 0x276   :  { %v526_v32 = vsel %vm234_vm2, %v518_v30, -inf }
 0x277   :  { %v10613_v15 = vpop.f32.mrf.mxu1 }
 0x278   :  { %v620_v22 = vadd.f32 %v10613_v15, %v46_v21 }
 0x279   :  { %v614_v19 = vpop.f32.mrf.mxu1 }
 0x27a   :  { %v615_v20 = vadd.f32 %v614_v19, %v11494_v17  ;;  %v626_v31 = vsel %vm234_vm2, %v620_v22, -inf }
 0x27c   :  { %v623_v28 = vsel %vm234_vm2, %v615_v20, -inf }
 0x27d   :  { %624 = vmax.xlane.f32.xlu0 %v623_v28 }
 0x281   :  { %627 = vmax.xlane.f32.xlu0 %v626_v31 }
 0x285   :  { %527 = vmax.xlane.f32.xlu0 %v526_v32 }
 0x306   :  { %v625_v33 = vpop.xlane.xlu0 %624 }
 0x307   :  { %v629_v34 = vsub.f32 %v615_v20, %v625_v33 }
 0x309   :  { %v631_v35 = vmul.f32 1.442695, %v629_v34 }
 0x30a   :  { %v628_v38 = vpop.xlane.xlu0 %627 }
 0x30b   :  { %11176 = vpow2.f32 %v631_v35  ;;  %v630_v39 = vsub.f32 %v620_v22, %v628_v38 }
 0x30d   :  { %v633_v41 = vmul.f32 1.442695, %v630_v39 }
 0x30e   :  { %v528_v62 = vpop.xlane.xlu0 %527 }
 0x30f   :  { %11178 = vpow2.f32 %v633_v41  ;;  %v532_v0 = vsub.f32 %v518_v30, %v528_v62 }
 0x311   :  { %v534_v4 = vmul.f32 1.442695, %v532_v0 }
 0x318   :  { %v11177_v42 = vpop.eup %11176 }
 0x319   :  { %v635_v43 = vsel %vm234_vm2, %v11177_v42, 0.0 }
 0x31a   :  { %636 = vadd.xlane.f32.xlu1 %v635_v43 }
 0x31c   :  { %v11179_v45 = vpop.eup %11178 }
 0x31d   :  { %v638_v48 = vsel %vm234_vm2, %v11179_v45, 0.0 }
 0x31e   :  { %639 = vadd.xlane.f32.xlu1 %v638_v48 }
 0x322   :  { %530 = vmax.xlane.f32.xlu1 %v529_v49 }
 0x3a3   :  { %v637_v51 = vpop.xlane.xlu1 %636 }
 0x3a4   :  { %11180 = vrcp.f32 %v637_v51 }
 0x3a7   :  { %v640_v52 = vpop.xlane.xlu1 %639 }
 0x3a8   :  { %11182 = vrcp.f32 %v640_v52 }
 0x3ab   :  { %v531_v26 = vpop.xlane.xlu1 %530 }
 0x3ac   :  { %v533_v63 = vsub.f32 %v523_v47, %v531_v26 }
 0x3ae   :  { %v536_v3 = vmul.f32 1.442695, %v533_v63 }
 0x3b0   :  { %11184 = vpow2.f32 %v536_v3 }
 0x3b1   :  { %v11181_v55 = vpop.eup %11180  ;;  %11186 = vpow2.f32 %v534_v4  ;;  %v41_v4 = vand.u32 127, %v40_v23 }
 0x3b2   :  { %v643_v56 = vmul.f32 %v11181_v55, %v11177_v42 }
 0x3b3   :  { %vm42_vm3 = vcmp.lt.s32.totalorder %v41_v4, 9  ;;  %v1049_v4 = vld [vmem:[%s13457_s5 + $0x70] sm:$0xff] }
 0x3b4   :  { %10618 = vmatprep.mubr.msk.f32.mxu1 %vm234_vm2, %v643_v56 }
 0x3b5   :  { %v11183_v58 = vpop.eup %11182 }
 0x3b6   :  { %v644_v59 = vmul.f32 %v11183_v58, %v11179_v45 }
 0x3b8   :  { %10619 = vmatmul.mubr.msk.f32.vlgmr.msra.gmra.mxu1 %vm234_vm2, %v644_v59 }
 0x3b9   :  { %10629 = vmatpush3.xpose.msra.mxu1 %v365_v13  ;;  %10632 = vmatprep.mubr.f32.mxu1 %v316_v60 }
 0x3ba   :  { %10630 = vmatprep.subr.mxu1 %v361_v61 }
 0x3bd   :  { %10631 = vmatpush3.xpose.msra.mxu1 %v361_v61  ;;  %v11185_v11 = vpop.eup %11184 }
 0x3be   :  { %v11187_v15 = vpop.eup %11186  ;;  %v541_v16 = vsel %vm234_vm2, %v11185_v11, 0.0 }
 0x3bf   :  { %v538_v19 = vsel %vm234_vm2, %v11187_v15, 0.0 }
 0x3c0   :  { %10633 = vmatmul.mubr.f32.vlgmr.msra.gmra.mxu1 %v320_v24 }
 0x3c1   :  { %1294 = vmatprep.mubr.bf16.mxu1 %v11303_v12 }
 0x478   :  { %v10620_v36 = vpop.f32.mrf.mxu1 }
 0x47a   :  { %v717_v50 = vpop.f32.mrf.mxu1 }
 0x480   :  { %v10634_v6 = vpop.f32.mrf.mxu1 }
 0x481   :  { %v879_v7 = vadd.f32 %v10634_v6, %v46_v21 }
 0x482   :  { %v873_v9 = vpop.f32.mrf.mxu1 }
 0x483   :  { %v874_v10 = vadd.f32 %v873_v9, %v11494_v17  ;;  %v885_v40 = vsel %vm234_vm2, %v879_v7, -inf }
 0x484   :  { %886 = vmax.xlane.f32.xlu1 %v885_v40 }
 0x485   :  { %v882_v13 = vsel %vm234_vm2, %v874_v10, -inf }
 0x486   :  { %883 = vmax.xlane.f32.xlu0 %v882_v13 }
 0x488   :  { %542 = vadd.xlane.f32.xlu1 %v541_v16  ;;  %v1035_v16 = vld [vmem:[%s13457_s5] sm:$0xff] }
 0x48a   :  { %539 = vadd.xlane.f32.xlu0 %v538_v19  ;;  %v1043_v19 = vld [vmem:[%s13457_s5 + $0x40] sm:$0xff] }
 0x50d   :  { %v887_v20 = vpop.xlane.xlu1 %886 }
 0x50e   :  { %v889_v22 = vsub.f32 %v879_v7, %v887_v20  ;;  %v11546_v7 = vsel %vm42_vm3, 1.0, %v11301_v1  ;;  %v1036_v20 = vld [vmem:[%s13457_s5 + $0x8] sm:$0xff] }
 0x50f   :  { %v884_v21 = vpop.xlane.xlu0 %883 }
 0x510   :  { %v892_v28 = vmul.f32 1.442695, %v889_v22  ;;  %v888_v29 = vsub.f32 %v874_v10, %v884_v21  ;;  %v8895_v22 = vcombine.high %v1035_v16, %v1043_v19  ;;  %v1044_v21 = vld [vmem:[%s13457_s5 + $0x48] sm:$0xff] }
 0x511   :  { %v543_v17 = vpop.xlane.xlu1 %542 }
 0x512   :  { %11188 = vpow2.f32 %v892_v28  ;;  %v890_v30 = vmul.f32 1.442695, %v888_v29  ;;  %v8894_v28 = vcombine.low %v1035_v16, %v1043_v19  ;;  %v8896_v29 = vcombine.low %v1036_v20, %v1044_v21  ;;  %v10769_v16 = vld [vmem:[%s13459_s7 + $0x70] sm:$0xff]  }
 0x513   :  { %11190 = vrcp.f32 %v543_v17  ;;  %v540_v31 = vpop.xlane.xlu0 %539  ;;  %v8897_v17 = vcombine.high %v1036_v20, %v1044_v21  ;;  %v10770_v19 = vld [vmem:[%s13459_s7 + $0xf0] sm:$0xff]   ;;  %v10773_v21 = vld [vmem:[%s13459_s7 + $0x68] sm:$0xff]  }
 0x514   :  { %11192 = vpow2.f32 %v890_v30  ;;  %v1037_v30 = vld [vmem:[%s13457_s5 + $0x10] sm:$0xff] }
 0x515   :  { %11194 = vrcp.f32 %v540_v31  ;;  %1276 = vmatprep.subr.bf16.mxu1 %v8897_v17  ;;  %v1045_v31 = vld [vmem:[%s13457_s5 + $0x50] sm:$0xff]  ;;  %v10776_v17 = vld [vmem:[%s13459_s7 + $0xa8] sm:$0xff]  }
 0x516   :  { %1277 = vmatpush1.bf16.msra.mxu1 %v8896_v29  ;;  %v10771_v20 = vld [vmem:[%s13459_s7 + $0x30] sm:$0xff]   ;;  %v10775_v29 = vld [vmem:[%s13459_s7 + $0x28] sm:$0xff]  }
 0x51f   :  { %v11189_v32 = vpop.eup %11188 }
 0x520   :  { %v11191_v33 = vpop.eup %11190  ;;  %v897_v34 = vsel %vm234_vm2, %v11189_v32, 0.0 }
 0x521   :  { %v11193_v35 = vpop.eup %11192  ;;  %898 = vadd.xlane.f32.xlu1 %v897_v34  ;;  %v547_v42 = vmul.f32 %v11191_v33, %v11185_v11  ;;  %v8898_v33 = vcombine.low %v1037_v30, %v1045_v31  ;;  %v8899_v34 = vcombine.high %v1037_v30, %v1045_v31  ;;  %v10777_v30 = vld [vmem:[%s13459_s7 + $0x60] sm:$0xff]  }
 0x522   :  { %v11195_v38 = vpop.eup %11194  ;;  %v894_v39 = vsel %vm234_vm2, %v11193_v35, 0.0  ;;  %v10778_v31 = vld [vmem:[%s13459_s7 + $0xe0] sm:$0xff]  }
 0x523   :  { %895 = vadd.xlane.f32.xlu0 %v894_v39  ;;  %v546_v41 = vmul.f32 %v11195_v38, %v11187_v15 }
 0x525   :  { %10625 = vmatprep.mubr.msk.f32.mxu0 %vm234_vm2, %v546_v41 }
 0x526   :  { %10626 = vmatmul.mubr.msk.f32.vlgmr.msra.gmra.mxu0 %vm234_vm2, %v547_v42 }
 0x527   :  { %10636 = vmatpush3.msra.mxu0 %v11486_v8  ;;  %v11536_v8 = vld [vmem:[%s13460_s8] sm:$0xff] }
 0x528   :  { %10637 = vmatprep.subr.mxu0 %v11481_v2  ;;  %v990_v56 = vrot.slane %v11536_v8, %v11438_v25 }
 0x529   :  { %10638 = vmatpush3.msra.mxu0 %v11481_v2 }
 0x52a   :  { %1233 = vmatprep.subr.bf16.mxu0 %v8895_v22  ;;  %v10772_v22 = vld [vmem:[%s13459_s7 + $0xb0] sm:$0xff]  }
 0x5aa   :  { %v899_v43 = vpop.xlane.xlu1 %898 }
 0x5ab   :  { %11196 = vrcp.f32 %v899_v43 }
 0x5ac   :  { %v896_v45 = vpop.xlane.xlu0 %895 }
 0x5ad   :  { %11198 = vrcp.f32 %v896_v45 }
 0x5b8   :  { %v11197_v47 = vpop.eup %11196 }
 0x5b9   :  { %v903_v51 = vmul.f32 %v11197_v47, %v11189_v32  ;;  %v1038_v32 = vld [vmem:[%s13457_s5 + $0x18] sm:$0xff] }
 0x5ba   :  { %v11199_v48 = vpop.eup %11198 }
 0x5bb   :  { %v902_v49 = vmul.f32 %v11199_v48, %v11193_v35  ;;  %v1046_v35 = vld [vmem:[%s13457_s5 + $0x58] sm:$0xff] }
 0x5bc   :  { %v8900_v38 = vcombine.low %v1038_v32, %v1046_v35  ;;  %v8901_v39 = vcombine.high %v1038_v32, %v1046_v35  ;;  %v10779_v32 = vld [vmem:[%s13459_s7 + $0x20] sm:$0xff]   ;;  %v10782_v35 = vld [vmem:[%s13459_s7 + $0xd8] sm:$0xff]  }
 0x5bd   :  { %10639 = vmatprep.mubr.msk.f32.mxu0 %vm234_vm2, %v902_v49  ;;  %v1026_v49 = vrot.slane %v11536_v8, %v11446_v27 }
 0x5be   :  { %10640 = vmatmul.mubr.msk.f32.vlgmr.msra.gmra.mxu0 %vm234_vm2, %v903_v51  ;;  %1362 = vmatprep.subr.bf16.mxu1 %v8901_v39  ;;  %v10784_v39 = vld [vmem:[%s13459_s7 + $0x98] sm:$0xff]  }
 0x5bf   :  { %1251 = vmatprep.mubr.bf16.mxu0 %v11303_v12  ;;  %1234 = vmatpush1.bf16.msra.mxu0 %v8894_v28  ;;  %v10774_v28 = vld [vmem:[%s13459_s7 + $0xe8] sm:$0xff]  }
 0x5c0   :  { %1319 = vmatprep.subr.bf16.mxu0 %v8899_v34  ;;  %v10781_v34 = vld [vmem:[%s13459_s7 + $0x58] sm:$0xff]  }
 0x5e6   :  { %v10627_v52 = vpop.f32.mrf.mxu0 }
 0x5e7   :  { %v804_v55 = vadd.f32 %v10627_v52, %v10620_v36 }
 0x5e8   :  { %v798_v2 = vpop.f32.mrf.mxu0 }
 0x5e9   :  { %v799_v58 = vadd.f32 %v798_v2, %v717_v50 }
 0x67e   :  { %v10641_v57 = vpop.f32.mrf.mxu0 }
 0x67f   :  { %v986_v59 = vadd.f32 %v10641_v57, %v804_v55  ;;  %v1032_v55 = vrot.slane %v11536_v8, %v11508_v53  ;;  %v1048_v8 = vld [vmem:[%s13457_s5 + $0x68] sm:$0xff] }
 0x680   :  { %v976_v60 = vpop.f32.mrf.mxu0 }
 0x681   :  { %v992_v61 = vadd.f32 %v990_v56, %v986_v59  ;;  %v985_v24 = vadd.f32 %v976_v60, %v799_v58  ;;  %v1039_v59 = vld [vmem:[%s13457_s5 + $0x20] sm:$0xff] }
 0x683   :  { %v991_v26 = vadd.f32 %v990_v56, %v985_v24  ;;  %v994_v62 = vadd.f32 %v992_v61, %v11414_v18  ;;  %v1047_v24 = vld [vmem:[%s13457_s5 + $0x60] sm:$0xff] }
 0x685   :  { %v998_v63 = vsel %vm234_vm2, %v994_v62, 0.0  ;;  %v993_v0 = vadd.f32 %v991_v26, %v11406_v14  ;;  %v1040_v26 = vld [vmem:[%s13457_s5 + $0x28] sm:$0xff] }
 0x686   :  { %999 = vadd.xlane.f32.xlu1 %v998_v63  ;;  %v8903_v63 = vcombine.high %v1039_v59, %v1047_v24 }
 0x687   :  { %v995_v3 = vsel %vm234_vm2, %v993_v0, 0.0 }
 0x688   :  { %996 = vadd.xlane.f32.xlu0 %v995_v3  ;;  %v1041_v3 = vld [vmem:[%s13457_s5 + $0x30] sm:$0xff] }
 0x70f   :  { %v1000_v36 = vpop.xlane.xlu1 %999 }
 0x710   :  { %v1002_v50 = vmul.f32 0.11111111, %v1000_v36  ;;  %v1042_v36 = vld [vmem:[%s13457_s5 + $0x38] sm:$0xff] }
 0x711   :  { %v997_v6 = vpop.xlane.xlu0 %996 }
 0x712   :  { %v1004_v9 = vsub.f32 %v994_v62, %v1002_v50  ;;  %v1001_v10 = vmul.f32 0.11111111, %v997_v6  ;;  %v1050_v50 = vld [vmem:[%s13457_s5 + $0x78] sm:$0xff]  ;;  %v8902_v6 = vcombine.low %v1039_v59, %v1047_v24  ;;  %v11729_v59 = vld [vmem:[%s13458_s6] sm:$0xff] }
 0x714   :  { %v1003_v18 = vsub.f32 %v993_v0, %v1001_v10  ;;  %v1006_v40 = vmul.f32 %v11546_v7, %v1004_v9  ;;  %v8905_v0 = vcombine.high %v1040_v26, %v1048_v8  ;;  %v8904_v9 = vcombine.low %v1040_v26, %v1048_v8 }
 0x715   :  { %v8907_v10 = vcombine.high %v1041_v3, %v1049_v4  ;;  %v1063_v8 = vrot.slane %v11729_v59, %v11446_v27 }
 0x716   :  { %v1008_v11 = vmul.f32 %v1006_v40, %v1006_v40  ;;  %v1005_v14 = vmul.f32 %v11546_v7, %v1003_v18  ;;  %v8909_v18 = vcombine.high %v1042_v36, %v1050_v50 }
 0x718   :  { %v1012_v13 = vsel %vm234_vm2, %v1008_v11, 0.0  ;;  %v1007_v15 = vmul.f32 %v1005_v14, %v1005_v14  ;;  %v8908_v11 = vcombine.low %v1042_v36, %v1050_v50 }
 0x719   :  { %1013 = vadd.xlane.f32.xlu1 %v1012_v13  ;;  %v10766_v13 = vld [vmem:[%s13459_s7 + $0xf8] sm:$0xff]  }
 0x71a   :  { %v1009_v23 = vsel %vm234_vm2, %v1007_v15, 0.0  ;;  %v10767_v15 = vld [vmem:[%s13459_s7 + $0x38] sm:$0xff]  }
 0x71b   :  { %1010 = vadd.xlane.f32.xlu0 %v1009_v23  ;;  %v10768_v23 = vld [vmem:[%s13459_s7 + $0xb8] sm:$0xff]  }
 0x7a2   :  { %v1014_v41 = vpop.xlane.xlu1 %1013 }
 0x7a3   :  { %v1016_v42 = vmul.f32 0.11111111, %v1014_v41  ;;  %v10785_v41 = vld [vmem:[%s13459_s7 + $0x50] sm:$0xff]  }
 0x7a4   :  { %v1011_v43 = vpop.xlane.xlu0 %1010 }
 0x7a5   :  { %v1018_v45 = vadd.f32 1e-05, %v1016_v42  ;;  %v1015_v47 = vmul.f32 0.11111111, %v1011_v43  ;;  %v10786_v42 = vld [vmem:[%s13459_s7 + $0xd0] sm:$0xff]  }
 0x7a6   :  { %v10787_v43 = vld [vmem:[%s13459_s7 + $0x10] sm:$0xff]  }
 0x7a7   :  { %11200 = vrsqrt.f32 %v1018_v45  ;;  %v1017_v48 = vadd.f32 1e-05, %v1015_v47  ;;  %v10788_v45 = vld [vmem:[%s13459_s7 + $0x90] sm:$0xff]   ;;  %v10789_v47 = vld [vmem:[%s13459_s7 + $0x48] sm:$0xff]  }
 0x7a9   :  { %11202 = vrsqrt.f32 %v1017_v48  ;;  %v10790_v48 = vld [vmem:[%s13459_s7 + $0xc8] sm:$0xff]  }
 0x7b4   :  { %v11201_v51 = vpop.eup %11200 }
 0x7b5   :  { %v1022_v52 = vmul.f32 %v11201_v51, %v1006_v40  ;;  %v8906_v40 = vcombine.low %v1041_v3, %v1049_v4  ;;  %v10792_v51 = vld [vmem:[%s13459_s7 + $0x88] sm:$0xff]  }
 0x7b6   :  { %v11203_v2 = vpop.eup %11202 }
 0x7b7   :  { %v1028_v56 = vmul.f32 %v1026_v49, %v1022_v52  ;;  %v1021_v57 = vmul.f32 %v11203_v2, %v1005_v14  ;;  %v10765_v14 = vld [vmem:[%s13459_s7 + $0x78] sm:$0xff]   ;;  %v10793_v52 = vld [vmem:[%s13459_s7 + $0x40] sm:$0xff]  }
 0x7b8   :  { %v10794_v2 = vld [vmem:[%s13459_s7 + $0xc0] sm:$0xff]  }
 0x7b9   :  { %v1027_v58 = vmul.f32 %v1026_v49, %v1021_v57  ;;  %v11583_v60 = vadd.f32 %v1032_v55, %v1028_v56  ;;  %v10791_v49 = vld [vmem:[%s13459_s7 + $0x8] sm:$0xff]   ;;  %v10796_v56 = vld [vmem:[%s13459_s7 + $0x80] sm:$0xff]   ;;  %v10797_v57 = vld [vmem:[%s13459_s7 + $0x178] sm:$0xff]  }
 0x7bb   :  { %v11585_v61 = vadd.f32 %v1032_v55, %v1027_v58  ;;  %v10795_v55 = vld [vmem:[%s13459_s7] sm:$0xff]   ;;  %v10798_v58 = vld [vmem:[%s13459_s7 + $0x1f8] sm:$0xff]  }
 0x7bd   :  { %v1051_v62 = vpack.c.bf16 %v11583_v60, %v11585_v61 }
 0x7bf   :  { %8910 = vmatmul.mubr.msk.bf16.vlgmr.msra.gmra.mxu0 %vm234_vm2, %v1051_v62  ;;  %8911 = vmatmul.mubr.msk.bf16.vlgmr.msra.gmra.mxu1 %vm234_vm2, %v1051_v62 }
 0x7c0   :  { %1320 = vmatpush1.bf16.msra.mxu0 %v8898_v33  ;;  %1363 = vmatpush1.bf16.msra.mxu1 %v8900_v38  ;;  %v10780_v33 = vld [vmem:[%s13459_s7 + $0xa0] sm:$0xff]   ;;  %v10783_v38 = vld [vmem:[%s13459_s7 + $0x18] sm:$0xff]  }
 0x7c1   :  { %1337 = vmatprep.mubr.bf16.mxu0 %v11303_v12  ;;  %1380 = vmatprep.mubr.bf16.mxu1 %v11303_v12 }
 0x7c2   :  { %1405 = vmatprep.subr.bf16.mxu0 %v8903_v63  ;;  %1448 = vmatprep.subr.bf16.mxu1 %v8905_v0  ;;  %v1059_v63 = vrot.slane %v11729_v59, %v11438_v25  ;;  %v1067_v0 = vrot.slane %v11729_v59, %v11508_v53 }
 0x7c7   :  { %8912 = vmatmul.mubr.msk.bf16.vlgmr.msra.gmra.mxu0 %vm234_vm2, %v1051_v62  ;;  %8913 = vmatmul.mubr.msk.bf16.vlgmr.msra.gmra.mxu1 %vm234_vm2, %v1051_v62 }
 0x7c8   :  { %1406 = vmatpush1.bf16.msra.mxu0 %v8902_v6  ;;  %1449 = vmatpush1.bf16.msra.mxu1 %v8904_v9 }
 0x7c9   :  { %1423 = vmatprep.mubr.bf16.mxu0 %v11303_v12  ;;  %1466 = vmatprep.mubr.bf16.mxu1 %v11303_v12 }
 0x7ca   :  { %1491 = vmatprep.subr.bf16.mxu0 %v8907_v10  ;;  %1534 = vmatprep.subr.bf16.mxu1 %v8909_v18 }
 0x7cf   :  { %8914 = vmatmul.mubr.msk.bf16.vlgmr.msra.gmra.mxu0 %vm234_vm2, %v1051_v62  ;;  %8915 = vmatmul.mubr.msk.bf16.vlgmr.msra.gmra.mxu1 %vm234_vm2, %v1051_v62 }
 0x7d0   :  { %1492 = vmatpush1.bf16.msra.mxu0 %v8906_v40  ;;  %1535 = vmatpush1.bf16.msra.mxu1 %v8908_v11 }
 0x7d1   :  { %1509 = vmatprep.mubr.bf16.mxu0 %v11303_v12  ;;  %1552 = vmatprep.mubr.bf16.mxu1 %v11303_v12 }
 0x7d2   :  { %10000 = vmatprep.subr.bf16.mxu0 %v10765_v14  ;;  %10022 = vmatprep.subr.bf16.mxu1 %v10766_v13 }
 0x7d7   :  { %8916 = vmatmul.mubr.msk.bf16.vlgmr.msra.gmra.mxu0 %vm234_vm2, %v1051_v62  ;;  %8917 = vmatmul.mubr.msk.bf16.vlgmr.msra.gmra.mxu1 %vm234_vm2, %v1051_v62  ;;  %v1071_v62 = vrot.slane %v11729_v59, %v11455_v37 }
 0x7d8   :  { %10001 = vmatpush3.bf16.msra.mxu0 %v10767_v15  ;;  %10023 = vmatpush3.bf16.msra.mxu1 %v10768_v23 }
 0x7d9   :  { %10002 = vmatprep.subr.bf16.mxu0 %v10769_v16  ;;  %10024 = vmatprep.subr.bf16.mxu1 %v10770_v19 }
 0x7dc   :  { %10003 = vmatpush3.bf16.msra.mxu0 %v10771_v20  ;;  %10025 = vmatpush3.bf16.msra.mxu1 %v10772_v22 }
 0x7dd   :  { %10004 = vmatprep.subr.bf16.mxu0 %v10773_v21  ;;  %10026 = vmatprep.subr.bf16.mxu1 %v10774_v28  ;;  %v1079_v21 = vrot.slane %v11729_v59, %v11484_v5 }
 0x7e0   :  { %10005 = vmatpush3.bf16.msra.mxu0 %v10775_v29  ;;  %10027 = vmatpush3.bf16.msra.mxu1 %v10776_v17 }
 0x7e1   :  { %10006 = vmatprep.subr.bf16.mxu0 %v10777_v30  ;;  %10028 = vmatprep.subr.bf16.mxu1 %v10778_v31 }
 0x7e4   :  { %10007 = vmatpush3.bf16.msra.mxu0 %v10779_v32  ;;  %10029 = vmatpush3.bf16.msra.mxu1 %v10780_v33 }
 0x7e5   :  { %10008 = vmatprep.subr.bf16.mxu0 %v10781_v34  ;;  %10030 = vmatprep.subr.bf16.mxu1 %v10782_v35  ;;  %v1087_v34 = vrot.slane %v11729_v59, %v11474_v54 }
 0x7e8   :  { %10009 = vmatpush3.bf16.msra.mxu0 %v10783_v38  ;;  %10031 = vmatpush3.bf16.msra.mxu1 %v10784_v39 }
 0x7e9   :  { %10010 = vmatprep.subr.bf16.mxu0 %v10785_v41  ;;  %10032 = vmatprep.subr.bf16.mxu1 %v10786_v42  ;;  %v10799_v41 = vld [vmem:[%s13459_s7 + $0x138] sm:$0xff]  }
 0x7ea   :  { %v10800_v42 = vld [vmem:[%s13459_s7 + $0x1b8] sm:$0xff]  }
 0x7ec   :  { %10011 = vmatpush3.bf16.msra.mxu0 %v10787_v43  ;;  %10033 = vmatpush3.bf16.msra.mxu1 %v10788_v45 }
 0x7ed   :  { %10012 = vmatprep.subr.bf16.mxu0 %v10789_v47  ;;  %10034 = vmatprep.subr.bf16.mxu1 %v10790_v48 }
 0x7f0   :  { %10013 = vmatpush3.bf16.msra.mxu0 %v10791_v49  ;;  %10035 = vmatpush3.bf16.msra.mxu1 %v10792_v51  ;;  %v10801_v49 = vld [vmem:[%s13459_s7 + $0x170] sm:$0xff]  }
 0x7f1   :  { %10014 = vmatprep.subr.bf16.mxu0 %v10793_v52  ;;  %10036 = vmatprep.subr.bf16.mxu1 %v10794_v2  ;;  %v10802_v51 = vld [vmem:[%s13459_s7 + $0x1f0] sm:$0xff]  }
 0x7f4   :  { %10015 = vmatpush3.bf16.msra.mxu0 %v10795_v55  ;;  %10037 = vmatpush3.bf16.msra.mxu1 %v10796_v56 }
 0x7f5   :  { %10044 = vmatprep.subr.bf16.mxu0 %v10797_v57  ;;  %10066 = vmatprep.subr.bf16.mxu1 %v10798_v58 }
 0x87f   :  { %v1253_v24 = vpop.f32.mrf.mxu0  ;;  %v1296_v26 = vpop.f32.mrf.mxu1 }
 0x880   :  { %v1254_v40 = vadd.f32 %v1253_v24, %v1059_v63  ;;  %v1297_v11 = vadd.f32 %v1296_v26, %v1067_v0  ;;  %v10803_v24 = vld [vmem:[%s13459_s7 + $0x130] sm:$0xff]  }
 0x881   :  { %v1255_v3 = vpop.f32.mrf.mxu0  ;;  %v1298_v4 = vpop.f32.mrf.mxu1  ;;  %v10804_v26 = vld [vmem:[%s13459_s7 + $0x1b0] sm:$0xff]  }
 0x882   :  { %v1256_v6 = vadd.f32 %v1255_v3, %v1063_v8  ;;  %v1299_v9 = vadd.f32 %v1298_v4, %v1071_v62  ;;  %v1563_v31 = vmax.f32 %v1254_v40, 0.0  ;;  %v1565_v32 = vmax.f32 %v1297_v11, 0.0 }
 0x883   :  { %v1257_v36 = vpop.f32.mrf.mxu0  ;;  %v1300_v50 = vpop.f32.mrf.mxu1 }
 0x884   :  { %v1258_v10 = vadd.f32 %v1257_v36, %v1059_v63  ;;  %v1301_v18 = vadd.f32 %v1300_v50, %v1067_v0  ;;  %v1564_v28 = vmax.f32 %v1256_v6, 0.0  ;;  %v1566_v29 = vmax.f32 %v1299_v9, 0.0  ;;  %v10807_v50 = vld [vmem:[%s13459_s7 + $0x128] sm:$0xff]  }
 0x885   :  { %v1259_v14 = vpop.f32.mrf.mxu0  ;;  %v1302_v13 = vpop.f32.mrf.mxu1  ;;  %v10808_v6 = vld [vmem:[%s13459_s7 + $0x1a8] sm:$0xff]  }
 0x886   :  { %v1260_v15 = vadd.f32 %v1259_v14, %v1063_v8  ;;  %v1303_v23 = vadd.f32 %v1302_v13, %v1071_v62  ;;  %v1579_v16 = vmax.f32 %v1258_v10, 0.0  ;;  %v1581_v19 = vmax.f32 %v1301_v18, 0.0  ;;  %v10805_v8 = vld [vmem:[%s13459_s7 + $0x168] sm:$0xff]   ;;  %v10809_v10 = vld [vmem:[%s13459_s7 + $0x160] sm:$0xff]  }
 0x887   :  { %v11739_v20 = vpop.f32.mrf.mxu0  ;;  %v11741_v22 = vpop.f32.mrf.mxu1  ;;  %v10806_v62 = vld [vmem:[%s13459_s7 + $0x1e8] sm:$0xff]   ;;  %v10810_v18 = vld [vmem:[%s13459_s7 + $0x1e0] sm:$0xff]  }
 0x888   :  { %v1580_v17 = vmax.f32 %v1260_v15, 0.0  ;;  %v1582_v30 = vmax.f32 %v1303_v23, 0.0  ;;  %v1851_v43 = vpack.c.bf16 %v1579_v16, %v1563_v31  ;;  %v1853_v45 = vpack.c.bf16 %v1581_v19, %v1565_v32  ;;  %v10811_v14 = vld [vmem:[%s13459_s7 + $0x120] sm:$0xff]   ;;  %v10813_v15 = vld [vmem:[%s13459_s7 + $0x158] sm:$0xff]   ;;  %v10819_v32 = vld [vmem:[%s13459_s7 + $0x110] sm:$0xff]  }
 0x889   :  { %v1341_v33 = vpop.f32.mrf.mxu0  ;;  %v1384_v35 = vpop.f32.mrf.mxu1  ;;  %v10812_v13 = vld [vmem:[%s13459_s7 + $0x1a0] sm:$0xff]   ;;  %v10814_v23 = vld [vmem:[%s13459_s7 + $0x1d8] sm:$0xff]  }
 0x88a   :  { %v1852_v38 = vpack.c.bf16 %v1580_v17, %v1564_v28  ;;  %v1854_v39 = vpack.c.bf16 %v1582_v30, %v1566_v29  ;;  %v1342_v52 = vadd.f32 %v1341_v33, %v1079_v21  ;;  %v1385_v2 = vadd.f32 %v1384_v35, %v1087_v34  ;;  %v10816_v28 = vld [vmem:[%s13459_s7 + $0x198] sm:$0xff]   ;;  %v10817_v29 = vld [vmem:[%s13459_s7 + $0x150] sm:$0xff]   ;;  %v10822_v35 = vld [vmem:[%s13459_s7 + $0x1c8] sm:$0xff]  }
 0x88b   :  { %v11753_v47 = vpop.f32.mrf.mxu0  ;;  %v11755_v48 = vpop.f32.mrf.mxu1  ;;  %v10818_v17 = vld [vmem:[%s13459_s7 + $0x1d0] sm:$0xff]  }
 0x88c   :  { %2671 = vmatprep.mubr.bf16.mxu0 %v1852_v38  ;;  %2712 = vmatprep.mubr.bf16.mxu1 %v1854_v39  ;;  %v1568_v63 = vmax.f32 %v1342_v52, 0.0  ;;  %v1570_v4 = vmax.f32 %v1385_v2, 0.0  ;;  %v10820_v33 = vld [vmem:[%s13459_s7 + $0x190] sm:$0xff]   ;;  %v1075_v38 = vrot.slane %v11729_v59, %v11465_v46  ;;  %v1083_v39 = vrot.slane %v11729_v59, %v11462_v44  ;;  %v10824_v59 = vld [vmem:[%s13459_s7 + $0x188] sm:$0xff]  }
 0x88d   :  { %v1345_v55 = vpop.f32.mrf.mxu0  ;;  %v1388_v56 = vpop.f32.mrf.mxu1  ;;  %2672 = vmatmul.mubr.bf16.vlgmr.msra.gmra.mxu0 %v1851_v43  ;;  %2713 = vmatmul.mubr.bf16.vlgmr.msra.gmra.mxu1 %v1853_v45 }
 0x88e   :  { %v1346_v57 = vadd.f32 %v1345_v55, %v1079_v21  ;;  %v1389_v58 = vadd.f32 %v1388_v56, %v1087_v34  ;;  %10045 = vmatpush3.bf16.msra.mxu0 %v10799_v41  ;;  %10067 = vmatpush3.bf16.msra.mxu1 %v10800_v42  ;;  %v10815_v21 = vld [vmem:[%s13459_s7 + $0x118] sm:$0xff]   ;;  %v10821_v34 = vld [vmem:[%s13459_s7 + $0x148] sm:$0xff]   ;;  %v1387_v52 = vadd.f32 %v11755_v48, %v1083_v39  ;;  %v10825_v55 = vld [vmem:[%s13459_s7 + $0x140] sm:$0xff]  }
 0x88f   :  { %10046 = vmatprep.subr.bf16.mxu0 %v10801_v49  ;;  %10068 = vmatprep.subr.bf16.mxu1 %v10802_v51  ;;  %v11787_v40 = vpop.f32.mrf.mxu0  ;;  %v11789_v11 = vpop.f32.mrf.mxu1  ;;  %v11838_v41 = vld [vmem:[%s13458_s6 + $0x8] sm:$0xff]  ;;  %v1344_v51 = vadd.f32 %v11753_v47, %v1075_v38  ;;  %v10826_v56 = vld [vmem:[%s13459_s7 + $0x1c0] sm:$0xff]   ;;  %v1383_v47 = vadd.f32 %v11741_v22, %v1083_v39  ;;  %v10830_v22 = vld [vmem:[%s13459_s7 + $0x2f8] sm:$0xff]  }
 0x890   :  { %v1584_v0 = vmax.f32 %v1346_v57, 0.0  ;;  %v1586_v3 = vmax.f32 %v1389_v58, 0.0  ;;  %v1095_v43 = vrot.slane %v11838_v41, %v11446_v27  ;;  %v10823_v49 = vld [vmem:[%s13459_s7 + $0x108] sm:$0xff]   ;;  %v1103_v2 = vrot.slane %v11838_v41, %v11455_v37  ;;  %v10843_v39 = vld [vmem:[%s13459_s7 + $0x220] sm:$0xff]  }
 0x891   :  { %v1427_v16 = vpop.f32.mrf.mxu0  ;;  %v1470_v19 = vpop.f32.mrf.mxu1  ;;  %v1340_v58 = vadd.f32 %v11739_v20, %v1075_v38  ;;  %v10829_v20 = vld [vmem:[%s13459_s7 + $0x278] sm:$0xff]  }
 0x892   :  { %10047 = vmatpush3.bf16.msra.mxu0 %v10803_v24  ;;  %10069 = vmatpush3.bf16.msra.mxu1 %v10804_v26  ;;  %v1856_v36 = vpack.c.bf16 %v1584_v0, %v1568_v63  ;;  %v1858_v9 = vpack.c.bf16 %v1586_v3, %v1570_v4  ;;  %v1428_v48 = vadd.f32 %v1427_v16, %v1095_v43  ;;  %v10827_v26 = vld [vmem:[%s13459_s7 + $0x100] sm:$0xff]   ;;  %v1585_v63 = vmax.f32 %v1387_v52, 0.0  ;;  %v10834_v16 = vld [vmem:[%s13459_s7 + $0x2f0] sm:$0xff]  }
 0x893   :  { %10048 = vmatprep.subr.bf16.mxu0 %v10805_v8  ;;  %10070 = vmatprep.subr.bf16.mxu1 %v10806_v62  ;;  %v11815_v30 = vpop.f32.mrf.mxu0  ;;  %v11817_v31 = vpop.f32.mrf.mxu1  ;;  %v10828_v8 = vld [vmem:[%s13459_s7 + $0x180] sm:$0xff]   ;;  %v1583_v62 = vmax.f32 %v1344_v51, 0.0  ;;  %v1471_v0 = vadd.f32 %v1470_v19, %v1103_v2  ;;  %v1567_v4 = vmax.f32 %v1340_v58, 0.0  ;;  %v10847_v51 = vld [vmem:[%s13459_s7 + $0x218] sm:$0xff]   ;;  %v10851_v58 = vld [vmem:[%s13459_s7 + $0x210] sm:$0xff]  }
 0x894   :  { %2753 = vmatprep.mubr.bf16.mxu0 %v1856_v36  ;;  %2794 = vmatprep.mubr.bf16.mxu1 %v1858_v9  ;;  %v1569_v36 = vmax.f32 %v1383_v47, 0.0  ;;  %v10831_v9 = vld [vmem:[%s13459_s7 + $0x238] sm:$0xff]  }
 0x895   :  { %v1431_v42 = vpop.f32.mrf.mxu0  ;;  %v1474_v45 = vpop.f32.mrf.mxu1 }
 0x896   :  { %10049 = vmatpush3.bf16.msra.mxu0 %v10807_v50  ;;  %10071 = vmatpush3.bf16.msra.mxu1 %v10808_v6  ;;  %v1432_v57 = vadd.f32 %v1431_v42, %v1095_v43  ;;  %v1475_v24 = vadd.f32 %v1474_v45, %v1103_v2  ;;  %v1572_v6 = vmax.f32 %v1428_v48, 0.0  ;;  %v10844_v43 = vld [vmem:[%s13459_s7 + $0x2a0] sm:$0xff]   ;;  %v10845_v45 = vld [vmem:[%s13459_s7 + $0x258] sm:$0xff]   ;;  %v10853_v48 = vld [vmem:[%s13459_s7 + $0x248] sm:$0xff]  }
 0x897   :  { %10050 = vmatprep.subr.bf16.mxu0 %v10809_v10  ;;  %10072 = vmatprep.subr.bf16.mxu1 %v10810_v18  ;;  %v1855_v10 = vpack.c.bf16 %v1583_v62, %v1567_v4  ;;  %v1857_v18 = vpack.c.bf16 %v1585_v63, %v1569_v36  ;;  %v11908_v38 = vpop.f32.mrf.mxu0  ;;  %v11913_v42 = vpop.f32.mrf.mxu1  ;;  %v10848_v2 = vld [vmem:[%s13459_s7 + $0x298] sm:$0xff]   ;;  %v1099_v62 = vrot.slane %v11838_v41, %v11508_v53  ;;  %v10856_v4 = vld [vmem:[%s13459_s7 + $0x288] sm:$0xff]   ;;  %v10857_v36 = vld [vmem:[%s13459_s7 + $0x240] sm:$0xff]  }
 0x898   :  { %v1588_v3 = vmax.f32 %v1432_v57, 0.0  ;;  %v1590_v50 = vmax.f32 %v1475_v24, 0.0  ;;  %v10852_v24 = vld [vmem:[%s13459_s7 + $0x290] sm:$0xff]  }
 0x899   :  { %v1556_v52 = vpop.f32.mrf.mxu1 }
 0x89a   :  { %10051 = vmatpush3.bf16.msra.mxu0 %v10811_v14  ;;  %10073 = vmatpush3.bf16.msra.mxu1 %v10812_v13  ;;  %v1574_v14 = vmax.f32 %v1471_v0, 0.0  ;;  %v10832_v13 = vld [vmem:[%s13459_s7 + $0x2b8] sm:$0xff]   ;;  %v10855_v0 = vld [vmem:[%s13459_s7 + $0x208] sm:$0xff]  }
 0x89b   :  { %10052 = vmatprep.subr.bf16.mxu0 %v10813_v15  ;;  %10074 = vmatprep.subr.bf16.mxu1 %v10814_v23  ;;  %v1860_v15 = vpack.c.bf16 %v1588_v3, %v1572_v6  ;;  %v10833_v23 = vld [vmem:[%s13459_s7 + $0x270] sm:$0xff]   ;;  %v11941_v47 = vpop.f32.mrf.mxu1  ;;  %v1119_v6 = vrot.slane %v11838_v41, %v11474_v54 }
 0x89c   :  { %v1862_v19 = vpack.c.bf16 %v1590_v50, %v1574_v14  ;;  %v1473_v50 = vadd.f32 %v11817_v31, %v1099_v62 }
 0x89d   :  { %v1560_v3 = vpop.f32.mrf.mxu1 }
 0x89e   :  { %10053 = vmatpush3.bf16.msra.mxu0 %v10815_v21  ;;  %10075 = vmatpush3.bf16.msra.mxu1 %v10816_v28  ;;  %v10835_v21 = vld [vmem:[%s13459_s7 + $0x230] sm:$0xff]   ;;  %v1561_v14 = vadd.f32 %v1560_v3, %v1119_v6 }
 0x89f   :  { %10054 = vmatprep.subr.bf16.mxu0 %v10817_v29  ;;  %10076 = vmatprep.subr.bf16.mxu1 %v10818_v17  ;;  %v10836_v28 = vld [vmem:[%s13459_s7 + $0x2b0] sm:$0xff]   ;;  %v10837_v29 = vld [vmem:[%s13459_s7 + $0x268] sm:$0xff]  }
 0x8a0   :  { %v10838_v17 = vld [vmem:[%s13459_s7 + $0x2e8] sm:$0xff]   ;;  %v10881_v3 = vld [vmem:[%s13459_s7 + $0x350] sm:$0xff]  }
 0x8a2   :  { %10055 = vmatpush3.bf16.msra.mxu0 %v10819_v32  ;;  %10077 = vmatpush3.bf16.msra.mxu1 %v10820_v33  ;;  %v10839_v32 = vld [vmem:[%s13459_s7 + $0x228] sm:$0xff]  }
 0x8a3   :  { %10056 = vmatprep.subr.bf16.mxu0 %v10821_v34  ;;  %10078 = vmatprep.subr.bf16.mxu1 %v10822_v35  ;;  %v10840_v33 = vld [vmem:[%s13459_s7 + $0x2a8] sm:$0xff]   ;;  %v10841_v34 = vld [vmem:[%s13459_s7 + $0x260] sm:$0xff]  }
 0x8a4   :  { %v10842_v35 = vld [vmem:[%s13459_s7 + $0x2e0] sm:$0xff]  }
 0x8a6   :  { %10057 = vmatpush3.bf16.msra.mxu0 %v10823_v49  ;;  %10079 = vmatpush3.bf16.msra.mxu1 %v10824_v59  ;;  %v10846_v49 = vld [vmem:[%s13459_s7 + $0x2d8] sm:$0xff]   ;;  %v1513_v59 = vpop.f32.mrf.mxu0 }
 0x8a7   :  { %10058 = vmatprep.subr.bf16.mxu0 %v10825_v55  ;;  %10080 = vmatprep.subr.bf16.mxu1 %v10826_v56  ;;  %v10849_v55 = vld [vmem:[%s13459_s7 + $0x250] sm:$0xff]  }
 0x8a8   :  { %v10850_v56 = vld [vmem:[%s13459_s7 + $0x2d0] sm:$0xff]   ;;  %v11936_v57 = vpop.f32.mrf.mxu0 }
 0x8aa   :  { %10059 = vmatpush3.bf16.msra.mxu0 %v10827_v26  ;;  %10081 = vmatpush3.bf16.msra.mxu1 %v10828_v8  ;;  %v10854_v26 = vld [vmem:[%s13459_s7 + $0x2c8] sm:$0xff]   ;;  %v1091_v8 = vrot.slane %v11838_v41, %v11438_v25  ;;  %v1517_v63 = vpop.f32.mrf.mxu0 }
 0x8ab   :  { %10088 = vmatprep.subr.bf16.mxu0 %v10829_v20  ;;  %10110 = vmatprep.subr.bf16.mxu1 %v10830_v22  ;;  %v1111_v22 = vrot.slane %v11838_v41, %v11484_v5 }
 0x8ac   :  { %v1430_v20 = vadd.f32 %v11815_v30, %v1091_v8  ;;  %v10858_v30 = vld [vmem:[%s13459_s7 + $0x2c0] sm:$0xff]  }
 0x8ad   :  { %2754 = vmatmul.mubr.bf16.vlgmr.msra.gmra.mxu0 %v1855_v10  ;;  %2795 = vmatmul.mubr.bf16.vlgmr.msra.gmra.mxu1 %v1857_v18  ;;  %v1518_v10 = vadd.f32 %v1517_v63, %v1111_v22  ;;  %v1469_v18 = vadd.f32 %v11789_v11, %v1099_v62  ;;  %v1557_v11 = vadd.f32 %v1556_v52, %v1119_v6  ;;  %v10867_v52 = vld [vmem:[%s13459_s7 + $0x330] sm:$0xff]   ;;  %v10876_v62 = vld [vmem:[%s13459_s7 + $0x3a0] sm:$0xff]   ;;  %v10877_v63 = vld [vmem:[%s13459_s7 + $0x358] sm:$0xff]  }
 0x8ae   :  { %10089 = vmatpush3.bf16.msra.mxu0 %v10831_v9  ;;  %2835 = vmatprep.mubr.bf16.mxu0 %v1860_v15  ;;  %v1426_v9 = vadd.f32 %v11787_v40, %v1091_v8  ;;  %v1587_v31 = vmax.f32 %v1430_v20, 0.0  ;;  %v1514_v15 = vadd.f32 %v1513_v59, %v1111_v22  ;;  %v10861_v40 = vld [vmem:[%s13459_s7 + $0x378] sm:$0xff]   ;;  %v10866_v59 = vld [vmem:[%s13459_s7 + $0x3f0] sm:$0xff]   ;;  %v10875_v8 = vld [vmem:[%s13459_s7 + $0x320] sm:$0xff]  }
 0x8af   :  { %10111 = vmatpush3.bf16.msra.mxu1 %v10832_v13  ;;  %2876 = vmatprep.mubr.bf16.mxu1 %v1862_v19  ;;  %v10859_v13 = vld [vmem:[%s13459_s7 + $0x200] sm:$0xff]   ;;  %v10862_v19 = vld [vmem:[%s13459_s7 + $0x3f8] sm:$0xff]   ;;  %v10885_v6 = vld [vmem:[%s13459_s7 + $0x348] sm:$0xff]  }
 0x8b0   :  { %10090 = vmatprep.subr.bf16.mxu0 %v10833_v23  ;;  %10112 = vmatprep.subr.bf16.mxu1 %v10834_v16  ;;  %v10860_v23 = vld [vmem:[%s13459_s7 + $0x280] sm:$0xff]   ;;  %v1589_v16 = vmax.f32 %v1473_v50, 0.0  ;;  %v10879_v20 = vld [vmem:[%s13459_s7 + $0x318] sm:$0xff]   ;;  %v10884_v50 = vld [vmem:[%s13459_s7 + $0x390] sm:$0xff]  }
 0x8b1   :  { %v10880_v22 = vld [vmem:[%s13459_s7 + $0x398] sm:$0xff]  }
 0x8b2   :  { %10091 = vmatpush3.bf16.msra.mxu0 %v10835_v21  ;;  %v1571_v21 = vmax.f32 %v1426_v9, 0.0  ;;  %v1107_v9 = vrot.slane %v11838_v41, %v11465_v46 }
 0x8b3   :  { %10113 = vmatpush3.bf16.msra.mxu1 %v10836_v28  ;;  %10092 = vmatprep.subr.bf16.mxu0 %v10837_v29  ;;  %v1592_v28 = vmax.f32 %v1518_v10, 0.0  ;;  %v1573_v29 = vmax.f32 %v1469_v18, 0.0  ;;  %v1115_v10 = vrot.slane %v11838_v41, %v11462_v44  ;;  %v10887_v18 = vld [vmem:[%s13459_s7 + $0x308] sm:$0xff]   ;;  %v10890_v41 = vld [vmem:[%s13459_s7 + $0x3c0] sm:$0xff]  }
 0x8b4   :  { %10114 = vmatprep.subr.bf16.mxu1 %v10838_v17  ;;  %v1594_v17 = vmax.f32 %v1561_v14, 0.0  ;;  %v1516_v14 = vadd.f32 %v11936_v57, %v1107_v9 }
 0x8b5   :  { %v1555_v57 = vadd.f32 %v11913_v42, %v1115_v10 }
 0x8b6   :  { %10093 = vmatpush3.bf16.msra.mxu0 %v10839_v32  ;;  %v10863_v32 = vld [vmem:[%s13459_s7 + $0x338] sm:$0xff]  }
 0x8b7   :  { %10115 = vmatpush3.bf16.msra.mxu1 %v10840_v33  ;;  %10094 = vmatprep.subr.bf16.mxu0 %v10841_v34  ;;  %v1859_v33 = vpack.c.bf16 %v1587_v31, %v1571_v21  ;;  %v1576_v34 = vmax.f32 %v1514_v15, 0.0  ;;  %v10889_v31 = vld [vmem:[%s13459_s7 + $0x340] sm:$0xff]   ;;  %v1559_v15 = vadd.f32 %v11941_v47, %v1115_v10  ;;  %v1577_v21 = vmax.f32 %v1555_v57, 0.0 }
 0x8b8   :  { %10116 = vmatprep.subr.bf16.mxu1 %v10842_v35  ;;  %v10864_v35 = vld [vmem:[%s13459_s7 + $0x3b8] sm:$0xff]   ;;  %v10892_v47 = vld [vmem:[%s13459_s7 + $0x380] sm:$0xff]  }
 0x8ba   :  { %10095 = vmatpush3.bf16.msra.mxu0 %v10843_v39  ;;  %v1861_v39 = vpack.c.bf16 %v1589_v16, %v1573_v29  ;;  %v1591_v16 = vmax.f32 %v1516_v14, 0.0 }
 0x8bb   :  { %10117 = vmatpush3.bf16.msra.mxu1 %v10844_v43  ;;  %10096 = vmatprep.subr.bf16.mxu0 %v10845_v45  ;;  %v1578_v43 = vmax.f32 %v1557_v11, 0.0  ;;  %v10865_v45 = vld [vmem:[%s13459_s7 + $0x370] sm:$0xff]   ;;  %v1593_v11 = vmax.f32 %v1559_v15, 0.0 }
 0x8bc   :  { %10118 = vmatprep.subr.bf16.mxu1 %v10846_v49  ;;  %v1864_v49 = vpack.c.bf16 %v1592_v28, %v1576_v34 }
 0x8bd   :  { %v1865_v42 = vpack.c.bf16 %v1593_v11, %v1577_v21 }
 0x8be   :  { %10097 = vmatpush3.bf16.msra.mxu0 %v10847_v51  ;;  %v1866_v51 = vpack.c.bf16 %v1594_v17, %v1578_v43 }
 0x8bf   :  { %10119 = vmatpush3.bf16.msra.mxu1 %v10848_v2  ;;  %10098 = vmatprep.subr.bf16.mxu0 %v10849_v55  ;;  %v10868_v2 = vld [vmem:[%s13459_s7 + $0x3b0] sm:$0xff]   ;;  %v10869_v55 = vld [vmem:[%s13459_s7 + $0x368] sm:$0xff]  }
 0x8c0   :  { %10120 = vmatprep.subr.bf16.mxu1 %v10850_v56  ;;  %v10870_v56 = vld [vmem:[%s13459_s7 + $0x3e8] sm:$0xff]  }
 0x8c2   :  { %10099 = vmatpush3.bf16.msra.mxu0 %v10851_v58  ;;  %v10871_v58 = vld [vmem:[%s13459_s7 + $0x328] sm:$0xff]  }
 0x8c3   :  { %10121 = vmatpush3.bf16.msra.mxu1 %v10852_v24  ;;  %10100 = vmatprep.subr.bf16.mxu0 %v10853_v48  ;;  %v10872_v24 = vld [vmem:[%s13459_s7 + $0x3a8] sm:$0xff]   ;;  %v10873_v48 = vld [vmem:[%s13459_s7 + $0x360] sm:$0xff]  }
 0x8c4   :  { %10122 = vmatprep.subr.bf16.mxu1 %v10854_v26  ;;  %v10874_v26 = vld [vmem:[%s13459_s7 + $0x3e0] sm:$0xff]  }
 0x8c6   :  { %10101 = vmatpush3.bf16.msra.mxu0 %v10855_v0  ;;  %v10878_v0 = vld [vmem:[%s13459_s7 + $0x3d8] sm:$0xff]  }
 0x8c7   :  { %10123 = vmatpush3.bf16.msra.mxu1 %v10856_v4  ;;  %10102 = vmatprep.subr.bf16.mxu0 %v10857_v36  ;;  %v10882_v4 = vld [vmem:[%s13459_s7 + $0x3d0] sm:$0xff]  }
 0x8c8   :  { %10124 = vmatprep.subr.bf16.mxu1 %v10858_v30  ;;  %v10883_v36 = vld [vmem:[%s13459_s7 + $0x310] sm:$0xff]   ;;  %v10886_v30 = vld [vmem:[%s13459_s7 + $0x3c8] sm:$0xff]  }
 0x8ca   :  { %10103 = vmatpush3.bf16.msra.mxu0 %v10859_v13  ;;  %v10888_v13 = vld [vmem:[%s13459_s7 + $0x388] sm:$0xff]  }
 0x8cb   :  { %10125 = vmatpush3.bf16.msra.mxu1 %v10860_v23  ;;  %10132 = vmatprep.subr.bf16.mxu0 %v10861_v40  ;;  %v1512_v23 = vadd.f32 %v11908_v38, %v1107_v9  ;;  %v10891_v40 = vld [vmem:[%s13459_s7 + $0x300] sm:$0xff]  }
 0x8cc   :  { %10154 = vmatprep.subr.bf16.mxu1 %v10862_v19 }
 0x8cd   :  { %2836 = vmatmul.mubr.bf16.vlgmr.msra.gmra.mxu0 %v1859_v33  ;;  %v1575_v19 = vmax.f32 %v1512_v23, 0.0 }
 0x8ce   :  { %2877 = vmatmul.mubr.bf16.vlgmr.msra.gmra.mxu1 %v1861_v39  ;;  %10133 = vmatpush3.bf16.msra.mxu0 %v10863_v32 }
 0x8cf   :  { %2917 = vmatprep.mubr.bf16.mxu0 %v1864_v49  ;;  %10155 = vmatpush3.bf16.msra.mxu1 %v10864_v35  ;;  %v1863_v38 = vpack.c.bf16 %v1591_v16, %v1575_v19 }
 0x8d0   :  { %2958 = vmatprep.mubr.bf16.mxu1 %v1866_v51  ;;  %10134 = vmatprep.subr.bf16.mxu0 %v10865_v45 }
 0x8d1   :  { %10156 = vmatprep.subr.bf16.mxu1 %v10866_v59 }
 0x8d2   :  { %10135 = vmatpush3.bf16.msra.mxu0 %v10867_v52 }
 0x8d3   :  { %10157 = vmatpush3.bf16.msra.mxu1 %v10868_v2  ;;  %10136 = vmatprep.subr.bf16.mxu0 %v10869_v55  ;;  %v12091_v55 = vld [vmem:[%s13460_s8] sm:$0xff] }
 0x8d4   :  { %10158 = vmatprep.subr.bf16.mxu1 %v10870_v56  ;;  %v1870_v56 = vrot.slane %v12091_v55, %v11455_v37 }
 0x8d6   :  { %10137 = vmatpush3.bf16.msra.mxu0 %v10871_v58 }
 0x8d7   :  { %10159 = vmatpush3.bf16.msra.mxu1 %v10872_v24  ;;  %10138 = vmatprep.subr.bf16.mxu0 %v10873_v48 }
 0x8d8   :  { %10160 = vmatprep.subr.bf16.mxu1 %v10874_v26 }
 0x8da   :  { %10139 = vmatpush3.bf16.msra.mxu0 %v10875_v8 }
 0x8db   :  { %10161 = vmatpush3.bf16.msra.mxu1 %v10876_v62  ;;  %10140 = vmatprep.subr.bf16.mxu0 %v10877_v63 }
 0x8dc   :  { %10162 = vmatprep.subr.bf16.mxu1 %v10878_v0 }
 0x8de   :  { %10141 = vmatpush3.bf16.msra.mxu0 %v10879_v20 }
 0x8df   :  { %10163 = vmatpush3.bf16.msra.mxu1 %v10880_v22  ;;  %10142 = vmatprep.subr.bf16.mxu0 %v10881_v3 }
 0x8e0   :  { %10164 = vmatprep.subr.bf16.mxu1 %v10882_v4 }
 0x8e2   :  { %10143 = vmatpush3.bf16.msra.mxu0 %v10883_v36 }
 0x8e3   :  { %10165 = vmatpush3.bf16.msra.mxu1 %v10884_v50  ;;  %10144 = vmatprep.subr.bf16.mxu0 %v10885_v6 }
 0x8e4   :  { %10166 = vmatprep.subr.bf16.mxu1 %v10886_v30 }
 0x8e6   :  { %10145 = vmatpush3.bf16.msra.mxu0 %v10887_v18 }
 0x8e7   :  { %10167 = vmatpush3.bf16.msra.mxu1 %v10888_v13  ;;  %10146 = vmatprep.subr.bf16.mxu0 %v10889_v31 }
 0x8e8   :  { %10168 = vmatprep.subr.bf16.mxu1 %v10890_v41 }
 0x8ea   :  { %10147 = vmatpush3.bf16.msra.mxu0 %v10891_v40 }
 0x8eb   :  { %10169 = vmatpush3.bf16.msra.mxu1 %v10892_v47 }
 0x8ed   :  { %2918 = vmatmul.mubr.bf16.vlgmr.msra.gmra.mxu0 %v1863_v38 }
 0x8ee   :  { %2959 = vmatmul.mubr.bf16.vlgmr.msra.gmra.mxu1 %v1865_v42  ;;  %3154 = vmatprep.mubr.bf16.mxu0 %v11303_v12 }
 0x8ef   :  { %3197 = vmatprep.mubr.bf16.mxu1 %v11303_v12 }
 0x94d   :  { %v10016_v28 = vpop.f32.mrf.mxu0  ;;  %v10038_v29 = vpop.f32.mrf.mxu1 }
 0x94f   :  { %v10017_v17 = vpop.f32.mrf.mxu0  ;;  %v10039_v32 = vpop.f32.mrf.mxu1 }
 0x950   :  { %v10018_v58 = vadd.f32 %v10017_v17, %v10016_v28  ;;  %v10040_v0 = vadd.f32 %v10039_v32, %v10038_v29 }
 0x951   :  { %v10019_v33 = vpop.f32.mrf.mxu0  ;;  %v10041_v34 = vpop.f32.mrf.mxu1 }
 0x952   :  { %v2674_v26 = vadd.f32 %v10018_v58, %v1870_v56 }
 0x953   :  { %v10020_v35 = vpop.f32.mrf.mxu0  ;;  %v10042_v43 = vpop.f32.mrf.mxu1 }
 0x954   :  { %v10021_v8 = vadd.f32 %v10020_v35, %v10019_v33  ;;  %v2715_v22 = vadd.f32 %v10040_v0, %v2674_v26  ;;  %v10043_v50 = vadd.f32 %v10042_v43, %v10041_v34 }
 0x956   :  { %v2677_v3 = vadd.f32 %v10021_v8, %v1870_v56 }
 0x958   :  { %v2718_v9 = vadd.f32 %v10043_v50, %v2677_v3  ;;  %v10893_v50 = vld [vmem:[%s13455_s3 + $0x48] ss:$36 sps:$4 sm:$0xff]  }
 0x96d   :  { %v10060_v39 = vpop.f32.mrf.mxu0  ;;  %v10082_v45 = vpop.f32.mrf.mxu1 }
 0x96f   :  { %v10061_v49 = vpop.f32.mrf.mxu0  ;;  %v10083_v59 = vpop.f32.mrf.mxu1 }
 0x970   :  { %v10062_v20 = vadd.f32 %v10061_v49, %v10060_v39  ;;  %v10084_v10 = vadd.f32 %v10083_v59, %v10082_v45 }
 0x971   :  { %v10063_v51 = vpop.f32.mrf.mxu0  ;;  %v10085_v52 = vpop.f32.mrf.mxu1 }
 0x972   :  { %v2756_v6 = vadd.f32 %v10062_v20, %v2715_v22 }
 0x973   :  { %v10064_v2 = vpop.f32.mrf.mxu0  ;;  %v10086_v48 = vpop.f32.mrf.mxu1 }
 0x974   :  { %v10065_v30 = vadd.f32 %v10064_v2, %v10063_v51  ;;  %v2797_v31 = vadd.f32 %v10084_v10, %v2756_v6  ;;  %v10087_v41 = vadd.f32 %v10086_v48, %v10085_v52  ;;  %v10895_v6 = vld [vmem:[%s13455_s3 + $0x4c] ss:$36 sps:$4 sm:$0xff]   ;;  %v10901_v10 = vld [vmem:[%s13455_s3 + $0x5c] ss:$36 sps:$4 sm:$0xff]  }
 0x975   :  { %3136 = vmatprep.subr.bf16.mxu0 %v10895_v6 }
 0x976   :  { %v2759_v15 = vadd.f32 %v10065_v30, %v2718_v9  ;;  %v10896_v30 = vld [vmem:[%s13455_s3 + $0x50] ss:$36 sps:$4 sm:$0xff]   ;;  %3137 = vmatpush1.bf16.msra.mxu0 %v10893_v50 }
 0x977   :  { %v10898_v9 = vld [vmem:[%s13455_s3 + $0x54] ss:$36 sps:$4 sm:$0xff]   ;;  %3222 = vmatprep.subr.bf16.mxu0 %v10901_v10 }
 0x978   :  { %v2800_v47 = vadd.f32 %v10087_v41, %v2759_v15  ;;  %3179 = vmatprep.subr.bf16.mxu1 %v10898_v9 }
 0x979   :  { %3180 = vmatpush1.bf16.msra.mxu1 %v10896_v30 }
 0x98d   :  { %v10104_v24 = vpop.f32.mrf.mxu0 }
 0x98e   :  { %v10126_v62 = vpop.f32.mrf.mxu1 }
 0x98f   :  { %v10105_v63 = vpop.f32.mrf.mxu0 }
 0x990   :  { %v10127_v4 = vpop.f32.mrf.mxu1  ;;  %v10106_v18 = vadd.f32 %v10105_v63, %v10104_v24 }
 0x991   :  { %v10107_v36 = vpop.f32.mrf.mxu0  ;;  %v10128_v11 = vadd.f32 %v10127_v4, %v10126_v62 }
 0x992   :  { %v10129_v14 = vpop.f32.mrf.mxu1  ;;  %v2838_v23 = vadd.f32 %v10106_v18, %v2797_v31  ;;  %v10904_v18 = vld [vmem:[%s13455_s3 + $0x64] ss:$36 sps:$4 sm:$0xff]  }
 0x993   :  { %v10108_v13 = vpop.f32.mrf.mxu0  ;;  %3265 = vmatprep.subr.bf16.mxu1 %v10904_v18 }
 0x994   :  { %v10109_v57 = vadd.f32 %v10108_v13, %v10107_v36  ;;  %v10130_v40 = vpop.f32.mrf.mxu1  ;;  %v2879_v38 = vadd.f32 %v10128_v11, %v2838_v23 }
 0x995   :  { %v10131_v32 = vadd.f32 %v10130_v40, %v10129_v14 }
 0x996   :  { %v2841_v42 = vadd.f32 %v10109_v57, %v2800_v47 }
 0x998   :  { %v2882_v43 = vadd.f32 %v10131_v32, %v2841_v42 }
 0x9ad   :  { %v10148_v16 = vpop.f32.mrf.mxu0 }
 0x9ae   :  { %v10170_v19 = vpop.f32.mrf.mxu1 }
 0x9af   :  { %v10149_v21 = vpop.f32.mrf.mxu0 }
 0x9b0   :  { %v10150_v28 = vadd.f32 %v10149_v21, %v10148_v16  ;;  %v10171_v29 = vpop.f32.mrf.mxu1  ;;  %v3000_v16 = vrot.slane %v12091_v55, %v11465_v46  ;;  %v3006_v21 = vrot.slane %v12091_v55, %v11484_v5  ;;  %v10905_v55 = vld [vmem:[%s13455_s3 + $0x68] ss:$36 sps:$4 sm:$0xff]  }
 0x9b1   :  { %v10151_v17 = vpop.f32.mrf.mxu0  ;;  %v10172_v34 = vadd.f32 %v10171_v29, %v10170_v19  ;;  %v10899_v29 = vld [vmem:[%s13455_s3 + $0x58] ss:$36 sps:$4 sm:$0xff]  }
 0x9b2   :  { %v2920_v33 = vadd.f32 %v10150_v28, %v2879_v38  ;;  %v10173_v35 = vpop.f32.mrf.mxu1 }
 0x9b3   :  { %v10152_v39 = vpop.f32.mrf.mxu0 }
 0x9b4   :  { %v2961_v45 = vadd.f32 %v10172_v34, %v2920_v33  ;;  %v10153_v49 = vadd.f32 %v10152_v39, %v10151_v17  ;;  %v10174_v59 = vpop.f32.mrf.mxu1  ;;  %v10902_v17 = vld [vmem:[%s13455_s3 + $0x60] ss:$36 sps:$4 sm:$0xff]   ;;  %v9057_v33 = vld [vmem:[%s13456_s4 + $0x9] sm:$0xff] }
 0x9b5   :  { %v10175_v52 = vadd.f32 %v10174_v59, %v10173_v35  ;;  %v3031_v34 = vrot.slane %v9057_v33, %v11438_v25  ;;  %v3035_v35 = vrot.slane %v9057_v33, %v11446_v27 }
 0x9b6   :  { %v2923_v51 = vadd.f32 %v10153_v49, %v2882_v43  ;;  %v2967_v2 = vadd.f32 %v2961_v45, %v11585_v61 }
 0x9b8   :  { %v2964_v56 = vadd.f32 %v10175_v52, %v2923_v51  ;;  %v2969_v58 = vsel %vm234_vm2, %v2967_v2, 0.0 }
 0x9b9   :  { %2970 = vadd.xlane.f32.xlu0 %v2969_v58  ;;  %v3055_v58 = vrot.slane %v9057_v33, %v11462_v44 }
 0x9ba   :  { %v2968_v24 = vadd.f32 %v2964_v56, %v11583_v60  ;;  %v3043_v56 = vrot.slane %v9057_v33, %v11455_v37 }
 0x9bc   :  { %v2972_v48 = vsel %vm234_vm2, %v2968_v24, 0.0 }
 0x9bd   :  { %2973 = vadd.xlane.f32.xlu1 %v2972_v48 }
 0xa42   :  { %v2971_v26 = vpop.xlane.xlu0 %2970 }
 0xa43   :  { %v2975_v8 = vmul.f32 0.11111111, %v2971_v26 }
 0xa45   :  { %v2977_v62 = vsub.f32 %v2967_v2, %v2975_v8 }
 0xa46   :  { %v2974_v63 = vpop.xlane.xlu1 %2973 }
 0xa47   :  { %v2976_v0 = vmul.f32 0.11111111, %v2974_v63  ;;  %v2979_v20 = vmul.f32 %v11546_v7, %v2977_v62 }
 0xa49   :  { %v2978_v22 = vsub.f32 %v2968_v24, %v2976_v0  ;;  %v2981_v3 = vmul.f32 %v2979_v20, %v2979_v20 }
 0xa4b   :  { %v2983_v61 = vsel %vm234_vm2, %v2981_v3, 0.0  ;;  %v2980_v4 = vmul.f32 %v11546_v7, %v2978_v22  ;;  %v3047_v3 = vrot.slane %v9057_v33, %v11465_v46 }
 0xa4c   :  { %2984 = vadd.xlane.f32.xlu0 %v2983_v61 }
 0xa4d   :  { %v2982_v36 = vmul.f32 %v2980_v4, %v2980_v4 }
 0xa4f   :  { %v2986_v60 = vsel %vm234_vm2, %v2982_v36, 0.0  ;;  %v3059_v36 = vrot.slane %v9057_v33, %v11474_v54 }
 0xa50   :  { %2987 = vadd.xlane.f32.xlu1 %v2986_v60 }
 0xad5   :  { %v2985_v14 = vpop.xlane.xlu0 %2984 }
 0xad6   :  { %v2989_v13 = vmul.f32 0.11111111, %v2985_v14  ;;  %v3051_v14 = vrot.slane %v9057_v33, %v11484_v5 }
 0xad8   :  { %v2991_v31 = vadd.f32 1e-05, %v2989_v13  ;;  %v3039_v13 = vrot.slane %v9057_v33, %v11508_v53 }
 0xad9   :  { %v2988_v15 = vpop.xlane.xlu1 %2987 }
 0xada   :  { %11204 = vrsqrt.f32 %v2991_v31  ;;  %v2990_v41 = vmul.f32 0.11111111, %v2988_v15 }
 0xadc   :  { %v2992_v23 = vadd.f32 1e-05, %v2990_v41 }
 0xade   :  { %11206 = vrsqrt.f32 %v2992_v23 }
 0xae7   :  { %v11205_v57 = vpop.eup %11204 }
 0xae8   :  { %v2995_v40 = vmul.f32 %v11205_v57, %v2979_v20 }
 0xaea   :  { %v3001_v19 = vmul.f32 %v3000_v16, %v2995_v40 }
 0xaeb   :  { %v11207_v47 = vpop.eup %11206 }
 0xaec   :  { %v2996_v11 = vmul.f32 %v11207_v47, %v2980_v4  ;;  %v12125_v42 = vadd.f32 %v3006_v21, %v3001_v19 }
 0xaee   :  { %v3002_v38 = vmul.f32 %v3000_v16, %v2996_v11 }
 0xaf0   :  { %v12127_v28 = vadd.f32 %v3006_v21, %v3002_v38 }
 0xaf2   :  { %v3022_v32 = vpack.c.bf16 %v12127_v28, %v12125_v42 }
 0xaf4   :  { %9069 = vmatmul.mubr.msk.bf16.vlgmr.msra.gmra.mxu0 %vm234_vm2, %v3022_v32  ;;  %9070 = vmatmul.mubr.msk.bf16.vlgmr.msra.gmra.mxu1 %vm234_vm2, %v3022_v32 }
 0xaf5   :  { %3223 = vmatpush1.bf16.msra.mxu0 %v10899_v29  ;;  %3266 = vmatpush1.bf16.msra.mxu1 %v10902_v17  ;;  %v11273_v29 = vld [vmem:[%s13453_s1 + $0x8] sm:$0xff] }
 0xaf6   :  { %3240 = vmatprep.mubr.bf16.mxu0 %v11303_v12  ;;  %3283 = vmatprep.mubr.bf16.mxu1 %v11303_v12 }
 0xaf7   :  { %10642 = vmatprep.subr.bf16.mxu0 %v11301_v1 }
 0xafc   :  { %9071 = vmatmul.mubr.msk.bf16.vlgmr.msra.gmra.mxu0 %vm234_vm2, %v3022_v32  ;;  %9072 = vmatmul.mubr.msk.bf16.vlgmr.msra.gmra.mxu1 %vm234_vm2, %v3022_v32 }
 0xafd   :  { %10643 = vmatpush3.bf16.msra.mxu0 %v10905_v55  ;;  %10644 = vmatprep.mubr.msk.bf16.mxu0 %vm11302_vm0, %v11301_v1 }
 0xb04   :  { %10645 = vmatmul.mubr.msk.bf16.vlgmr.msra.gmra.mxu0 %vm234_vm2, %v3022_v32 }
 0xbb4   :  { %v3156_v39 = vpop.f32.mrf.mxu0  ;;  %v3199_v43 = vpop.f32.mrf.mxu1 }
 0xbb5   :  { %v3157_v45 = vadd.f32 %v3156_v39, %v3031_v34  ;;  %v3200_v16 = vadd.f32 %v3199_v43, %v3039_v13 }
 0xbb6   :  { %v3158_v49 = vpop.f32.mrf.mxu0  ;;  %v3201_v59 = vpop.f32.mrf.mxu1 }
 0xbb7   :  { %v3159_v51 = vadd.f32 %v3158_v49, %v3035_v35  ;;  %10652 = vmatprep.mubr.f32.mxu1 %v3157_v45  ;;  %v3202_v63 = vadd.f32 %v3201_v59, %v3043_v56 }
 0xbb8   :  { %v3160_v52 = vpop.f32.mrf.mxu0  ;;  %v3203_v2 = vpop.f32.mrf.mxu1 }
 0xbb9   :  { %10659 = vmatprep.mubr.f32.mxu0 %v3159_v51  ;;  %v3161_v30 = vadd.f32 %v3160_v52, %v3031_v34  ;;  %v3204_v19 = vadd.f32 %v3203_v2, %v3039_v13  ;;  %v11274_v34 = vld [vmem:[%s13453_s1] sm:$0xff] }
 0xbba   :  { %v3162_v24 = vpop.f32.mrf.mxu0  ;;  %v3205_v48 = vpop.f32.mrf.mxu1 }
 0xbbb   :  { %v3206_v26 = vadd.f32 %v3205_v48, %v3043_v56  ;;  %v3163_v40 = vadd.f32 %v3162_v24, %v3035_v35 }
 0xbbc   :  { %v3242_v8 = vpop.f32.mrf.mxu0  ;;  %v3285_v62 = vpop.f32.mrf.mxu1 }
 0xbbd   :  { %v12157_v0 = vadd.f32 %v3285_v62, %v3055_v58  ;;  %10648 = vmatprep.subr.mxu1 %v3206_v26  ;;  %v3243_v9 = vadd.f32 %v3242_v8, %v3047_v3 }
 0xbbe   :  { %v3244_v20 = vpop.f32.mrf.mxu0  ;;  %v3287_v22 = vpop.f32.mrf.mxu1  ;;  %10649 = vmatpush3.xpose.msra.mxu1 %v3206_v26 }
 0xbbf   :  { %10650 = vmatprep.subr.mxu1 %v3202_v63  ;;  %v3288_v31 = vadd.f32 %v3287_v22, %v3059_v36  ;;  %v3245_v11 = vadd.f32 %v3244_v20, %v3051_v14 }
 0xbc0   :  { %v3246_v61 = vpop.f32.mrf.mxu0  ;;  %v3289_v4 = vpop.f32.mrf.mxu1 }
 0xbc1   :  { %v3247_v60 = vadd.f32 %v3246_v61, %v3047_v3  ;;  %v12165_v23 = vadd.f32 %v3289_v4, %v3055_v58 }
 0xbc2   :  { %v3248_v50 = vpop.f32.mrf.mxu0  ;;  %v3291_v6 = vpop.f32.mrf.mxu1  ;;  %10651 = vmatpush3.xpose.msra.mxu1 %v3202_v63 }
 0xbc3   :  { %v3292_v10 = vadd.f32 %v3291_v6, %v3059_v36  ;;  %10655 = vmatprep.subr.mxu0 %v3247_v60  ;;  %v3249_v41 = vadd.f32 %v3248_v50, %v3051_v14 }
 0xbc4   :  { %v12161_v18 = vpop.f32.mrf.mxu0  ;;  %10656 = vmatpush3.xpose.msra.mxu0 %v3247_v60 }
 0xbc5   :  { %10653 = vmatmul.mubr.f32.vlgmr.msra.gmra.mxu1 %v3161_v30  ;;  %10657 = vmatprep.subr.mxu0 %v3243_v9 }
 0xbc6   :  { %10662 = vmatprep.subr.mxu1 %v3292_v10  ;;  %v10646_v15 = vpop.f32.mrf.mxu0 }
 0xbc7   :  { %10663 = vmatpush3.msra.mxu1 %v3292_v10 }
 0xbc8   :  { %10664 = vmatprep.subr.mxu1 %v3288_v31  ;;  %v12167_v57 = vpop.f32.mrf.mxu0  ;;  %10658 = vmatpush3.xpose.msra.mxu0 %v3243_v9 }
 0xbc9   :  { %10665 = vmatpush3.msra.mxu1 %v3288_v31  ;;  %10676 = vmatprep.subr.mxu0 %v3249_v41 }
 0xbca   :  { %10669 = vmatprep.subr.mxu1 %v12165_v23  ;;  %v10647_v47 = vpop.f32.mrf.mxu0 }
 0xbcb   :  { %10660 = vmatmul.mubr.f32.vlgmr.msra.gmra.mxu0 %v3163_v40 }
 0xbcc   :  { %10677 = vmatpush3.xpose.msra.mxu0 %v3249_v41  ;;  %10680 = vmatprep.mubr.f32.mxu0 %v3200_v16 }
 0xbcd   :  { %10678 = vmatprep.subr.mxu0 %v3245_v11 }
 0xbd0   :  { %10679 = vmatpush3.xpose.msra.mxu0 %v3245_v11 }
 0xbd3   :  { %10681 = vmatmul.mubr.f32.vlgmr.msra.gmra.mxu0 %v3204_v19 }
 0xbd4   :  { %4180 = vmatprep.mubr.bf16.mxu0 %v11303_v12 }
 0xc85   :  { %v10654_v21 = vpop.f32.mrf.mxu1 }
 0xc86   :  { %v3407_v33 = vadd.f32 %v11273_v29, %v10654_v21 }
 0xc87   :  { %v3401_v32 = vpop.f32.mrf.mxu1 }
 0xc88   :  { %v3402_v43 = vadd.f32 %v11274_v34, %v3401_v32  ;;  %v3413_v49 = vsel %vm234_vm2, %v3407_v33, -inf }
 0xc8a   :  { %v3410_v52 = vsel %vm234_vm2, %v3402_v43, -inf }
 0xc8b   :  { %v10661_v38 = vpop.f32.mrf.mxu0 }
 0xc8c   :  { %v3504_v17 = vadd.f32 %v11273_v29, %v10661_v38 }
 0xc8d   :  { %v3498_v55 = vpop.f32.mrf.mxu0 }
 0xc8e   :  { %v3499_v35 = vadd.f32 %v11274_v34, %v3498_v55  ;;  %v3510_v39 = vsel %vm234_vm2, %v3504_v17, -inf }
 0xc8f   :  { %3511 = vmax.xlane.f32.xlu1 %v3510_v39 }
 0xc90   :  { %v3507_v45 = vsel %vm234_vm2, %v3499_v35, -inf }
 0xc91   :  { %3508 = vmax.xlane.f32.xlu0 %v3507_v45 }
 0xc93   :  { %v10682_v59 = vpop.f32.mrf.mxu0  ;;  %3414 = vmax.xlane.f32.xlu1 %v3413_v49 }
 0xc94   :  { %v3763_v51 = vadd.f32 %v11273_v29, %v10682_v59 }
 0xc95   :  { %v3757_v2 = vpop.f32.mrf.mxu0  ;;  %3411 = vmax.xlane.f32.xlu0 %v3410_v52  ;;  %v9059_v52 = vld [vmem:[%s13456_s4 + $0x11] ss:$0 sm:$0xff] }
 0xc96   :  { %v3758_v56 = vadd.f32 %v11274_v34, %v3757_v2  ;;  %v3769_v58 = vsel %vm234_vm2, %v3763_v51, -inf }
 0xc97   :  { %3770 = vmax.xlane.f32.xlu1 %v3769_v58 }
 0xc98   :  { %v3766_v24 = vsel %vm234_vm2, %v3758_v56, -inf }
 0xc99   :  { %3767 = vmax.xlane.f32.xlu0 %v3766_v24 }
 0xd18   :  { %v3512_v48 = vpop.xlane.xlu1 %3511 }
 0xd19   :  { %v3514_v26 = vsub.f32 %v3504_v17, %v3512_v48 }
 0xd1a   :  { %v3509_v8 = vpop.xlane.xlu0 %3508 }
 0xd1b   :  { %v3517_v62 = vmul.f32 1.442695, %v3514_v26  ;;  %v3513_v63 = vsub.f32 %v3499_v35, %v3509_v8  ;;  %v3329_v26 = vadd.f32 %v9059_v52, %v12161_v18  ;;  %v12207_v18 = vld [vmem:[%s13460_s8 + $0x8] sm:$0xff] }
 0xd1c   :  { %v3415_v20 = vpop.xlane.xlu1 %3414 }
 0xd1d   :  { %11208 = vpow2.f32 %v3517_v62  ;;  %v3515_v22 = vmul.f32 1.442695, %v3513_v63  ;;  %v3417_v3 = vsub.f32 %v3407_v33, %v3415_v20 }
 0xd1e   :  { %v3412_v61 = vpop.xlane.xlu0 %3411 }
 0xd1f   :  { %11210 = vpow2.f32 %v3515_v22  ;;  %v3420_v4 = vmul.f32 1.442695, %v3417_v3  ;;  %v3416_v36 = vsub.f32 %v3402_v43, %v3412_v61  ;;  %v3874_v22 = vrot.slane %v12207_v18, %v11438_v25 }
 0xd20   :  { %v3771_v60 = vpop.xlane.xlu1 %3770 }
 0xd21   :  { %11212 = vpow2.f32 %v3420_v4  ;;  %v3418_v50 = vmul.f32 1.442695, %v3416_v36  ;;  %v3773_v6 = vsub.f32 %v3763_v51, %v3771_v60 }
 0xd22   :  { %v3768_v30 = vpop.xlane.xlu0 %3767 }
 0xd23   :  { %11214 = vpow2.f32 %v3418_v50  ;;  %v3776_v9 = vmul.f32 1.442695, %v3773_v6  ;;  %v3772_v10 = vsub.f32 %v3758_v56, %v3768_v30  ;;  %v3332_v56 = vadd.f32 %v9059_v52, %v12167_v57 }
 0xd25   :  { %11216 = vpow2.f32 %v3776_v9  ;;  %v3774_v14 = vmul.f32 1.442695, %v3772_v10 }
 0xd27   :  { %11218 = vpow2.f32 %v3774_v14 }
 0xd2a   :  { %v11209_v13 = vpop.eup %11208 }
 0xd2b   :  { %v3522_v31 = vsel %vm234_vm2, %v11209_v13, 0.0 }
 0xd2c   :  { %v11211_v15 = vpop.eup %11210  ;;  %3523 = vadd.xlane.f32.xlu1 %v3522_v31 }
 0xd2d   :  { %v3519_v41 = vsel %vm234_vm2, %v11211_v15, 0.0 }
 0xd2e   :  { %v11213_v40 = vpop.eup %11212  ;;  %3520 = vadd.xlane.f32.xlu0 %v3519_v41 }
 0xd2f   :  { %v3425_v16 = vsel %vm234_vm2, %v11213_v40, 0.0 }
 0xd30   :  { %v11215_v47 = vpop.eup %11214  ;;  %3426 = vadd.xlane.f32.xlu1 %v3425_v16 }
 0xd31   :  { %v3422_v11 = vsel %vm234_vm2, %v11215_v47, 0.0 }
 0xd32   :  { %v11217_v19 = vpop.eup %11216  ;;  %3423 = vadd.xlane.f32.xlu0 %v3422_v11 }
 0xd33   :  { %v3781_v21 = vsel %vm234_vm2, %v11217_v19, 0.0 }
 0xd34   :  { %v11219_v38 = vpop.eup %11218  ;;  %3782 = vadd.xlane.f32.xlu1 %v3781_v21 }
 0xd35   :  { %v3778_v29 = vsel %vm234_vm2, %v11219_v38, 0.0 }
 0xd36   :  { %3779 = vadd.xlane.f32.xlu0 %v3778_v29  ;;  %v9088_v29 = vld [vmem:[%s13457_s5 + $0xc0] sm:$0xff] }
 0xdb5   :  { %v3524_v17 = vpop.xlane.xlu1 %3523 }
 0xdb6   :  { %11220 = vrcp.f32 %v3524_v17  ;;  %v9081_v17 = vld [vmem:[%s13457_s5 + $0x88] sm:$0xff] }
 0xdb7   :  { %v3521_v32 = vpop.xlane.xlu0 %3520 }
 0xdb8   :  { %11222 = vrcp.f32 %v3521_v32 }
 0xdb9   :  { %v3427_v55 = vpop.xlane.xlu1 %3426 }
 0xdba   :  { %11224 = vrcp.f32 %v3427_v55  ;;  %v9089_v55 = vld [vmem:[%s13457_s5 + $0xc8] sm:$0xff] }
 0xdbb   :  { %v3424_v33 = vpop.xlane.xlu0 %3423 }
 0xdbc   :  { %11226 = vrcp.f32 %v3424_v33 }
 0xdbd   :  { %v3783_v34 = vpop.xlane.xlu1 %3782 }
 0xdbe   :  { %11228 = vrcp.f32 %v3783_v34  ;;  %v9100_v34 = vcombine.low %v9081_v17, %v9089_v55 }
 0xdbf   :  { %v3780_v35 = vpop.xlane.xlu0 %3779 }
 0xdc0   :  { %11230 = vrcp.f32 %v3780_v35  ;;  %v9101_v35 = vcombine.high %v9081_v17, %v9089_v55  ;;  %v10912_v17 = vld [vmem:[%s13459_s7 + $0x430] sm:$0xff]   ;;  %v10914_v55 = vld [vmem:[%s13459_s7 + $0x468] sm:$0xff]  }
 0xdc2   :  { %4162 = vmatprep.subr.bf16.mxu0 %v9101_v35  ;;  %v10917_v35 = vld [vmem:[%s13459_s7 + $0x4a8] sm:$0xff]  }
 0xdc3   :  { %v11221_v39 = vpop.eup %11220  ;;  %4163 = vmatpush1.bf16.msra.mxu0 %v9100_v34  ;;  %v10916_v34 = vld [vmem:[%s13459_s7 + $0x428] sm:$0xff]  }
 0xdc4   :  { %v3528_v49 = vmul.f32 %v11221_v39, %v11209_v13  ;;  %v9082_v39 = vld [vmem:[%s13457_s5 + $0x90] sm:$0xff] }
 0xdc5   :  { %v11223_v43 = vpop.eup %11222 }
 0xdc6   :  { %v3527_v45 = vmul.f32 %v11223_v43, %v11211_v15  ;;  %v9090_v43 = vld [vmem:[%s13457_s5 + $0xd0] sm:$0xff] }
 0xdc7   :  { %v11225_v59 = vpop.eup %11224 }
 0xdc8   :  { %10666 = vmatprep.mubr.msk.f32.mxu1 %vm234_vm2, %v3527_v45  ;;  %v3431_v58 = vmul.f32 %v11225_v59, %v11213_v40  ;;  %v9083_v45 = vld [vmem:[%s13457_s5 + $0x98] sm:$0xff]  ;;  %v9103_v59 = vcombine.high %v9082_v39, %v9090_v43 }
 0xdc9   :  { %v11227_v51 = vpop.eup %11226  ;;  %10667 = vmatmul.mubr.msk.f32.vlgmr.msra.gmra.mxu1 %vm234_vm2, %v3528_v49  ;;  %v9102_v49 = vcombine.low %v9082_v39, %v9090_v43  ;;  %v10918_v39 = vld [vmem:[%s13459_s7 + $0x460] sm:$0xff]  }
 0xdca   :  { %10670 = vmatpush3.msra.mxu1 %v12165_v23  ;;  %v3430_v2 = vmul.f32 %v11227_v51, %v11215_v47  ;;  %v9091_v51 = vld [vmem:[%s13457_s5 + $0xd8] sm:$0xff]  ;;  %v10919_v43 = vld [vmem:[%s13459_s7 + $0x4e0] sm:$0xff]  }
 0xdcb   :  { %10671 = vmatprep.subr.mxu1 %v12157_v0  ;;  %v11229_v24 = vpop.eup %11228  ;;  %v9104_v52 = vcombine.low %v9083_v45, %v9091_v51 }
 0xdcc   :  { %10672 = vmatpush3.msra.mxu1 %v12157_v0  ;;  %10673 = vmatprep.mubr.msk.f32.mxu1 %vm234_vm2, %v3430_v2  ;;  %v3787_v23 = vmul.f32 %v11229_v24, %v11217_v19  ;;  %v9105_v2 = vcombine.high %v9083_v45, %v9091_v51  ;;  %v10920_v45 = vld [vmem:[%s13459_s7 + $0x420] sm:$0xff]   ;;  %v10923_v51 = vld [vmem:[%s13459_s7 + $0x4d8] sm:$0xff]  }
 0xdcd   :  { %v11231_v48 = vpop.eup %11230  ;;  %10683 = vmatprep.subr.mxu1 %v3332_v56  ;;  %10674 = vmatmul.mubr.msk.f32.vlgmr.msra.gmra.mxu1 %vm234_vm2, %v3431_v58 }
 0xdce   :  { %10684 = vmatpush3.msra.mxu1 %v3332_v56  ;;  %v3786_v8 = vmul.f32 %v11231_v48, %v11219_v38  ;;  %v9080_v38 = vld [vmem:[%s13457_s5 + $0x80] sm:$0xff]  ;;  %4248 = vmatprep.subr.bf16.mxu0 %v9105_v2  ;;  %v10925_v2 = vld [vmem:[%s13459_s7 + $0x498] sm:$0xff]  }
 0xdcf   :  { %10685 = vmatprep.subr.mxu1 %v3329_v26  ;;  %v9099_v32 = vcombine.high %v9080_v38, %v9088_v29  ;;  %v9098_v33 = vcombine.low %v9080_v38, %v9088_v29  ;;  %v10910_v38 = vld [vmem:[%s13459_s7 + $0x470] sm:$0xff]  }
 0xdd0   :  { %10686 = vmatpush3.msra.mxu1 %v3329_v26  ;;  %10687 = vmatprep.mubr.msk.f32.mxu1 %vm234_vm2, %v3786_v8  ;;  %v10911_v29 = vld [vmem:[%s13459_s7 + $0x4f0] sm:$0xff]  }
 0xdd1   :  { %10688 = vmatmul.mubr.msk.f32.vlgmr.msra.gmra.mxu1 %vm234_vm2, %v3787_v23  ;;  %4119 = vmatprep.subr.bf16.mxu1 %v9099_v32  ;;  %v3910_v23 = vrot.slane %v12207_v18, %v11446_v27  ;;  %v10913_v32 = vld [vmem:[%s13459_s7 + $0x4b0] sm:$0xff]  }
 0xdd2   :  { %4137 = vmatprep.mubr.bf16.mxu1 %v11303_v12  ;;  %4120 = vmatpush1.bf16.msra.mxu1 %v9098_v33  ;;  %v10915_v33 = vld [vmem:[%s13459_s7 + $0x4e8] sm:$0xff]  }
 0xdd3   :  { %4205 = vmatprep.subr.bf16.mxu1 %v9103_v59  ;;  %v10922_v59 = vld [vmem:[%s13459_s7 + $0x458] sm:$0xff]  }
 0xe89   :  { %v10668_v0 = vpop.f32.mrf.mxu1 }
 0xe8b   :  { %v3601_v57 = vpop.f32.mrf.mxu1 }
 0xe8d   :  { %v10675_v62 = vpop.f32.mrf.mxu1 }
 0xe8e   :  { %v3688_v20 = vadd.f32 %v10675_v62, %v10668_v0 }
 0xe8f   :  { %v3682_v63 = vpop.f32.mrf.mxu1 }
 0xe90   :  { %v3683_v61 = vadd.f32 %v3682_v63, %v3601_v57  ;;  %v3916_v63 = vrot.slane %v12207_v18, %v11508_v53  ;;  %v9093_v18 = vld [vmem:[%s13457_s5 + $0xe8] sm:$0xff] }
 0xe91   :  { %v10689_v3 = vpop.f32.mrf.mxu1 }
 0xe92   :  { %v3870_v4 = vadd.f32 %v10689_v3, %v3688_v20 }
 0xe93   :  { %v3860_v36 = vpop.f32.mrf.mxu1 }
 0xe94   :  { %v3876_v60 = vadd.f32 %v3874_v22, %v3870_v4  ;;  %v3869_v50 = vadd.f32 %v3860_v36, %v3683_v61  ;;  %v9084_v61 = vld [vmem:[%s13457_s5 + $0xa0] sm:$0xff] }
 0xe96   :  { %v3875_v6 = vadd.f32 %v3874_v22, %v3869_v50  ;;  %v3878_v30 = vadd.f32 %v3876_v60, %v12127_v28  ;;  %v9092_v60 = vld [vmem:[%s13457_s5 + $0xe0] sm:$0xff]  ;;  %v9085_v50 = vld [vmem:[%s13457_s5 + $0xa8] sm:$0xff] }
 0xe98   :  { %v3882_v9 = vsel %vm234_vm2, %v3878_v30, 0.0  ;;  %v3877_v10 = vadd.f32 %v3875_v6, %v12125_v42 }
 0xe99   :  { %3883 = vadd.xlane.f32.xlu1 %v3882_v9  ;;  %v9109_v9 = vcombine.high %v9085_v50, %v9093_v18 }
 0xe9a   :  { %v3879_v14 = vsel %vm234_vm2, %v3877_v10, 0.0 }
 0xe9b   :  { %3880 = vadd.xlane.f32.xlu0 %v3879_v14  ;;  %v9094_v14 = vld [vmem:[%s13457_s5 + $0xf0] sm:$0xff] }
 0xf22   :  { %v3884_v13 = vpop.xlane.xlu1 %3883 }
 0xf23   :  { %v3886_v31 = vmul.f32 0.11111111, %v3884_v13  ;;  %v9087_v13 = vld [vmem:[%s13457_s5 + $0xb8] sm:$0xff] }
 0xf24   :  { %v3881_v15 = vpop.xlane.xlu0 %3880 }
 0xf25   :  { %v3888_v41 = vsub.f32 %v3878_v30, %v3886_v31  ;;  %v3885_v40 = vmul.f32 0.11111111, %v3881_v15  ;;  %v9107_v30 = vcombine.high %v9084_v61, %v9092_v60  ;;  %v9095_v31 = vld [vmem:[%s13457_s5 + $0xf8] sm:$0xff]  ;;  %v9106_v15 = vcombine.low %v9084_v61, %v9092_v60  ;;  %v12396_v61 = vld [vmem:[%s13458_s6 + $0x10] sm:$0xff] }
 0xf27   :  { %v3887_v16 = vsub.f32 %v3877_v10, %v3885_v40  ;;  %v3890_v47 = vmul.f32 %v11546_v7, %v3888_v41  ;;  %v9086_v10 = vld [vmem:[%s13457_s5 + $0xb0] sm:$0xff]  ;;  %v9108_v41 = vcombine.low %v9085_v50, %v9093_v18  ;;  %v3949_v18 = vrot.slane %v12396_v61, %v11446_v27 }
 0xf28   :  { %v9111_v40 = vcombine.high %v9086_v10, %v9094_v14 }
 0xf29   :  { %v3892_v11 = vmul.f32 %v3890_v47, %v3890_v47  ;;  %v3889_v19 = vmul.f32 %v11546_v7, %v3887_v16  ;;  %v9113_v16 = vcombine.high %v9087_v13, %v9095_v31 }
 0xf2b   :  { %v3896_v28 = vsel %vm234_vm2, %v3892_v11, 0.0  ;;  %v3891_v21 = vmul.f32 %v3889_v19, %v3889_v19  ;;  %v9112_v11 = vcombine.low %v9087_v13, %v9095_v31 }
 0xf2c   :  { %3897 = vadd.xlane.f32.xlu1 %v3896_v28  ;;  %v10907_v28 = vld [vmem:[%s13459_s7 + $0x4f8] sm:$0xff]  }
 0xf2d   :  { %v3893_v42 = vsel %vm234_vm2, %v3891_v21, 0.0  ;;  %v10908_v21 = vld [vmem:[%s13459_s7 + $0x438] sm:$0xff]  }
 0xf2e   :  { %3894 = vadd.xlane.f32.xlu0 %v3893_v42  ;;  %v10909_v42 = vld [vmem:[%s13459_s7 + $0x4b8] sm:$0xff]  }
 0xfb5   :  { %v3898_v56 = vpop.xlane.xlu1 %3897 }
 0xfb6   :  { %v3900_v58 = vmul.f32 0.11111111, %v3898_v56  ;;  %v10926_v56 = vld [vmem:[%s13459_s7 + $0x450] sm:$0xff]  }
 0xfb7   :  { %v3895_v24 = vpop.xlane.xlu0 %3894 }
 0xfb8   :  { %v3902_v48 = vadd.f32 1e-05, %v3900_v58  ;;  %v3899_v26 = vmul.f32 0.11111111, %v3895_v24  ;;  %v10927_v58 = vld [vmem:[%s13459_s7 + $0x4d0] sm:$0xff]  }
 0xfb9   :  { %v10928_v24 = vld [vmem:[%s13459_s7 + $0x410] sm:$0xff]  }
 0xfba   :  { %11232 = vrsqrt.f32 %v3902_v48  ;;  %v3901_v8 = vadd.f32 1e-05, %v3899_v26  ;;  %v10929_v48 = vld [vmem:[%s13459_s7 + $0x490] sm:$0xff]   ;;  %v10930_v26 = vld [vmem:[%s13459_s7 + $0x448] sm:$0xff]  }
 0xfbc   :  { %11234 = vrsqrt.f32 %v3901_v8  ;;  %v10931_v8 = vld [vmem:[%s13459_s7 + $0x4c8] sm:$0xff]  }
 0xfc7   :  { %v11233_v0 = vpop.eup %11232 }
 0xfc8   :  { %v3906_v57 = vmul.f32 %v11233_v0, %v3890_v47  ;;  %v9110_v47 = vcombine.low %v9086_v10, %v9094_v14  ;;  %v10933_v0 = vld [vmem:[%s13459_s7 + $0x488] sm:$0xff]  }
 0xfc9   :  { %v11235_v62 = vpop.eup %11234 }
 0xfca   :  { %v3912_v20 = vmul.f32 %v3910_v23, %v3906_v57  ;;  %v3905_v22 = vmul.f32 %v11235_v62, %v3889_v19  ;;  %v10906_v19 = vld [vmem:[%s13459_s7 + $0x478] sm:$0xff]   ;;  %v10934_v57 = vld [vmem:[%s13459_s7 + $0x440] sm:$0xff]  }
 0xfcb   :  { %v10935_v62 = vld [vmem:[%s13459_s7 + $0x4c0] sm:$0xff]  }
 0xfcc   :  { %v3911_v3 = vmul.f32 %v3910_v23, %v3905_v22  ;;  %v12250_v4 = vadd.f32 %v3916_v63, %v3912_v20  ;;  %v10932_v23 = vld [vmem:[%s13459_s7 + $0x408] sm:$0xff]   ;;  %v10937_v20 = vld [vmem:[%s13459_s7 + $0x480] sm:$0xff]   ;;  %v10938_v22 = vld [vmem:[%s13459_s7 + $0x578] sm:$0xff]  }
 0xfce   :  { %v12252_v36 = vadd.f32 %v3916_v63, %v3911_v3  ;;  %v10936_v63 = vld [vmem:[%s13459_s7 + $0x400] sm:$0xff]   ;;  %v10939_v3 = vld [vmem:[%s13459_s7 + $0x5f8] sm:$0xff]  }
 0xfd0   :  { %v3936_v6 = vpack.c.bf16 %v12250_v4, %v12252_v36 }
 0xfd2   :  { %9114 = vmatmul.mubr.msk.bf16.vlgmr.msra.gmra.mxu1 %vm234_vm2, %v3936_v6  ;;  %9115 = vmatmul.mubr.msk.bf16.vlgmr.msra.gmra.mxu0 %vm234_vm2, %v3936_v6 }
 0xfd3   :  { %4206 = vmatpush1.bf16.msra.mxu1 %v9102_v49  ;;  %4249 = vmatpush1.bf16.msra.mxu0 %v9104_v52  ;;  %v10921_v49 = vld [vmem:[%s13459_s7 + $0x4a0] sm:$0xff]   ;;  %v10924_v52 = vld [vmem:[%s13459_s7 + $0x418] sm:$0xff]  }
 0xfd4   :  { %4223 = vmatprep.mubr.bf16.mxu1 %v11303_v12  ;;  %4266 = vmatprep.mubr.bf16.mxu0 %v11303_v12 }
 0xfd5   :  { %4291 = vmatprep.subr.bf16.mxu1 %v9107_v30  ;;  %4334 = vmatprep.subr.bf16.mxu0 %v9109_v9  ;;  %v3945_v30 = vrot.slane %v12396_v61, %v11438_v25  ;;  %v3953_v9 = vrot.slane %v12396_v61, %v11508_v53 }
 0xfda   :  { %9116 = vmatmul.mubr.msk.bf16.vlgmr.msra.gmra.mxu1 %vm234_vm2, %v3936_v6  ;;  %9117 = vmatmul.mubr.msk.bf16.vlgmr.msra.gmra.mxu0 %vm234_vm2, %v3936_v6 }
 0xfdb   :  { %4292 = vmatpush1.bf16.msra.mxu1 %v9106_v15  ;;  %4335 = vmatpush1.bf16.msra.mxu0 %v9108_v41 }
 0xfdc   :  { %4309 = vmatprep.mubr.bf16.mxu1 %v11303_v12  ;;  %4352 = vmatprep.mubr.bf16.mxu0 %v11303_v12 }
 0xfdd   :  { %4377 = vmatprep.subr.bf16.mxu1 %v9111_v40  ;;  %4420 = vmatprep.subr.bf16.mxu0 %v9113_v16 }
 0xfe2   :  { %9118 = vmatmul.mubr.msk.bf16.vlgmr.msra.gmra.mxu1 %vm234_vm2, %v3936_v6  ;;  %9119 = vmatmul.mubr.msk.bf16.vlgmr.msra.gmra.mxu0 %vm234_vm2, %v3936_v6 }
 0xfe3   :  { %4378 = vmatpush1.bf16.msra.mxu1 %v9110_v47  ;;  %4421 = vmatpush1.bf16.msra.mxu0 %v9112_v11 }
 0xfe4   :  { %4395 = vmatprep.mubr.bf16.mxu1 %v11303_v12  ;;  %4438 = vmatprep.mubr.bf16.mxu0 %v11303_v12 }
 0xfe5   :  { %10202 = vmatprep.subr.bf16.mxu1 %v10906_v19  ;;  %10224 = vmatprep.subr.bf16.mxu0 %v10907_v28 }
 0xfea   :  { %9120 = vmatmul.mubr.msk.bf16.vlgmr.msra.gmra.mxu1 %vm234_vm2, %v3936_v6  ;;  %9121 = vmatmul.mubr.msk.bf16.vlgmr.msra.gmra.mxu0 %vm234_vm2, %v3936_v6  ;;  %v3957_v6 = vrot.slane %v12396_v61, %v11455_v37 }
 0xfeb   :  { %10203 = vmatpush3.bf16.msra.mxu1 %v10908_v21  ;;  %10225 = vmatpush3.bf16.msra.mxu0 %v10909_v42 }
 0xfec   :  { %10204 = vmatprep.subr.bf16.mxu1 %v10910_v38  ;;  %10226 = vmatprep.subr.bf16.mxu0 %v10911_v29 }
 0xfef   :  { %10205 = vmatpush3.bf16.msra.mxu1 %v10912_v17  ;;  %10227 = vmatpush3.bf16.msra.mxu0 %v10913_v32 }
 0xff0   :  { %10206 = vmatprep.subr.bf16.mxu1 %v10914_v55  ;;  %10228 = vmatprep.subr.bf16.mxu0 %v10915_v33  ;;  %v3965_v55 = vrot.slane %v12396_v61, %v11484_v5  ;;  %v3973_v33 = vrot.slane %v12396_v61, %v11474_v54 }
 0xff3   :  { %10207 = vmatpush3.bf16.msra.mxu1 %v10916_v34  ;;  %10229 = vmatpush3.bf16.msra.mxu0 %v10917_v35 }
 0xff4   :  { %10208 = vmatprep.subr.bf16.mxu1 %v10918_v39  ;;  %10230 = vmatprep.subr.bf16.mxu0 %v10919_v43 }
 0xff7   :  { %10209 = vmatpush3.bf16.msra.mxu1 %v10920_v45  ;;  %10231 = vmatpush3.bf16.msra.mxu0 %v10921_v49 }
 0xff8   :  { %10210 = vmatprep.subr.bf16.mxu1 %v10922_v59  ;;  %10232 = vmatprep.subr.bf16.mxu0 %v10923_v51 }
 0xffb   :  { %10211 = vmatpush3.bf16.msra.mxu1 %v10924_v52  ;;  %10233 = vmatpush3.bf16.msra.mxu0 %v10925_v2 }
 0xffc   :  { %10212 = vmatprep.subr.bf16.mxu1 %v10926_v56  ;;  %10234 = vmatprep.subr.bf16.mxu0 %v10927_v58  ;;  %v10940_v56 = vld [vmem:[%s13459_s7 + $0x538] sm:$0xff]  }
 0xffd   :  { %v10941_v58 = vld [vmem:[%s13459_s7 + $0x5b8] sm:$0xff]  }
 0xfff   :  { %10213 = vmatpush3.bf16.msra.mxu1 %v10928_v24  ;;  %10235 = vmatpush3.bf16.msra.mxu0 %v10929_v48 }
0x1000   :  { %10214 = vmatprep.subr.bf16.mxu1 %v10930_v26  ;;  %10236 = vmatprep.subr.bf16.mxu0 %v10931_v8 }
0x1003   :  { %10215 = vmatpush3.bf16.msra.mxu1 %v10932_v23  ;;  %10237 = vmatpush3.bf16.msra.mxu0 %v10933_v0  ;;  %v10942_v23 = vld [vmem:[%s13459_s7 + $0x570] sm:$0xff]  }
0x1004   :  { %10216 = vmatprep.subr.bf16.mxu1 %v10934_v57  ;;  %10238 = vmatprep.subr.bf16.mxu0 %v10935_v62  ;;  %v10943_v0 = vld [vmem:[%s13459_s7 + $0x5f0] sm:$0xff]  }
0x1007   :  { %10217 = vmatpush3.bf16.msra.mxu1 %v10936_v63  ;;  %10239 = vmatpush3.bf16.msra.mxu0 %v10937_v20 }
0x1008   :  { %10246 = vmatprep.subr.bf16.mxu1 %v10938_v22  ;;  %10268 = vmatprep.subr.bf16.mxu0 %v10939_v3 }
0x1092   :  { %v4139_v60 = vpop.f32.mrf.mxu1  ;;  %v4182_v50 = vpop.f32.mrf.mxu0 }
0x1093   :  { %v4140_v47 = vadd.f32 %v4139_v60, %v3945_v30  ;;  %v4183_v11 = vadd.f32 %v4182_v50, %v3953_v9  ;;  %v10944_v60 = vld [vmem:[%s13459_s7 + $0x530] sm:$0xff]  }
0x1094   :  { %v4141_v10 = vpop.f32.mrf.mxu1  ;;  %v4184_v14 = vpop.f32.mrf.mxu0  ;;  %v10945_v50 = vld [vmem:[%s13459_s7 + $0x5b0] sm:$0xff]  }
0x1095   :  { %v4142_v15 = vadd.f32 %v4141_v10, %v3949_v18  ;;  %v4185_v41 = vadd.f32 %v4184_v14, %v3957_v6  ;;  %v4449_v45 = vmax.f32 %v4140_v47, 0.0  ;;  %v4451_v49 = vmax.f32 %v4183_v11, 0.0  ;;  %v10947_v14 = vld [vmem:[%s13459_s7 + $0x5e8] sm:$0xff]   ;;  %v10952_v11 = vld [vmem:[%s13459_s7 + $0x520] sm:$0xff]  }
0x1096   :  { %v4143_v13 = vpop.f32.mrf.mxu1  ;;  %v4186_v31 = vpop.f32.mrf.mxu0 }
0x1097   :  { %v4144_v40 = vadd.f32 %v4143_v13, %v3945_v30  ;;  %v4187_v16 = vadd.f32 %v4186_v31, %v3953_v9  ;;  %v4450_v34 = vmax.f32 %v4142_v15, 0.0  ;;  %v4452_v35 = vmax.f32 %v4185_v41, 0.0  ;;  %v10948_v15 = vld [vmem:[%s13459_s7 + $0x528] sm:$0xff]  }
0x1098   :  { %v4145_v19 = vpop.f32.mrf.mxu1  ;;  %v4188_v28 = vpop.f32.mrf.mxu0  ;;  %v10949_v41 = vld [vmem:[%s13459_s7 + $0x5a8] sm:$0xff]  }
0x1099   :  { %v4146_v21 = vadd.f32 %v4145_v19, %v3949_v18  ;;  %v4189_v42 = vadd.f32 %v4188_v28, %v3957_v6  ;;  %v4465_v38 = vmax.f32 %v4144_v40, 0.0  ;;  %v4467_v29 = vmax.f32 %v4187_v16, 0.0  ;;  %v10946_v18 = vld [vmem:[%s13459_s7 + $0x568] sm:$0xff]   ;;  %v10950_v40 = vld [vmem:[%s13459_s7 + $0x560] sm:$0xff]  }
0x109a   :  { %v12406_v17 = vpop.f32.mrf.mxu1  ;;  %v12408_v32 = vpop.f32.mrf.mxu0  ;;  %v10951_v16 = vld [vmem:[%s13459_s7 + $0x5e0] sm:$0xff]  }
0x109b   :  { %v4466_v39 = vmax.f32 %v4146_v21, 0.0  ;;  %v4468_v43 = vmax.f32 %v4189_v42, 0.0  ;;  %v4738_v24 = vpack.c.bf16 %v4465_v38, %v4449_v45  ;;  %v4740_v48 = vpack.c.bf16 %v4467_v29, %v4451_v49  ;;  %v10953_v28 = vld [vmem:[%s13459_s7 + $0x5a0] sm:$0xff]   ;;  %v10954_v21 = vld [vmem:[%s13459_s7 + $0x558] sm:$0xff]   ;;  %v10961_v49 = vld [vmem:[%s13459_s7 + $0x590] sm:$0xff]  }
0x109c   :  { %v4227_v59 = vpop.f32.mrf.mxu1  ;;  %v4270_v51 = vpop.f32.mrf.mxu0  ;;  %v10955_v42 = vld [vmem:[%s13459_s7 + $0x5d8] sm:$0xff]  }
0x109d   :  { %v4739_v52 = vpack.c.bf16 %v4466_v39, %v4450_v34  ;;  %v4741_v2 = vpack.c.bf16 %v4468_v43, %v4452_v35  ;;  %v4228_v57 = vadd.f32 %v4227_v59, %v3965_v55  ;;  %v4271_v62 = vadd.f32 %v4270_v51, %v3973_v33  ;;  %v10956_v29 = vld [vmem:[%s13459_s7 + $0x518] sm:$0xff]   ;;  %v10958_v34 = vld [vmem:[%s13459_s7 + $0x550] sm:$0xff]   ;;  %v10962_v59 = vld [vmem:[%s13459_s7 + $0x548] sm:$0xff]  }
0x109e   :  { %v12420_v26 = vpop.f32.mrf.mxu1  ;;  %v12422_v8 = vpop.f32.mrf.mxu0  ;;  %v10959_v35 = vld [vmem:[%s13459_s7 + $0x5d0] sm:$0xff]   ;;  %v10963_v51 = vld [vmem:[%s13459_s7 + $0x5c8] sm:$0xff]  }
0x109f   :  { %5558 = vmatprep.mubr.bf16.mxu1 %v4739_v52  ;;  %5599 = vmatprep.mubr.bf16.mxu0 %v4741_v2  ;;  %v4454_v6 = vmax.f32 %v4228_v57, 0.0  ;;  %v4456_v30 = vmax.f32 %v4271_v62, 0.0  ;;  %v10960_v43 = vld [vmem:[%s13459_s7 + $0x510] sm:$0xff]   ;;  %v3961_v52 = vrot.slane %v12396_v61, %v11465_v46  ;;  %v3969_v2 = vrot.slane %v12396_v61, %v11462_v44  ;;  %v10965_v61 = vld [vmem:[%s13459_s7 + $0x588] sm:$0xff]   ;;  %v10966_v57 = vld [vmem:[%s13459_s7 + $0x540] sm:$0xff]  }
0x10a0   :  { %v4231_v63 = vpop.f32.mrf.mxu1  ;;  %v4274_v20 = vpop.f32.mrf.mxu0  ;;  %5559 = vmatmul.mubr.bf16.vlgmr.msra.gmra.mxu1 %v4738_v24  ;;  %5600 = vmatmul.mubr.bf16.vlgmr.msra.gmra.mxu0 %v4740_v48  ;;  %v10964_v24 = vld [vmem:[%s13459_s7 + $0x508] sm:$0xff]  }
0x10a1   :  { %v4232_v22 = vadd.f32 %v4231_v63, %v3965_v55  ;;  %v4275_v3 = vadd.f32 %v4274_v20, %v3973_v33  ;;  %10247 = vmatpush3.bf16.msra.mxu1 %v10940_v56  ;;  %10269 = vmatpush3.bf16.msra.mxu0 %v10941_v58  ;;  %v10957_v33 = vld [vmem:[%s13459_s7 + $0x598] sm:$0xff]   ;;  %v4230_v48 = vadd.f32 %v12420_v26, %v3961_v52  ;;  %v10967_v26 = vld [vmem:[%s13459_s7 + $0x5c0] sm:$0xff]  }
0x10a2   :  { %10248 = vmatprep.subr.bf16.mxu1 %v10942_v23  ;;  %10270 = vmatprep.subr.bf16.mxu0 %v10943_v0  ;;  %v12454_v47 = vpop.f32.mrf.mxu1  ;;  %v12459_v19 = vpop.f32.mrf.mxu0  ;;  %v12505_v56 = vld [vmem:[%s13458_s6 + $0x18] sm:$0xff]  ;;  %v4273_v62 = vadd.f32 %v12422_v8, %v3969_v2  ;;  %v4226_v20 = vadd.f32 %v12406_v17, %v3961_v52 }
0x10a3   :  { %v4470_v9 = vmax.f32 %v4232_v22, 0.0  ;;  %v4472_v10 = vmax.f32 %v4275_v3, 0.0  ;;  %v3981_v23 = vrot.slane %v12505_v56, %v11446_v27  ;;  %v3989_v63 = vrot.slane %v12505_v56, %v11455_v37  ;;  %v10970_v17 = vld [vmem:[%s13459_s7 + $0x678] sm:$0xff]  }
0x10a4   :  { %v4313_v38 = vpop.f32.mrf.mxu1  ;;  %v4356_v55 = vpop.f32.mrf.mxu0  ;;  %v4269_v3 = vadd.f32 %v12408_v32, %v3969_v2  ;;  %v4469_v8 = vmax.f32 %v4230_v48, 0.0  ;;  %v10984_v2 = vld [vmem:[%s13459_s7 + $0x620] sm:$0xff]   ;;  %v10986_v48 = vld [vmem:[%s13459_s7 + $0x658] sm:$0xff]  }
0x10a5   :  { %v4743_v13 = vpack.c.bf16 %v4470_v9, %v4454_v6  ;;  %v4745_v31 = vpack.c.bf16 %v4472_v10, %v4456_v30  ;;  %10249 = vmatpush3.bf16.msra.mxu1 %v10944_v60  ;;  %10271 = vmatpush3.bf16.msra.mxu0 %v10945_v50  ;;  %v10968_v50 = vld [vmem:[%s13459_s7 + $0x500] sm:$0xff]   ;;  %v4471_v30 = vmax.f32 %v4273_v62, 0.0  ;;  %v4357_v32 = vadd.f32 %v4356_v55, %v3989_v63  ;;  %v10971_v9 = vld [vmem:[%s13459_s7 + $0x6f8] sm:$0xff]   ;;  %v10976_v55 = vld [vmem:[%s13459_s7 + $0x630] sm:$0xff]  }
0x10a6   :  { %10250 = vmatprep.subr.bf16.mxu1 %v10946_v18  ;;  %10272 = vmatprep.subr.bf16.mxu0 %v10947_v14  ;;  %v12482_v39 = vpop.f32.mrf.mxu1  ;;  %v12487_v45 = vpop.f32.mrf.mxu0  ;;  %v4314_v18 = vadd.f32 %v4313_v38, %v3981_v23  ;;  %v10969_v6 = vld [vmem:[%s13459_s7 + $0x580] sm:$0xff]   ;;  %v4453_v10 = vmax.f32 %v4226_v20, 0.0  ;;  %v10975_v38 = vld [vmem:[%s13459_s7 + $0x6f0] sm:$0xff]   ;;  %v10989_v62 = vld [vmem:[%s13459_s7 + $0x698] sm:$0xff]  }
0x10a7   :  { %5640 = vmatprep.mubr.bf16.mxu1 %v4743_v13  ;;  %5681 = vmatprep.mubr.bf16.mxu0 %v4745_v31  ;;  %v4455_v13 = vmax.f32 %v4269_v3, 0.0 }
0x10a8   :  { %v4317_v58 = vpop.f32.mrf.mxu1  ;;  %v4360_v0 = vpop.f32.mrf.mxu0 }
0x10a9   :  { %10251 = vmatpush3.bf16.msra.mxu1 %v10948_v15  ;;  %10273 = vmatpush3.bf16.msra.mxu0 %v10949_v41  ;;  %v4318_v22 = vadd.f32 %v4317_v58, %v3981_v23  ;;  %v4361_v60 = vadd.f32 %v4360_v0, %v3989_v63  ;;  %v10972_v15 = vld [vmem:[%s13459_s7 + $0x638] sm:$0xff]   ;;  %v4742_v41 = vpack.c.bf16 %v4469_v8, %v4453_v10  ;;  %v10990_v63 = vld [vmem:[%s13459_s7 + $0x650] sm:$0xff]   ;;  %v10995_v8 = vld [vmem:[%s13459_s7 + $0x6c8] sm:$0xff]  }
0x10aa   :  { %10252 = vmatprep.subr.bf16.mxu1 %v10950_v40  ;;  %10274 = vmatprep.subr.bf16.mxu0 %v10951_v16  ;;  %v4458_v40 = vmax.f32 %v4314_v18, 0.0  ;;  %v10973_v16 = vld [vmem:[%s13459_s7 + $0x6b8] sm:$0xff]   ;;  %v12575_v52 = vpop.f32.mrf.mxu1  ;;  %v12580_v58 = vpop.f32.mrf.mxu0  ;;  %v3977_v18 = vrot.slane %v12505_v56, %v11438_v25 }
0x10ab   :  { %v4474_v14 = vmax.f32 %v4318_v22, 0.0  ;;  %v4476_v31 = vmax.f32 %v4361_v60, 0.0  ;;  %v10987_v23 = vld [vmem:[%s13459_s7 + $0x6d8] sm:$0xff]   ;;  %v10992_v22 = vld [vmem:[%s13459_s7 + $0x610] sm:$0xff]  }
0x10ac   :  { %v4399_v0 = vpop.f32.mrf.mxu1  ;;  %v10993_v60 = vld [vmem:[%s13459_s7 + $0x690] sm:$0xff]  }
0x10ad   :  { %10253 = vmatpush3.bf16.msra.mxu1 %v10952_v11  ;;  %10275 = vmatpush3.bf16.msra.mxu0 %v10953_v28  ;;  %v4744_v11 = vpack.c.bf16 %v4471_v30, %v4455_v13  ;;  %v4460_v28 = vmax.f32 %v4357_v32, 0.0  ;;  %v10996_v30 = vld [vmem:[%s13459_s7 + $0x608] sm:$0xff]   ;;  %v4316_v32 = vadd.f32 %v12482_v39, %v3977_v18  ;;  %v10998_v13 = vld [vmem:[%s13459_s7 + $0x640] sm:$0xff]  }
0x10ae   :  { %10254 = vmatprep.subr.bf16.mxu1 %v10954_v21  ;;  %10276 = vmatprep.subr.bf16.mxu0 %v10955_v42  ;;  %v10974_v21 = vld [vmem:[%s13459_s7 + $0x670] sm:$0xff]   ;;  %v4747_v42 = vpack.c.bf16 %v4474_v14, %v4458_v40  ;;  %v12603_v20 = vpop.f32.mrf.mxu1  ;;  %v10997_v14 = vld [vmem:[%s13459_s7 + $0x688] sm:$0xff]   ;;  %v10999_v39 = vld [vmem:[%s13459_s7 + $0x6c0] sm:$0xff]  }
0x10b1   :  { %10255 = vmatpush3.bf16.msra.mxu1 %v10956_v29  ;;  %10277 = vmatpush3.bf16.msra.mxu0 %v10957_v33  ;;  %v4749_v29 = vpack.c.bf16 %v4476_v31, %v4460_v28  ;;  %v10977_v33 = vld [vmem:[%s13459_s7 + $0x6b0] sm:$0xff]   ;;  %v11000_v28 = vld [vmem:[%s13459_s7 + $0x600] sm:$0xff]  }
0x10b2   :  { %10256 = vmatprep.subr.bf16.mxu1 %v10958_v34  ;;  %10278 = vmatprep.subr.bf16.mxu0 %v10959_v35  ;;  %v10978_v34 = vld [vmem:[%s13459_s7 + $0x668] sm:$0xff]  }
0x10b3   :  { %v10979_v35 = vld [vmem:[%s13459_s7 + $0x6e8] sm:$0xff]  }
0x10b5   :  { %10257 = vmatpush3.bf16.msra.mxu1 %v10960_v43  ;;  %10279 = vmatpush3.bf16.msra.mxu0 %v10961_v49  ;;  %v10980_v43 = vld [vmem:[%s13459_s7 + $0x628] sm:$0xff]  }
0x10b6   :  { %10258 = vmatprep.subr.bf16.mxu1 %v10962_v59  ;;  %10280 = vmatprep.subr.bf16.mxu0 %v10963_v51  ;;  %v10981_v49 = vld [vmem:[%s13459_s7 + $0x6a8] sm:$0xff]   ;;  %v10982_v59 = vld [vmem:[%s13459_s7 + $0x660] sm:$0xff]  }
0x10b7   :  { %v10983_v51 = vld [vmem:[%s13459_s7 + $0x6e0] sm:$0xff]  }
0x10b9   :  { %10259 = vmatpush3.bf16.msra.mxu1 %v10964_v24  ;;  %10281 = vmatpush3.bf16.msra.mxu0 %v10965_v61  ;;  %v10985_v24 = vld [vmem:[%s13459_s7 + $0x6a0] sm:$0xff]   ;;  %v10988_v61 = vld [vmem:[%s13459_s7 + $0x618] sm:$0xff]  }
0x10ba   :  { %10260 = vmatprep.subr.bf16.mxu1 %v10966_v57  ;;  %10282 = vmatprep.subr.bf16.mxu0 %v10967_v26  ;;  %v4442_v57 = vpop.f32.mrf.mxu0  ;;  %v10991_v26 = vld [vmem:[%s13459_s7 + $0x6d0] sm:$0xff]  }
0x10bc   :  { %v12608_v3 = vpop.f32.mrf.mxu0 }
0x10bd   :  { %10261 = vmatpush3.bf16.msra.mxu1 %v10968_v50  ;;  %10283 = vmatpush3.bf16.msra.mxu0 %v10969_v6  ;;  %v10994_v50 = vld [vmem:[%s13459_s7 + $0x648] sm:$0xff]   ;;  %v3985_v6 = vrot.slane %v12505_v56, %v11508_v53 }
0x10be   :  { %10290 = vmatprep.subr.bf16.mxu1 %v10970_v17  ;;  %10312 = vmatprep.subr.bf16.mxu0 %v10971_v9  ;;  %v4403_v17 = vpop.f32.mrf.mxu1  ;;  %v3997_v9 = vrot.slane %v12505_v56, %v11484_v5  ;;  %v4446_v10 = vpop.f32.mrf.mxu0 }
0x10bf   :  { %v4359_v31 = vadd.f32 %v12487_v45, %v3985_v6  ;;  %v4473_v45 = vmax.f32 %v4316_v32, 0.0  ;;  %v11020_v32 = vld [vmem:[%s13459_s7 + $0x718] sm:$0xff]  }
0x10c0   :  { %5641 = vmatmul.mubr.bf16.vlgmr.msra.gmra.mxu1 %v4742_v41  ;;  %5682 = vmatmul.mubr.bf16.vlgmr.msra.gmra.mxu0 %v4744_v11  ;;  %v4312_v41 = vadd.f32 %v12454_v47, %v3977_v18  ;;  %v4404_v40 = vadd.f32 %v4403_v17, %v3997_v9  ;;  %v11002_v47 = vld [vmem:[%s13459_s7 + $0x778] sm:$0xff]   ;;  %v11016_v18 = vld [vmem:[%s13459_s7 + $0x720] sm:$0xff]  }
0x10c1   :  { %10291 = vmatpush3.bf16.msra.mxu1 %v10972_v15  ;;  %5722 = vmatprep.mubr.bf16.mxu1 %v4747_v42  ;;  %v4005_v15 = vrot.slane %v12505_v56, %v11474_v54  ;;  %v11001_v42 = vld [vmem:[%s13459_s7 + $0x680] sm:$0xff]   ;;  %v11018_v17 = vld [vmem:[%s13459_s7 + $0x758] sm:$0xff]  }
0x10c2   :  { %10313 = vmatpush3.bf16.msra.mxu0 %v10973_v16  ;;  %5763 = vmatprep.mubr.bf16.mxu0 %v4749_v29  ;;  %v4355_v16 = vadd.f32 %v12459_v19, %v3985_v6  ;;  %v11003_v29 = vld [vmem:[%s13459_s7 + $0x7f8] sm:$0xff]   ;;  %v11017_v6 = vld [vmem:[%s13459_s7 + $0x7a0] sm:$0xff]  }
0x10c3   :  { %10292 = vmatprep.subr.bf16.mxu1 %v10974_v21  ;;  %10314 = vmatprep.subr.bf16.mxu0 %v10975_v38  ;;  %v4447_v11 = vadd.f32 %v4446_v10, %v4005_v15  ;;  %v4400_v21 = vadd.f32 %v4399_v0, %v3997_v9  ;;  %v4475_v38 = vmax.f32 %v4359_v31, 0.0  ;;  %v4443_v19 = vadd.f32 %v4442_v57, %v4005_v15  ;;  %v11007_v0 = vld [vmem:[%s13459_s7 + $0x7f0] sm:$0xff]   ;;  %v11021_v9 = vld [vmem:[%s13459_s7 + $0x798] sm:$0xff]   ;;  %v11026_v15 = vld [vmem:[%s13459_s7 + $0x748] sm:$0xff]  }
0x10c4   :  { %v11008_v57 = vld [vmem:[%s13459_s7 + $0x730] sm:$0xff]  }
0x10c5   :  { %10293 = vmatpush3.bf16.msra.mxu1 %v10976_v55  ;;  %v4457_v55 = vmax.f32 %v4312_v41, 0.0  ;;  %v11022_v10 = vld [vmem:[%s13459_s7 + $0x750] sm:$0xff]   ;;  %v3993_v41 = vrot.slane %v12505_v56, %v11465_v46 }
0x10c6   :  { %10315 = vmatpush3.bf16.msra.mxu0 %v10977_v33  ;;  %10294 = vmatprep.subr.bf16.mxu1 %v10978_v34  ;;  %v4478_v33 = vmax.f32 %v4404_v40, 0.0  ;;  %v4459_v34 = vmax.f32 %v4355_v16, 0.0  ;;  %v11025_v31 = vld [vmem:[%s13459_s7 + $0x790] sm:$0xff]   ;;  %v4001_v40 = vrot.slane %v12505_v56, %v11462_v44  ;;  %v11028_v16 = vld [vmem:[%s13459_s7 + $0x708] sm:$0xff]   ;;  %v11031_v56 = vld [vmem:[%s13459_s7 + $0x7c0] sm:$0xff]  }
0x10c7   :  { %10316 = vmatprep.subr.bf16.mxu0 %v10979_v35  ;;  %v4480_v35 = vmax.f32 %v4447_v11, 0.0  ;;  %v4402_v11 = vadd.f32 %v12603_v20, %v3993_v41 }
0x10c8   :  { %v4441_v20 = vadd.f32 %v12580_v58, %v4001_v40 }
0x10c9   :  { %10295 = vmatpush3.bf16.msra.mxu1 %v10980_v43  ;;  %v11004_v43 = vld [vmem:[%s13459_s7 + $0x738] sm:$0xff]  }
0x10ca   :  { %10317 = vmatpush3.bf16.msra.mxu0 %v10981_v49  ;;  %10296 = vmatprep.subr.bf16.mxu1 %v10982_v59  ;;  %v4746_v49 = vpack.c.bf16 %v4473_v45, %v4457_v55  ;;  %v4462_v59 = vmax.f32 %v4400_v21, 0.0  ;;  %v11030_v45 = vld [vmem:[%s13459_s7 + $0x740] sm:$0xff]   ;;  %v4445_v21 = vadd.f32 %v12608_v3, %v4001_v40  ;;  %v4463_v55 = vmax.f32 %v4441_v20, 0.0 }
0x10cb   :  { %10318 = vmatprep.subr.bf16.mxu0 %v10983_v51  ;;  %v11005_v51 = vld [vmem:[%s13459_s7 + $0x7b8] sm:$0xff]   ;;  %v11033_v3 = vld [vmem:[%s13459_s7 + $0x780] sm:$0xff]  }
0x10cd   :  { %10297 = vmatpush3.bf16.msra.mxu1 %v10984_v2  ;;  %v4748_v2 = vpack.c.bf16 %v4475_v38, %v4459_v34  ;;  %v4477_v38 = vmax.f32 %v4402_v11, 0.0 }
0x10ce   :  { %10319 = vmatpush3.bf16.msra.mxu0 %v10985_v24  ;;  %10298 = vmatprep.subr.bf16.mxu1 %v10986_v48  ;;  %v4464_v24 = vmax.f32 %v4443_v19, 0.0  ;;  %v11006_v48 = vld [vmem:[%s13459_s7 + $0x770] sm:$0xff]   ;;  %v4479_v19 = vmax.f32 %v4445_v21, 0.0 }
0x10cf   :  { %10320 = vmatprep.subr.bf16.mxu0 %v10987_v23  ;;  %v4751_v23 = vpack.c.bf16 %v4478_v33, %v4462_v59 }
0x10d0   :  { %v4752_v58 = vpack.c.bf16 %v4479_v19, %v4463_v55 }
0x10d1   :  { %10299 = vmatpush3.bf16.msra.mxu1 %v10988_v61  ;;  %v4753_v61 = vpack.c.bf16 %v4480_v35, %v4464_v24 }
0x10d2   :  { %10321 = vmatpush3.bf16.msra.mxu0 %v10989_v62  ;;  %10300 = vmatprep.subr.bf16.mxu1 %v10990_v63  ;;  %v11009_v62 = vld [vmem:[%s13459_s7 + $0x7b0] sm:$0xff]   ;;  %v11010_v63 = vld [vmem:[%s13459_s7 + $0x768] sm:$0xff]  }
0x10d3   :  { %10322 = vmatprep.subr.bf16.mxu0 %v10991_v26  ;;  %v11011_v26 = vld [vmem:[%s13459_s7 + $0x7e8] sm:$0xff]  }
0x10d5   :  { %10301 = vmatpush3.bf16.msra.mxu1 %v10992_v22  ;;  %v11012_v22 = vld [vmem:[%s13459_s7 + $0x728] sm:$0xff]  }
0x10d6   :  { %10323 = vmatpush3.bf16.msra.mxu0 %v10993_v60  ;;  %10302 = vmatprep.subr.bf16.mxu1 %v10994_v50  ;;  %v11013_v60 = vld [vmem:[%s13459_s7 + $0x7a8] sm:$0xff]   ;;  %v11014_v50 = vld [vmem:[%s13459_s7 + $0x760] sm:$0xff]  }
0x10d7   :  { %10324 = vmatprep.subr.bf16.mxu0 %v10995_v8  ;;  %v11015_v8 = vld [vmem:[%s13459_s7 + $0x7e0] sm:$0xff]  }
0x10d9   :  { %10303 = vmatpush3.bf16.msra.mxu1 %v10996_v30  ;;  %v11019_v30 = vld [vmem:[%s13459_s7 + $0x7d8] sm:$0xff]  }
0x10da   :  { %10325 = vmatpush3.bf16.msra.mxu0 %v10997_v14  ;;  %10304 = vmatprep.subr.bf16.mxu1 %v10998_v13  ;;  %v11023_v14 = vld [vmem:[%s13459_s7 + $0x7d0] sm:$0xff]  }
0x10db   :  { %10326 = vmatprep.subr.bf16.mxu0 %v10999_v39  ;;  %v11024_v13 = vld [vmem:[%s13459_s7 + $0x710] sm:$0xff]   ;;  %v11027_v39 = vld [vmem:[%s13459_s7 + $0x7c8] sm:$0xff]  }
0x10dd   :  { %10305 = vmatpush3.bf16.msra.mxu1 %v11000_v28  ;;  %v11029_v28 = vld [vmem:[%s13459_s7 + $0x788] sm:$0xff]  }
0x10de   :  { %10327 = vmatpush3.bf16.msra.mxu0 %v11001_v42  ;;  %10334 = vmatprep.subr.bf16.mxu1 %v11002_v47  ;;  %v4398_v42 = vadd.f32 %v12575_v52, %v3993_v41  ;;  %v11032_v47 = vld [vmem:[%s13459_s7 + $0x700] sm:$0xff]  }
0x10df   :  { %10356 = vmatprep.subr.bf16.mxu0 %v11003_v29 }
0x10e0   :  { %5723 = vmatmul.mubr.bf16.vlgmr.msra.gmra.mxu1 %v4746_v49  ;;  %v4461_v29 = vmax.f32 %v4398_v42, 0.0 }
0x10e1   :  { %5764 = vmatmul.mubr.bf16.vlgmr.msra.gmra.mxu0 %v4748_v2  ;;  %10335 = vmatpush3.bf16.msra.mxu1 %v11004_v43 }
0x10e2   :  { %5804 = vmatprep.mubr.bf16.mxu1 %v4751_v23  ;;  %10357 = vmatpush3.bf16.msra.mxu0 %v11005_v51  ;;  %v4750_v52 = vpack.c.bf16 %v4477_v38, %v4461_v29 }
0x10e3   :  { %5845 = vmatprep.mubr.bf16.mxu0 %v4753_v61  ;;  %10336 = vmatprep.subr.bf16.mxu1 %v11006_v48 }
0x10e4   :  { %10358 = vmatprep.subr.bf16.mxu0 %v11007_v0 }
0x10e5   :  { %10337 = vmatpush3.bf16.msra.mxu1 %v11008_v57 }
0x10e6   :  { %10359 = vmatpush3.bf16.msra.mxu0 %v11009_v62  ;;  %10338 = vmatprep.subr.bf16.mxu1 %v11010_v63  ;;  %v12758_v63 = vld [vmem:[%s13460_s8 + $0x8] sm:$0xff] }
0x10e7   :  { %10360 = vmatprep.subr.bf16.mxu0 %v11011_v26  ;;  %v4757_v26 = vrot.slane %v12758_v63, %v11455_v37 }
0x10e9   :  { %10339 = vmatpush3.bf16.msra.mxu1 %v11012_v22 }
0x10ea   :  { %10361 = vmatpush3.bf16.msra.mxu0 %v11013_v60  ;;  %10340 = vmatprep.subr.bf16.mxu1 %v11014_v50 }
0x10eb   :  { %10362 = vmatprep.subr.bf16.mxu0 %v11015_v8 }
0x10ed   :  { %10341 = vmatpush3.bf16.msra.mxu1 %v11016_v18 }
0x10ee   :  { %10363 = vmatpush3.bf16.msra.mxu0 %v11017_v6  ;;  %10342 = vmatprep.subr.bf16.mxu1 %v11018_v17 }
0x10ef   :  { %10364 = vmatprep.subr.bf16.mxu0 %v11019_v30 }
0x10f1   :  { %10343 = vmatpush3.bf16.msra.mxu1 %v11020_v32 }
0x10f2   :  { %10365 = vmatpush3.bf16.msra.mxu0 %v11021_v9  ;;  %10344 = vmatprep.subr.bf16.mxu1 %v11022_v10 }
0x10f3   :  { %10366 = vmatprep.subr.bf16.mxu0 %v11023_v14 }
0x10f5   :  { %10345 = vmatpush3.bf16.msra.mxu1 %v11024_v13 }
0x10f6   :  { %10367 = vmatpush3.bf16.msra.mxu0 %v11025_v31  ;;  %10346 = vmatprep.subr.bf16.mxu1 %v11026_v15 }
0x10f7   :  { %10368 = vmatprep.subr.bf16.mxu0 %v11027_v39 }
0x10f9   :  { %10347 = vmatpush3.bf16.msra.mxu1 %v11028_v16 }
0x10fa   :  { %10369 = vmatpush3.bf16.msra.mxu0 %v11029_v28  ;;  %10348 = vmatprep.subr.bf16.mxu1 %v11030_v45 }
0x10fb   :  { %10370 = vmatprep.subr.bf16.mxu0 %v11031_v56 }
0x10fd   :  { %10349 = vmatpush3.bf16.msra.mxu1 %v11032_v47 }
0x10fe   :  { %10371 = vmatpush3.bf16.msra.mxu0 %v11033_v3 }
0x1100   :  { %5805 = vmatmul.mubr.bf16.vlgmr.msra.gmra.mxu1 %v4750_v52 }
0x1101   :  { %5846 = vmatmul.mubr.bf16.vlgmr.msra.gmra.mxu0 %v4752_v58  ;;  %6041 = vmatprep.mubr.bf16.mxu1 %v11303_v12 }
0x1102   :  { %6084 = vmatprep.mubr.bf16.mxu0 %v11303_v12 }
0x1160   :  { %v10218_v33 = vpop.f32.mrf.mxu1  ;;  %v10240_v34 = vpop.f32.mrf.mxu0 }
0x1162   :  { %v10219_v35 = vpop.f32.mrf.mxu1  ;;  %v10241_v43 = vpop.f32.mrf.mxu0 }
0x1163   :  { %v10220_v22 = vadd.f32 %v10219_v35, %v10218_v33  ;;  %v10242_v30 = vadd.f32 %v10241_v43, %v10240_v34 }
0x1164   :  { %v10221_v49 = vpop.f32.mrf.mxu1  ;;  %v10243_v59 = vpop.f32.mrf.mxu0 }
0x1165   :  { %v5561_v8 = vadd.f32 %v10220_v22, %v4757_v26 }
0x1166   :  { %v10222_v51 = vpop.f32.mrf.mxu1  ;;  %v10244_v24 = vpop.f32.mrf.mxu0 }
0x1167   :  { %v10223_v18 = vadd.f32 %v10222_v51, %v10221_v49  ;;  %v5602_v9 = vadd.f32 %v10242_v30, %v5561_v8  ;;  %v10245_v31 = vadd.f32 %v10244_v24, %v10243_v59 }
0x1169   :  { %v5564_v10 = vadd.f32 %v10223_v18, %v4757_v26 }
0x116b   :  { %v5605_v41 = vadd.f32 %v10245_v31, %v5564_v10  ;;  %v11034_v31 = vld [vmem:[%s13455_s3 + $0x90] ss:$36 sps:$4 sm:$0xff]  }
0x1180   :  { %v10262_v2 = vpop.f32.mrf.mxu1  ;;  %v10284_v48 = vpop.f32.mrf.mxu0 }
0x1182   :  { %v10263_v23 = vpop.f32.mrf.mxu1  ;;  %v10285_v0 = vpop.f32.mrf.mxu0 }
0x1183   :  { %v10264_v32 = vadd.f32 %v10263_v23, %v10262_v2  ;;  %v10286_v40 = vadd.f32 %v10285_v0, %v10284_v48 }
0x1184   :  { %v10265_v61 = vpop.f32.mrf.mxu1  ;;  %v10287_v57 = vpop.f32.mrf.mxu0 }
0x1185   :  { %v5643_v15 = vadd.f32 %v10264_v32, %v5602_v9 }
0x1186   :  { %v10266_v62 = vpop.f32.mrf.mxu1  ;;  %v10288_v50 = vpop.f32.mrf.mxu0 }
0x1187   :  { %v10267_v39 = vadd.f32 %v10266_v62, %v10265_v61  ;;  %v5684_v45 = vadd.f32 %v10286_v40, %v5643_v15  ;;  %v10289_v56 = vadd.f32 %v10288_v50, %v10287_v57  ;;  %v11036_v15 = vld [vmem:[%s13455_s3 + $0x94] ss:$36 sps:$4 sm:$0xff]   ;;  %v11042_v40 = vld [vmem:[%s13455_s3 + $0xa4] ss:$36 sps:$4 sm:$0xff]  }
0x1188   :  { %6023 = vmatprep.subr.bf16.mxu1 %v11036_v15 }
0x1189   :  { %v5646_v21 = vadd.f32 %v10267_v39, %v5605_v41  ;;  %v11037_v39 = vld [vmem:[%s13455_s3 + $0x98] ss:$36 sps:$4 sm:$0xff]   ;;  %6024 = vmatpush1.bf16.msra.mxu1 %v11034_v31 }
0x118a   :  { %v11039_v41 = vld [vmem:[%s13455_s3 + $0x9c] ss:$36 sps:$4 sm:$0xff]   ;;  %6109 = vmatprep.subr.bf16.mxu1 %v11042_v40 }
0x118b   :  { %v5687_v3 = vadd.f32 %v10289_v56, %v5646_v21  ;;  %6066 = vmatprep.subr.bf16.mxu0 %v11039_v41 }
0x118c   :  { %6067 = vmatpush1.bf16.msra.mxu0 %v11037_v39 }
0x11a0   :  { %v10306_v60 = vpop.f32.mrf.mxu1 }
0x11a1   :  { %v10328_v6 = vpop.f32.mrf.mxu0 }
0x11a2   :  { %v10307_v17 = vpop.f32.mrf.mxu1 }
0x11a3   :  { %v10329_v14 = vpop.f32.mrf.mxu0  ;;  %v10308_v16 = vadd.f32 %v10307_v17, %v10306_v60 }
0x11a4   :  { %v10309_v13 = vpop.f32.mrf.mxu1  ;;  %v10330_v19 = vadd.f32 %v10329_v14, %v10328_v6 }
0x11a5   :  { %v10331_v11 = vpop.f32.mrf.mxu0  ;;  %v5725_v42 = vadd.f32 %v10308_v16, %v5684_v45  ;;  %v11045_v16 = vld [vmem:[%s13455_s3 + $0xac] ss:$36 sps:$4 sm:$0xff]  }
0x11a6   :  { %v10310_v28 = vpop.f32.mrf.mxu1  ;;  %6152 = vmatprep.subr.bf16.mxu0 %v11045_v16 }
0x11a7   :  { %v10311_v20 = vadd.f32 %v10310_v28, %v10309_v13  ;;  %v10332_v47 = vpop.f32.mrf.mxu0  ;;  %v5766_v52 = vadd.f32 %v10330_v19, %v5725_v42 }
0x11a8   :  { %v10333_v43 = vadd.f32 %v10332_v47, %v10331_v11 }
0x11a9   :  { %v5728_v58 = vadd.f32 %v10311_v20, %v5687_v3 }
0x11ab   :  { %v5769_v24 = vadd.f32 %v10333_v43, %v5728_v58 }
0x11c0   :  { %v10350_v38 = vpop.f32.mrf.mxu1 }
0x11c1   :  { %v10372_v29 = vpop.f32.mrf.mxu0 }
0x11c2   :  { %v10351_v55 = vpop.f32.mrf.mxu1 }
0x11c3   :  { %v10352_v33 = vadd.f32 %v10351_v55, %v10350_v38  ;;  %v10373_v34 = vpop.f32.mrf.mxu0  ;;  %v5887_v38 = vrot.slane %v12758_v63, %v11465_v46  ;;  %v5893_v55 = vrot.slane %v12758_v63, %v11484_v5  ;;  %v11046_v63 = vld [vmem:[%s13455_s3 + $0xb0] ss:$36 sps:$4 sm:$0xff]  }
0x11c4   :  { %v10353_v35 = vpop.f32.mrf.mxu1  ;;  %v10374_v59 = vadd.f32 %v10373_v34, %v10372_v29  ;;  %v11040_v34 = vld [vmem:[%s13455_s3 + $0xa0] ss:$36 sps:$4 sm:$0xff]  }
0x11c5   :  { %v5807_v49 = vadd.f32 %v10352_v33, %v5766_v52  ;;  %v10375_v51 = vpop.f32.mrf.mxu0 }
0x11c6   :  { %v10354_v2 = vpop.f32.mrf.mxu1 }
0x11c7   :  { %v5848_v48 = vadd.f32 %v10374_v59, %v5807_v49  ;;  %v10355_v23 = vadd.f32 %v10354_v2, %v10353_v35  ;;  %v10376_v0 = vpop.f32.mrf.mxu0  ;;  %v11043_v35 = vld [vmem:[%s13455_s3 + $0xa8] ss:$36 sps:$4 sm:$0xff]   ;;  %v9517_v49 = vld [vmem:[%s13456_s4 + $0x12] sm:$0xff]  ;;  %s11279_s3 = scalar_lea.vmem %s8860_s20, 32 }
0x11c8   :  { %v10377_v57 = vadd.f32 %v10376_v0, %v10375_v51  ;;  %v5918_v59 = vrot.slane %v9517_v49, %v11438_v25  ;;  %v5922_v51 = vrot.slane %v9517_v49, %v11446_v27  ;;  %p11280_p0 = scmp.ne.s32.totalorder %s8860_s20, %s11279_s3  ;;  %p11285_p2 = scmp.lt.s32.totalorder %s11279_s3, %s11279_s3 }
0x11c9   :  { %v5810_v61 = vadd.f32 %v10355_v23, %v5769_v24  ;;  %v5854_v62 = vadd.f32 %v5848_v48, %v12252_v36 }
0x11ca   :  { %p11286_p3 = por %p11285_p2, %p11284_p1 }
0x11cb   :  { %v5851_v26 = vadd.f32 %v10377_v57, %v5810_v61  ;;  %v5856_v22 = vsel %vm234_vm2, %v5854_v62, 0.0 }
0x11cc   :  { %5857 = vadd.xlane.f32.xlu0 %v5856_v22  ;;  %v5942_v22 = vrot.slane %v9517_v49, %v11462_v44  ;;  %p11287_p4 = pnand %p11286_p3, %p11280_p0 }
0x11cd   :  { %v5855_v60 = vadd.f32 %v5851_v26, %v12250_v4  ;;  %v5930_v26 = vrot.slane %v9517_v49, %v11455_v37 }
0x11cf   :  { %v5859_v50 = vsel %vm234_vm2, %v5855_v60, 0.0 }
0x11d0   :  { %5860 = vadd.xlane.f32.xlu1 %v5859_v50 }
0x1255   :  { %v5858_v8 = vpop.xlane.xlu0 %5857 }
0x1256   :  { %v5862_v18 = vmul.f32 0.11111111, %v5858_v8 }
0x1258   :  { %v5864_v6 = vsub.f32 %v5854_v62, %v5862_v18 }
0x1259   :  { %v5861_v17 = vpop.xlane.xlu1 %5860 }
0x125a   :  { %v5863_v30 = vmul.f32 0.11111111, %v5861_v17  ;;  %v5866_v32 = vmul.f32 %v11546_v7, %v5864_v6 }
0x125c   :  { %v5865_v9 = vsub.f32 %v5855_v60, %v5863_v30  ;;  %v5868_v10 = vmul.f32 %v5866_v32, %v5866_v32 }
0x125e   :  { %v5870_v36 = vsel %vm234_vm2, %v5868_v10, 0.0  ;;  %v5867_v14 = vmul.f32 %v11546_v7, %v5865_v9  ;;  %v5934_v10 = vrot.slane %v9517_v49, %v11465_v46 }
0x125f   :  { %5871 = vadd.xlane.f32.xlu0 %v5870_v36 }
0x1260   :  { %v5869_v13 = vmul.f32 %v5867_v14, %v5867_v14 }
0x1262   :  { %v5873_v4 = vsel %vm234_vm2, %v5869_v13, 0.0  ;;  %v5946_v13 = vrot.slane %v9517_v49, %v11474_v54 }
0x1263   :  { %5874 = vadd.xlane.f32.xlu1 %v5873_v4 }
0x12e8   :  { %v5872_v11 = vpop.xlane.xlu0 %5871 }
0x12e9   :  { %v5876_v28 = vmul.f32 0.11111111, %v5872_v11  ;;  %v5938_v11 = vrot.slane %v9517_v49, %v11484_v5 }
0x12eb   :  { %v5878_v45 = vadd.f32 1e-05, %v5876_v28  ;;  %v5926_v28 = vrot.slane %v9517_v49, %v11508_v53 }
0x12ec   :  { %v5875_v21 = vpop.xlane.xlu1 %5874 }
0x12ed   :  { %11236 = vrsqrt.f32 %v5878_v45  ;;  %v5877_v56 = vmul.f32 0.11111111, %v5875_v21 }
0x12ef   :  { %v5879_v42 = vadd.f32 1e-05, %v5877_v56 }
0x12f1   :  { %11238 = vrsqrt.f32 %v5879_v42 }
0x12fa   :  { %v11237_v20 = vpop.eup %11236 }
0x12fb   :  { %v5882_v47 = vmul.f32 %v11237_v20, %v5866_v32 }
0x12fd   :  { %v5888_v29 = vmul.f32 %v5887_v38, %v5882_v47 }
0x12fe   :  { %v11239_v3 = vpop.eup %11238 }
0x12ff   :  { %v5883_v19 = vmul.f32 %v11239_v3, %v5867_v14  ;;  %v12792_v58 = vadd.f32 %v5893_v55, %v5888_v29 }
0x1301   :  { %v5889_v52 = vmul.f32 %v5887_v38, %v5883_v19 }
0x1303   :  { %v12794_v33 = vadd.f32 %v5893_v55, %v5889_v52 }
0x1305   :  { %v5909_v43 = vpack.c.bf16 %v12794_v33, %v12792_v58 }
0x1307   :  { %9529 = vmatmul.mubr.msk.bf16.vlgmr.msra.gmra.mxu1 %vm234_vm2, %v5909_v43  ;;  %9530 = vmatmul.mubr.msk.bf16.vlgmr.msra.gmra.mxu0 %vm234_vm2, %v5909_v43 }
0x1308   :  { %6110 = vmatpush1.bf16.msra.mxu1 %v11040_v34  ;;  %6153 = vmatpush1.bf16.msra.mxu0 %v11043_v35  ;;  %v11276_v34 = vld [vmem:[%s13453_s1 + $0x8] sm:$0xff] }
0x1309   :  { %6127 = vmatprep.mubr.bf16.mxu1 %v11303_v12  ;;  %6170 = vmatprep.mubr.bf16.mxu0 %v11303_v12 }
0x130a   :  { %10690 = vmatprep.subr.bf16.mxu1 %v11301_v1 }
0x130f   :  { %9531 = vmatmul.mubr.msk.bf16.vlgmr.msra.gmra.mxu1 %vm234_vm2, %v5909_v43  ;;  %9532 = vmatmul.mubr.msk.bf16.vlgmr.msra.gmra.mxu0 %vm234_vm2, %v5909_v43 }
0x1310   :  { %10691 = vmatpush3.bf16.msra.mxu1 %v11046_v63  ;;  %10692 = vmatprep.mubr.msk.bf16.mxu1 %vm11302_vm0, %v11301_v1 }
0x1317   :  { %10693 = vmatmul.mubr.msk.bf16.vlgmr.msra.gmra.mxu1 %vm234_vm2, %v5909_v43 }
0x13c7   :  { %v6043_v2 = vpop.f32.mrf.mxu1  ;;  %v6086_v24 = vpop.f32.mrf.mxu0 }
0x13c8   :  { %v6044_v48 = vadd.f32 %v6043_v2, %v5918_v59  ;;  %v6087_v38 = vadd.f32 %v6086_v24, %v5926_v28 }
0x13c9   :  { %v6045_v23 = vpop.f32.mrf.mxu1  ;;  %v6088_v0 = vpop.f32.mrf.mxu0 }
0x13ca   :  { %v6046_v61 = vadd.f32 %v6045_v23, %v5922_v51  ;;  %10700 = vmatprep.mubr.f32.mxu0 %v6044_v48  ;;  %v6089_v17 = vadd.f32 %v6088_v0, %v5930_v26 }
0x13cb   :  { %v6047_v57 = vpop.f32.mrf.mxu1  ;;  %v6090_v62 = vpop.f32.mrf.mxu0 }
0x13cc   :  { %10707 = vmatprep.mubr.f32.mxu1 %v6046_v61  ;;  %v6048_v39 = vadd.f32 %v6047_v57, %v5918_v59  ;;  %v6091_v29 = vadd.f32 %v6090_v62, %v5926_v28  ;;  %v11277_v59 = vld [vmem:[%s13453_s1] sm:$0xff] }
0x13cd   :  { %v6049_v60 = vpop.f32.mrf.mxu1  ;;  %v6092_v50 = vpop.f32.mrf.mxu0 }
0x13ce   :  { %v6093_v8 = vadd.f32 %v6092_v50, %v5930_v26  ;;  %v6050_v47 = vadd.f32 %v6049_v60, %v5922_v51 }
0x13cf   :  { %v6129_v18 = vpop.f32.mrf.mxu1  ;;  %v6172_v6 = vpop.f32.mrf.mxu0 }
0x13d0   :  { %v12824_v30 = vadd.f32 %v6172_v6, %v5942_v22  ;;  %10696 = vmatprep.subr.mxu0 %v6093_v8  ;;  %v6130_v41 = vadd.f32 %v6129_v18, %v5934_v10 }
0x13d1   :  { %v6131_v32 = vpop.f32.mrf.mxu1  ;;  %v6174_v9 = vpop.f32.mrf.mxu0  ;;  %10697 = vmatpush3.xpose.msra.mxu0 %v6093_v8 }
0x13d2   :  { %10698 = vmatprep.subr.mxu0 %v6089_v17  ;;  %v6175_v45 = vadd.f32 %v6174_v9, %v5946_v13  ;;  %v6132_v19 = vadd.f32 %v6131_v32, %v5938_v11 }
0x13d3   :  { %v6133_v36 = vpop.f32.mrf.mxu1  ;;  %v6176_v14 = vpop.f32.mrf.mxu0 }
0x13d4   :  { %v6134_v4 = vadd.f32 %v6133_v36, %v5934_v10  ;;  %v12832_v42 = vadd.f32 %v6176_v14, %v5942_v22 }
0x13d5   :  { %v6135_v31 = vpop.f32.mrf.mxu1  ;;  %v6178_v15 = vpop.f32.mrf.mxu0  ;;  %10699 = vmatpush3.xpose.msra.mxu0 %v6089_v17 }
0x13d6   :  { %v6179_v40 = vadd.f32 %v6178_v15, %v5946_v13  ;;  %10703 = vmatprep.subr.mxu1 %v6134_v4  ;;  %v6136_v56 = vadd.f32 %v6135_v31, %v5938_v11 }
0x13d7   :  { %v12828_v16 = vpop.f32.mrf.mxu1  ;;  %10704 = vmatpush3.xpose.msra.mxu1 %v6134_v4 }
0x13d8   :  { %10701 = vmatmul.mubr.f32.vlgmr.msra.gmra.mxu0 %v6048_v39  ;;  %10705 = vmatprep.subr.mxu1 %v6130_v41 }
0x13d9   :  { %10710 = vmatprep.subr.mxu0 %v6179_v40  ;;  %v10694_v21 = vpop.f32.mrf.mxu1 }
0x13da   :  { %10711 = vmatpush3.msra.mxu0 %v6179_v40 }
0x13db   :  { %10712 = vmatprep.subr.mxu0 %v6175_v45  ;;  %v12834_v20 = vpop.f32.mrf.mxu1  ;;  %10706 = vmatpush3.xpose.msra.mxu1 %v6130_v41 }
0x13dc   :  { %10713 = vmatpush3.msra.mxu0 %v6175_v45  ;;  %10724 = vmatprep.subr.mxu1 %v6136_v56 }
0x13dd   :  { %10717 = vmatprep.subr.mxu0 %v12832_v42  ;;  %v10695_v3 = vpop.f32.mrf.mxu1 }
0x13de   :  { %10708 = vmatmul.mubr.f32.vlgmr.msra.gmra.mxu1 %v6050_v47 }
0x13df   :  { %10725 = vmatpush3.xpose.msra.mxu1 %v6136_v56  ;;  %10728 = vmatprep.mubr.f32.mxu1 %v6087_v38 }
0x13e0   :  { %10726 = vmatprep.subr.mxu1 %v6132_v19 }
0x13e3   :  { %10727 = vmatpush3.xpose.msra.mxu1 %v6132_v19 }
0x13e6   :  { %10729 = vmatmul.mubr.f32.vlgmr.msra.gmra.mxu1 %v6091_v29 }
0x13e7   :  { %7067 = vmatprep.mubr.bf16.mxu1 %v11303_v12 }
0x1498   :  { %v10702_v55 = vpop.f32.mrf.mxu0 }
0x1499   :  { %v6294_v49 = vadd.f32 %v11276_v34, %v10702_v55 }
0x149a   :  { %v6288_v43 = vpop.f32.mrf.mxu0 }
0x149b   :  { %v6289_v24 = vadd.f32 %v11277_v59, %v6288_v43  ;;  %v6300_v23 = vsel %vm234_vm2, %v6294_v49, -inf }
0x149d   :  { %v6297_v57 = vsel %vm234_vm2, %v6289_v24, -inf }
0x149e   :  { %v10709_v52 = vpop.f32.mrf.mxu1 }
0x149f   :  { %v6391_v35 = vadd.f32 %v11276_v34, %v10709_v52 }
0x14a0   :  { %v6385_v63 = vpop.f32.mrf.mxu1 }
0x14a1   :  { %v6386_v51 = vadd.f32 %v11277_v59, %v6385_v63  ;;  %v6397_v2 = vsel %vm234_vm2, %v6391_v35, -inf }
0x14a2   :  { %6398 = vmax.xlane.f32.xlu1 %v6397_v2 }
0x14a3   :  { %v6394_v48 = vsel %vm234_vm2, %v6386_v51, -inf }
0x14a4   :  { %6395 = vmax.xlane.f32.xlu0 %v6394_v48 }
0x14a6   :  { %v10730_v0 = vpop.f32.mrf.mxu1  ;;  %6301 = vmax.xlane.f32.xlu1 %v6300_v23 }
0x14a7   :  { %v6650_v61 = vadd.f32 %v11276_v34, %v10730_v0 }
0x14a8   :  { %v6644_v62 = vpop.f32.mrf.mxu1  ;;  %6298 = vmax.xlane.f32.xlu0 %v6297_v57  ;;  %v9519_v57 = vld [vmem:[%s13456_s4 + $0x1a] ss:$0 sm:$0xff] }
0x14a9   :  { %v6645_v26 = vadd.f32 %v11277_v59, %v6644_v62  ;;  %v6656_v22 = vsel %vm234_vm2, %v6650_v61, -inf }
0x14aa   :  { %6657 = vmax.xlane.f32.xlu1 %v6656_v22 }
0x14ab   :  { %v6653_v60 = vsel %vm234_vm2, %v6645_v26, -inf }
0x14ac   :  { %6654 = vmax.xlane.f32.xlu0 %v6653_v60 }
0x152b   :  { %v6399_v50 = vpop.xlane.xlu1 %6398 }
0x152c   :  { %v6401_v8 = vsub.f32 %v6391_v35, %v6399_v50 }
0x152d   :  { %v6396_v18 = vpop.xlane.xlu0 %6395 }
0x152e   :  { %v6404_v6 = vmul.f32 1.442695, %v6401_v8  ;;  %v6400_v17 = vsub.f32 %v6386_v51, %v6396_v18  ;;  %v6216_v8 = vadd.f32 %v9519_v57, %v12828_v16  ;;  %v12874_v16 = vld [vmem:[%s13460_s8 + $0x10] sm:$0xff] }
0x152f   :  { %v6302_v32 = vpop.xlane.xlu1 %6301 }
0x1530   :  { %11240 = vpow2.f32 %v6404_v6  ;;  %v6402_v9 = vmul.f32 1.442695, %v6400_v17  ;;  %v6304_v10 = vsub.f32 %v6294_v49, %v6302_v32 }
0x1531   :  { %v6299_v36 = vpop.xlane.xlu0 %6298 }
0x1532   :  { %11242 = vpow2.f32 %v6402_v9  ;;  %v6307_v14 = vmul.f32 1.442695, %v6304_v10  ;;  %v6303_v13 = vsub.f32 %v6289_v24, %v6299_v36  ;;  %v6761_v9 = vrot.slane %v12874_v16, %v11438_v25 }
0x1533   :  { %v6658_v4 = vpop.xlane.xlu1 %6657 }
0x1534   :  { %11244 = vpow2.f32 %v6307_v14  ;;  %v6305_v31 = vmul.f32 1.442695, %v6303_v13  ;;  %v6660_v15 = vsub.f32 %v6650_v61, %v6658_v4 }
0x1535   :  { %v6655_v39 = vpop.xlane.xlu0 %6654 }
0x1536   :  { %11246 = vpow2.f32 %v6305_v31  ;;  %v6663_v41 = vmul.f32 1.442695, %v6660_v15  ;;  %v6659_v40 = vsub.f32 %v6645_v26, %v6655_v39  ;;  %v6219_v26 = vadd.f32 %v9519_v57, %v12834_v20 }
0x1538   :  { %11248 = vpow2.f32 %v6663_v41  ;;  %v6661_v11 = vmul.f32 1.442695, %v6659_v40 }
0x153a   :  { %11250 = vpow2.f32 %v6661_v11 }
0x153d   :  { %v11241_v28 = vpop.eup %11240 }
0x153e   :  { %v6409_v45 = vsel %vm234_vm2, %v11241_v28, 0.0 }
0x153f   :  { %v11243_v21 = vpop.eup %11242  ;;  %6410 = vadd.xlane.f32.xlu1 %v6409_v45 }
0x1540   :  { %v6406_v56 = vsel %vm234_vm2, %v11243_v21, 0.0 }
0x1541   :  { %v11245_v47 = vpop.eup %11244  ;;  %6407 = vadd.xlane.f32.xlu0 %v6406_v56 }
0x1542   :  { %v6312_v38 = vsel %vm234_vm2, %v11245_v47, 0.0 }
0x1543   :  { %v11247_v3 = vpop.eup %11246  ;;  %6313 = vadd.xlane.f32.xlu1 %v6312_v38 }
0x1544   :  { %v6309_v19 = vsel %vm234_vm2, %v11247_v3, 0.0 }
0x1545   :  { %v11249_v29 = vpop.eup %11248  ;;  %6310 = vadd.xlane.f32.xlu0 %v6309_v19 }
0x1546   :  { %v6668_v55 = vsel %vm234_vm2, %v11249_v29, 0.0 }
0x1547   :  { %v11251_v52 = vpop.eup %11250  ;;  %6669 = vadd.xlane.f32.xlu1 %v6668_v55 }
0x1548   :  { %v6665_v34 = vsel %vm234_vm2, %v11251_v52, 0.0 }
0x1549   :  { %6666 = vadd.xlane.f32.xlu0 %v6665_v34  ;;  %v9548_v34 = vld [vmem:[%s13457_s5 + $0x140] sm:$0xff] }
0x15c8   :  { %v6411_v35 = vpop.xlane.xlu1 %6410 }
0x15c9   :  { %11252 = vrcp.f32 %v6411_v35  ;;  %v9541_v35 = vld [vmem:[%s13457_s5 + $0x108] sm:$0xff] }
0x15ca   :  { %v6408_v43 = vpop.xlane.xlu0 %6407 }
0x15cb   :  { %11254 = vrcp.f32 %v6408_v43 }
0x15cc   :  { %v6314_v63 = vpop.xlane.xlu1 %6313 }
0x15cd   :  { %11256 = vrcp.f32 %v6314_v63  ;;  %v9549_v63 = vld [vmem:[%s13457_s5 + $0x148] sm:$0xff] }
0x15ce   :  { %v6311_v49 = vpop.xlane.xlu0 %6310 }
0x15cf   :  { %11258 = vrcp.f32 %v6311_v49 }
0x15d0   :  { %v6670_v59 = vpop.xlane.xlu1 %6669 }
0x15d1   :  { %11260 = vrcp.f32 %v6670_v59  ;;  %v9560_v59 = vcombine.low %v9541_v35, %v9549_v63 }
0x15d2   :  { %v6667_v51 = vpop.xlane.xlu0 %6666 }
0x15d3   :  { %11262 = vrcp.f32 %v6667_v51  ;;  %v9561_v51 = vcombine.high %v9541_v35, %v9549_v63  ;;  %v11054_v35 = vld [vmem:[%s13459_s7 + $0x8b0] sm:$0xff]   ;;  %v11056_v63 = vld [vmem:[%s13459_s7 + $0x8e8] sm:$0xff]  }
0x15d5   :  { %7049 = vmatprep.subr.bf16.mxu1 %v9561_v51  ;;  %v11059_v51 = vld [vmem:[%s13459_s7 + $0x860] sm:$0xff]  }
0x15d6   :  { %v11253_v2 = vpop.eup %11252  ;;  %7050 = vmatpush1.bf16.msra.mxu1 %v9560_v59  ;;  %v11058_v59 = vld [vmem:[%s13459_s7 + $0x8a8] sm:$0xff]  }
0x15d7   :  { %v6415_v23 = vmul.f32 %v11253_v2, %v11241_v28  ;;  %v9542_v2 = vld [vmem:[%s13457_s5 + $0x110] sm:$0xff] }
0x15d8   :  { %v11255_v24 = vpop.eup %11254 }
0x15d9   :  { %v6414_v48 = vmul.f32 %v11255_v24, %v11243_v21  ;;  %v9550_v24 = vld [vmem:[%s13457_s5 + $0x150] sm:$0xff] }
0x15da   :  { %v11257_v0 = vpop.eup %11256 }
0x15db   :  { %10714 = vmatprep.mubr.msk.f32.mxu0 %vm234_vm2, %v6414_v48  ;;  %v6318_v22 = vmul.f32 %v11257_v0, %v11245_v47  ;;  %v9543_v48 = vld [vmem:[%s13457_s5 + $0x118] sm:$0xff]  ;;  %v9563_v0 = vcombine.high %v9542_v2, %v9550_v24 }
0x15dc   :  { %v11259_v61 = vpop.eup %11258  ;;  %10715 = vmatmul.mubr.msk.f32.vlgmr.msra.gmra.mxu0 %vm234_vm2, %v6415_v23  ;;  %v9562_v23 = vcombine.low %v9542_v2, %v9550_v24  ;;  %v11060_v2 = vld [vmem:[%s13459_s7 + $0x8e0] sm:$0xff]  }
0x15dd   :  { %10718 = vmatpush3.msra.mxu0 %v12832_v42  ;;  %v6317_v62 = vmul.f32 %v11259_v61, %v11247_v3  ;;  %v9551_v61 = vld [vmem:[%s13457_s5 + $0x158] sm:$0xff]  ;;  %v11061_v24 = vld [vmem:[%s13459_s7 + $0x820] sm:$0xff]  }
0x15de   :  { %10719 = vmatprep.subr.mxu0 %v12824_v30  ;;  %v11261_v60 = vpop.eup %11260  ;;  %v9564_v57 = vcombine.low %v9543_v48, %v9551_v61 }
0x15df   :  { %10720 = vmatpush3.msra.mxu0 %v12824_v30  ;;  %10721 = vmatprep.mubr.msk.f32.mxu0 %vm234_vm2, %v6317_v62  ;;  %v6674_v42 = vmul.f32 %v11261_v60, %v11249_v29  ;;  %v9565_v62 = vcombine.high %v9543_v48, %v9551_v61  ;;  %v11062_v48 = vld [vmem:[%s13459_s7 + $0x8a0] sm:$0xff]   ;;  %v11065_v61 = vld [vmem:[%s13459_s7 + $0x818] sm:$0xff]  }
0x15e0   :  { %v11263_v50 = vpop.eup %11262  ;;  %10731 = vmatprep.subr.mxu0 %v6219_v26  ;;  %10722 = vmatmul.mubr.msk.f32.vlgmr.msra.gmra.mxu0 %vm234_vm2, %v6318_v22 }
0x15e1   :  { %10732 = vmatpush3.msra.mxu0 %v6219_v26  ;;  %v6673_v18 = vmul.f32 %v11263_v50, %v11251_v52  ;;  %v9540_v52 = vld [vmem:[%s13457_s5 + $0x100] sm:$0xff]  ;;  %7135 = vmatprep.subr.bf16.mxu1 %v9565_v62  ;;  %v11067_v62 = vld [vmem:[%s13459_s7 + $0x850] sm:$0xff]  }
0x15e2   :  { %10733 = vmatprep.subr.mxu0 %v6216_v8  ;;  %v9559_v43 = vcombine.high %v9540_v52, %v9548_v34  ;;  %v9558_v49 = vcombine.low %v9540_v52, %v9548_v34  ;;  %v11051_v52 = vld [vmem:[%s13459_s7 + $0x870] sm:$0xff]  }
0x15e3   :  { %10734 = vmatpush3.msra.mxu0 %v6216_v8  ;;  %10735 = vmatprep.mubr.msk.f32.mxu0 %vm234_vm2, %v6673_v18  ;;  %v11052_v34 = vld [vmem:[%s13459_s7 + $0x8f0] sm:$0xff]  }
0x15e4   :  { %10736 = vmatmul.mubr.msk.f32.vlgmr.msra.gmra.mxu0 %vm234_vm2, %v6674_v42  ;;  %7006 = vmatprep.subr.bf16.mxu0 %v9559_v43  ;;  %v6797_v42 = vrot.slane %v12874_v16, %v11446_v27  ;;  %v11055_v43 = vld [vmem:[%s13459_s7 + $0x868] sm:$0xff]  }
0x15e5   :  { %7024 = vmatprep.mubr.bf16.mxu0 %v11303_v12  ;;  %7007 = vmatpush1.bf16.msra.mxu0 %v9558_v49  ;;  %v11057_v49 = vld [vmem:[%s13459_s7 + $0x828] sm:$0xff]  }
0x15e6   :  { %7092 = vmatprep.subr.bf16.mxu0 %v9563_v0  ;;  %v11064_v0 = vld [vmem:[%s13459_s7 + $0x8d8] sm:$0xff]  }
0x169c   :  { %v10716_v30 = vpop.f32.mrf.mxu0 }
0x169e   :  { %v6488_v20 = vpop.f32.mrf.mxu0 }
0x16a0   :  { %v10723_v6 = vpop.f32.mrf.mxu0 }
0x16a1   :  { %v6575_v32 = vadd.f32 %v10723_v6, %v10716_v30 }
0x16a2   :  { %v6569_v17 = vpop.f32.mrf.mxu0 }
0x16a3   :  { %v6570_v36 = vadd.f32 %v6569_v17, %v6488_v20  ;;  %v6803_v17 = vrot.slane %v12874_v16, %v11508_v53  ;;  %v9553_v16 = vld [vmem:[%s13457_s5 + $0x168] sm:$0xff] }
0x16a4   :  { %v10737_v10 = vpop.f32.mrf.mxu0 }
0x16a5   :  { %v6757_v14 = vadd.f32 %v10737_v10, %v6575_v32 }
0x16a6   :  { %v6747_v13 = vpop.f32.mrf.mxu0 }
0x16a7   :  { %v6763_v4 = vadd.f32 %v6761_v9, %v6757_v14  ;;  %v6756_v31 = vadd.f32 %v6747_v13, %v6570_v36  ;;  %v9544_v36 = vld [vmem:[%s13457_s5 + $0x120] sm:$0xff] }
0x16a9   :  { %v6762_v15 = vadd.f32 %v6761_v9, %v6756_v31  ;;  %v6765_v39 = vadd.f32 %v6763_v4, %v12794_v33  ;;  %v9552_v4 = vld [vmem:[%s13457_s5 + $0x160] sm:$0xff]  ;;  %v9545_v31 = vld [vmem:[%s13457_s5 + $0x128] sm:$0xff] }
0x16ab   :  { %v6769_v41 = vsel %vm234_vm2, %v6765_v39, 0.0  ;;  %v6764_v40 = vadd.f32 %v6762_v15, %v12792_v58 }
0x16ac   :  { %6770 = vadd.xlane.f32.xlu1 %v6769_v41  ;;  %v9569_v41 = vcombine.high %v9545_v31, %v9553_v16 }
0x16ad   :  { %v6766_v11 = vsel %vm234_vm2, %v6764_v40, 0.0 }
0x16ae   :  { %6767 = vadd.xlane.f32.xlu0 %v6766_v11  ;;  %v9554_v11 = vld [vmem:[%s13457_s5 + $0x170] sm:$0xff] }
0x1735   :  { %v6771_v28 = vpop.xlane.xlu1 %6770 }
0x1736   :  { %v6773_v45 = vmul.f32 0.11111111, %v6771_v28  ;;  %v9547_v28 = vld [vmem:[%s13457_s5 + $0x138] sm:$0xff] }
0x1737   :  { %v6768_v21 = vpop.xlane.xlu0 %6767 }
0x1738   :  { %v6775_v56 = vsub.f32 %v6765_v39, %v6773_v45  ;;  %v6772_v47 = vmul.f32 0.11111111, %v6768_v21  ;;  %v9567_v39 = vcombine.high %v9544_v36, %v9552_v4  ;;  %v9555_v45 = vld [vmem:[%s13457_s5 + $0x178] sm:$0xff]  ;;  %v9566_v21 = vcombine.low %v9544_v36, %v9552_v4 }
0x173a   :  { %v6774_v38 = vsub.f32 %v6764_v40, %v6772_v47  ;;  %v6777_v3 = vmul.f32 %v11546_v7, %v6775_v56  ;;  %v9546_v40 = vld [vmem:[%s13457_s5 + $0x130] sm:$0xff]  ;;  %v9568_v56 = vcombine.low %v9545_v31, %v9553_v16 }
0x173b   :  { %v9571_v47 = vcombine.high %v9546_v40, %v9554_v11 }
0x173c   :  { %v6779_v19 = vmul.f32 %v6777_v3, %v6777_v3  ;;  %v6776_v29 = vmul.f32 %v11546_v7, %v6774_v38  ;;  %v9573_v38 = vcombine.high %v9547_v28, %v9555_v45 }
0x173e   :  { %v6783_v33 = vsel %vm234_vm2, %v6779_v19, 0.0  ;;  %v6778_v55 = vmul.f32 %v6776_v29, %v6776_v29  ;;  %v9572_v19 = vcombine.low %v9547_v28, %v9555_v45 }
0x173f   :  { %6784 = vadd.xlane.f32.xlu1 %v6783_v33  ;;  %v11048_v33 = vld [vmem:[%s13459_s7 + $0x8f8] sm:$0xff]  }
0x1740   :  { %v6780_v58 = vsel %vm234_vm2, %v6778_v55, 0.0  ;;  %v11049_v55 = vld [vmem:[%s13459_s7 + $0x838] sm:$0xff]  }
0x1741   :  { %6781 = vadd.xlane.f32.xlu0 %v6780_v58  ;;  %v11050_v58 = vld [vmem:[%s13459_s7 + $0x8b8] sm:$0xff]  }
0x17c8   :  { %v6785_v26 = vpop.xlane.xlu1 %6784 }
0x17c9   :  { %v6787_v22 = vmul.f32 0.11111111, %v6785_v26  ;;  %v11068_v26 = vld [vmem:[%s13459_s7 + $0x8d0] sm:$0xff]  }
0x17ca   :  { %v6782_v60 = vpop.xlane.xlu0 %6781 }
0x17cb   :  { %v6789_v50 = vadd.f32 1e-05, %v6787_v22  ;;  %v6786_v8 = vmul.f32 0.11111111, %v6782_v60  ;;  %v11069_v22 = vld [vmem:[%s13459_s7 + $0x810] sm:$0xff]  }
0x17cc   :  { %v11070_v60 = vld [vmem:[%s13459_s7 + $0x890] sm:$0xff]  }
0x17cd   :  { %11264 = vrsqrt.f32 %v6789_v50  ;;  %v6788_v18 = vadd.f32 1e-05, %v6786_v8  ;;  %v11071_v50 = vld [vmem:[%s13459_s7 + $0x848] sm:$0xff]  }
0x17ce   :  { %v11072_v8 = vld [vmem:[%s13459_s7 + $0x8c8] sm:$0xff]  }
0x17cf   :  { %11266 = vrsqrt.f32 %v6788_v18  ;;  %v11073_v18 = vld [vmem:[%s13459_s7 + $0x808] sm:$0xff]  }
0x17da   :  { %v11265_v30 = vpop.eup %11264 }
0x17db   :  { %v6793_v20 = vmul.f32 %v11265_v30, %v6777_v3  ;;  %v9570_v3 = vcombine.low %v9546_v40, %v9554_v11  ;;  %v11075_v30 = vld [vmem:[%s13459_s7 + $0x840] sm:$0xff]  }
0x17dc   :  { %v11267_v6 = vpop.eup %11266 }
0x17dd   :  { %v6799_v32 = vmul.f32 %v6797_v42, %v6793_v20  ;;  %v6792_v9 = vmul.f32 %v11267_v6, %v6776_v29  ;;  %v11047_v29 = vld [vmem:[%s13459_s7 + $0x878] sm:$0xff]   ;;  %v11076_v20 = vld [vmem:[%s13459_s7 + $0x8c0] sm:$0xff]  }
0x17de   :  { %v11077_v6 = vld [vmem:[%s13459_s7 + $0x800] sm:$0xff]  }
0x17df   :  { %v6798_v10 = vmul.f32 %v6797_v42, %v6792_v9  ;;  %v12917_v14 = vadd.f32 %v6803_v17, %v6799_v32  ;;  %v11074_v42 = vld [vmem:[%s13459_s7 + $0x888] sm:$0xff]   ;;  %v11079_v32 = vld [vmem:[%s13459_s7 + $0x978] sm:$0xff]  }
0x17e0   :  { %v11080_v9 = vld [vmem:[%s13459_s7 + $0x9f8] sm:$0xff]  }
0x17e1   :  { %v12919_v13 = vadd.f32 %v6803_v17, %v6798_v10  ;;  %v11078_v17 = vld [vmem:[%s13459_s7 + $0x880] sm:$0xff]  }
0x17e2   :  { %v13063_v10 = vld [vmem:[%s13458_s6 + $0x20] sm:$0xff] }
0x17e3   :  { %v6823_v15 = vpack.c.bf16 %v12917_v14, %v12919_v13  ;;  %v6836_v31 = vrot.slane %v13063_v10, %v11446_v27  ;;  %v6844_v16 = vrot.slane %v13063_v10, %v11455_v37 }
0x17e5   :  { %9574 = vmatmul.mubr.msk.bf16.vlgmr.msra.gmra.mxu0 %vm234_vm2, %v6823_v15  ;;  %9575 = vmatmul.mubr.msk.bf16.vlgmr.msra.gmra.mxu1 %vm234_vm2, %v6823_v15 }
0x17e6   :  { %7093 = vmatpush1.bf16.msra.mxu0 %v9562_v23  ;;  %7136 = vmatpush1.bf16.msra.mxu1 %v9564_v57  ;;  %v11063_v23 = vld [vmem:[%s13459_s7 + $0x858] sm:$0xff]  }
0x17e7   :  { %7110 = vmatprep.mubr.bf16.mxu0 %v11303_v12  ;;  %7153 = vmatprep.mubr.bf16.mxu1 %v11303_v12  ;;  %v11066_v57 = vld [vmem:[%s13459_s7 + $0x898] sm:$0xff]  }
0x17e8   :  { %7178 = vmatprep.subr.bf16.mxu0 %v9567_v39  ;;  %7221 = vmatprep.subr.bf16.mxu1 %v9569_v41  ;;  %v6840_v39 = vrot.slane %v13063_v10, %v11508_v53 }
0x17ed   :  { %9576 = vmatmul.mubr.msk.bf16.vlgmr.msra.gmra.mxu0 %vm234_vm2, %v6823_v15  ;;  %9577 = vmatmul.mubr.msk.bf16.vlgmr.msra.gmra.mxu1 %vm234_vm2, %v6823_v15 }
0x17ee   :  { %7179 = vmatpush1.bf16.msra.mxu0 %v9566_v21  ;;  %7222 = vmatpush1.bf16.msra.mxu1 %v9568_v56 }
0x17ef   :  { %7196 = vmatprep.mubr.bf16.mxu0 %v11303_v12  ;;  %7239 = vmatprep.mubr.bf16.mxu1 %v11303_v12 }
0x17f0   :  { %7264 = vmatprep.subr.bf16.mxu0 %v9571_v47  ;;  %7307 = vmatprep.subr.bf16.mxu1 %v9573_v38 }
0x17f5   :  { %9578 = vmatmul.mubr.msk.bf16.vlgmr.msra.gmra.mxu0 %vm234_vm2, %v6823_v15  ;;  %9579 = vmatmul.mubr.msk.bf16.vlgmr.msra.gmra.mxu1 %vm234_vm2, %v6823_v15 }
0x17f6   :  { %7265 = vmatpush1.bf16.msra.mxu0 %v9570_v3  ;;  %7308 = vmatpush1.bf16.msra.mxu1 %v9572_v19 }
0x17f7   :  { %7282 = vmatprep.mubr.bf16.mxu0 %v11303_v12  ;;  %7325 = vmatprep.mubr.bf16.mxu1 %v11303_v12  ;;  %v11053_v12 = vld [vmem:[%s13459_s7 + $0x830] sm:$0xff]  }
0x17f8   :  { %10404 = vmatprep.subr.bf16.mxu0 %v11047_v29  ;;  %10426 = vmatprep.subr.bf16.mxu1 %v11048_v33 }
0x17fd   :  { %9580 = vmatmul.mubr.msk.bf16.vlgmr.msra.gmra.mxu0 %vm234_vm2, %v6823_v15  ;;  %9581 = vmatmul.mubr.msk.bf16.vlgmr.msra.gmra.mxu1 %vm234_vm2, %v6823_v15  ;;  %v6832_v15 = vrot.slane %v13063_v10, %v11438_v25 }
0x17fe   :  { %10405 = vmatpush3.bf16.msra.mxu0 %v11049_v55  ;;  %10427 = vmatpush3.bf16.msra.mxu1 %v11050_v58 }
0x17ff   :  { %10406 = vmatprep.subr.bf16.mxu0 %v11051_v52  ;;  %10428 = vmatprep.subr.bf16.mxu1 %v11052_v34 }
0x1802   :  { %10407 = vmatpush3.bf16.msra.mxu0 %v11053_v12  ;;  %10429 = vmatpush3.bf16.msra.mxu1 %v11054_v35  ;;  %v6852_v35 = vrot.slane %v13063_v10, %v11484_v5 }
0x1803   :  { %10408 = vmatprep.subr.bf16.mxu0 %v11055_v43  ;;  %10430 = vmatprep.subr.bf16.mxu1 %v11056_v63  ;;  %v6860_v43 = vrot.slane %v13063_v10, %v11474_v54 }
0x1806   :  { %10409 = vmatpush3.bf16.msra.mxu0 %v11057_v49  ;;  %10431 = vmatpush3.bf16.msra.mxu1 %v11058_v59 }
0x1807   :  { %10410 = vmatprep.subr.bf16.mxu0 %v11059_v51  ;;  %10432 = vmatprep.subr.bf16.mxu1 %v11060_v2 }
0x180a   :  { %10411 = vmatpush3.bf16.msra.mxu0 %v11061_v24  ;;  %10433 = vmatpush3.bf16.msra.mxu1 %v11062_v48 }
0x180b   :  { %10412 = vmatprep.subr.bf16.mxu0 %v11063_v23  ;;  %10434 = vmatprep.subr.bf16.mxu1 %v11064_v0 }
0x180e   :  { %10413 = vmatpush3.bf16.msra.mxu0 %v11065_v61  ;;  %10435 = vmatpush3.bf16.msra.mxu1 %v11066_v57  ;;  %v11081_v57 = vld [vmem:[%s13459_s7 + $0x938] sm:$0xff]  }
0x180f   :  { %10414 = vmatprep.subr.bf16.mxu0 %v11067_v62  ;;  %10436 = vmatprep.subr.bf16.mxu1 %v11068_v26  ;;  %v11082_v62 = vld [vmem:[%s13459_s7 + $0x9b8] sm:$0xff]  }
0x1812   :  { %10415 = vmatpush3.bf16.msra.mxu0 %v11069_v22  ;;  %10437 = vmatpush3.bf16.msra.mxu1 %v11070_v60 }
0x1813   :  { %10416 = vmatprep.subr.bf16.mxu0 %v11071_v50  ;;  %10438 = vmatprep.subr.bf16.mxu1 %v11072_v8  ;;  %v11083_v8 = vld [vmem:[%s13459_s7 + $0x970] sm:$0xff]  }
0x1816   :  { %10417 = vmatpush3.bf16.msra.mxu0 %v11073_v18  ;;  %10439 = vmatpush3.bf16.msra.mxu1 %v11074_v42  ;;  %v11084_v18 = vld [vmem:[%s13459_s7 + $0x9f0] sm:$0xff]  }
0x1817   :  { %10418 = vmatprep.subr.bf16.mxu0 %v11075_v30  ;;  %10440 = vmatprep.subr.bf16.mxu1 %v11076_v20 }
0x181a   :  { %10419 = vmatpush3.bf16.msra.mxu0 %v11077_v6  ;;  %10441 = vmatpush3.bf16.msra.mxu1 %v11078_v17 }
0x181b   :  { %10448 = vmatprep.subr.bf16.mxu0 %v11079_v32  ;;  %10470 = vmatprep.subr.bf16.mxu1 %v11080_v9  ;;  %v11085_v9 = vld [vmem:[%s13459_s7 + $0x930] sm:$0xff]  }
0x18a5   :  { %v7026_v36 = vpop.f32.mrf.mxu0  ;;  %v7069_v4 = vpop.f32.mrf.mxu1 }
0x18a6   :  { %v7027_v38 = vadd.f32 %v7026_v36, %v6832_v15  ;;  %v7070_v3 = vadd.f32 %v7069_v4, %v6840_v39  ;;  %v11086_v36 = vld [vmem:[%s13459_s7 + $0x9b0] sm:$0xff]   ;;  %v11087_v4 = vld [vmem:[%s13459_s7 + $0x968] sm:$0xff]  }
0x18a7   :  { %v7028_v41 = vpop.f32.mrf.mxu0  ;;  %v7071_v40 = vpop.f32.mrf.mxu1 }
0x18a8   :  { %v7029_v45 = vadd.f32 %v7028_v41, %v6836_v31  ;;  %v7072_v21 = vadd.f32 %v7071_v40, %v6844_v16  ;;  %v7336_v2 = vmax.f32 %v7027_v38, 0.0  ;;  %v7338_v24 = vmax.f32 %v7070_v3, 0.0  ;;  %v11088_v41 = vld [vmem:[%s13459_s7 + $0x9e8] sm:$0xff]   ;;  %v11093_v38 = vld [vmem:[%s13459_s7 + $0x920] sm:$0xff]  }
0x18a9   :  { %v7030_v11 = vpop.f32.mrf.mxu0  ;;  %v7073_v28 = vpop.f32.mrf.mxu1 }
0x18aa   :  { %v7031_v56 = vadd.f32 %v7030_v11, %v6832_v15  ;;  %v7074_v47 = vadd.f32 %v7073_v28, %v6840_v39  ;;  %v7337_v63 = vmax.f32 %v7029_v45, 0.0  ;;  %v7339_v49 = vmax.f32 %v7072_v21, 0.0  ;;  %v11089_v28 = vld [vmem:[%s13459_s7 + $0x928] sm:$0xff]   ;;  %v11091_v21 = vld [vmem:[%s13459_s7 + $0x960] sm:$0xff]  }
0x18ab   :  { %v7032_v19 = vpop.f32.mrf.mxu0  ;;  %v7075_v29 = vpop.f32.mrf.mxu1  ;;  %v11090_v45 = vld [vmem:[%s13459_s7 + $0x9a8] sm:$0xff]  }
0x18ac   :  { %v7033_v33 = vadd.f32 %v7032_v19, %v6836_v31  ;;  %v7076_v55 = vadd.f32 %v7075_v29, %v6844_v16  ;;  %v7352_v58 = vmax.f32 %v7031_v56, 0.0  ;;  %v7354_v52 = vmax.f32 %v7074_v47, 0.0  ;;  %v11092_v56 = vld [vmem:[%s13459_s7 + $0x9e0] sm:$0xff]   ;;  %v11095_v29 = vld [vmem:[%s13459_s7 + $0x958] sm:$0xff]  }
0x18ad   :  { %v13073_v34 = vpop.f32.mrf.mxu0  ;;  %v13075_v12 = vpop.f32.mrf.mxu1  ;;  %v11094_v19 = vld [vmem:[%s13459_s7 + $0x9a0] sm:$0xff]  }
0x18ae   :  { %v7353_v59 = vmax.f32 %v7033_v33, 0.0  ;;  %v7355_v51 = vmax.f32 %v7076_v55, 0.0  ;;  %v7625_v26 = vpack.c.bf16 %v7352_v58, %v7336_v2  ;;  %v7627_v22 = vpack.c.bf16 %v7354_v52, %v7338_v24  ;;  %v11096_v33 = vld [vmem:[%s13459_s7 + $0x9d8] sm:$0xff]   ;;  %v11102_v2 = vld [vmem:[%s13459_s7 + $0x990] sm:$0xff]   ;;  %v11103_v24 = vld [vmem:[%s13459_s7 + $0x948] sm:$0xff]  }
0x18af   :  { %v7114_v48 = vpop.f32.mrf.mxu0  ;;  %v7157_v23 = vpop.f32.mrf.mxu1  ;;  %v11097_v58 = vld [vmem:[%s13459_s7 + $0x918] sm:$0xff]  }
0x18b0   :  { %v7626_v0 = vpack.c.bf16 %v7353_v59, %v7337_v63  ;;  %v7628_v61 = vpack.c.bf16 %v7355_v51, %v7339_v49  ;;  %v7115_v42 = vadd.f32 %v7114_v48, %v6852_v35  ;;  %v7158_v30 = vadd.f32 %v7157_v23, %v6860_v43  ;;  %v11100_v63 = vld [vmem:[%s13459_s7 + $0x9d0] sm:$0xff]   ;;  %v11104_v48 = vld [vmem:[%s13459_s7 + $0x9c8] sm:$0xff]  }
0x18b1   :  { %v13087_v60 = vpop.f32.mrf.mxu0  ;;  %v13089_v50 = vpop.f32.mrf.mxu1  ;;  %v11101_v59 = vld [vmem:[%s13459_s7 + $0x910] sm:$0xff]   ;;  %v6848_v23 = vrot.slane %v13063_v10, %v11465_v46 }
0x18b2   :  { %8445 = vmatprep.mubr.bf16.mxu0 %v7626_v0  ;;  %8486 = vmatprep.mubr.bf16.mxu1 %v7628_v61  ;;  %v7341_v31 = vmax.f32 %v7115_v42, 0.0  ;;  %v7343_v16 = vmax.f32 %v7158_v30, 0.0  ;;  %v6856_v0 = vrot.slane %v13063_v10, %v11462_v44  ;;  %v13172_v61 = vld [vmem:[%s13458_s6 + $0x28] sm:$0xff] }
0x18b3   :  { %v7118_v20 = vpop.f32.mrf.mxu0  ;;  %v7161_v6 = vpop.f32.mrf.mxu1  ;;  %8446 = vmatmul.mubr.bf16.vlgmr.msra.gmra.mxu0 %v7625_v26  ;;  %8487 = vmatmul.mubr.bf16.vlgmr.msra.gmra.mxu1 %v7627_v22  ;;  %v7117_v26 = vadd.f32 %v13087_v60, %v6848_v23  ;;  %v6868_v22 = vrot.slane %v13172_v61, %v11446_v27  ;;  %v11106_v10 = vld [vmem:[%s13459_s7 + $0x988] sm:$0xff]   ;;  %v6876_v30 = vrot.slane %v13172_v61, %v11455_v37  ;;  %v11108_v27 = vld [vmem:[%s13459_s7 + $0x9c0] sm:$0xff]  }
0x18b4   :  { %v7119_v17 = vadd.f32 %v7118_v20, %v6852_v35  ;;  %v7162_v32 = vadd.f32 %v7161_v6, %v6860_v43  ;;  %10449 = vmatpush3.bf16.msra.mxu0 %v11081_v57  ;;  %10471 = vmatpush3.bf16.msra.mxu1 %v11082_v62  ;;  %v11098_v35 = vld [vmem:[%s13459_s7 + $0x998] sm:$0xff]   ;;  %v11099_v43 = vld [vmem:[%s13459_s7 + $0x950] sm:$0xff]   ;;  %v11105_v62 = vld [vmem:[%s13459_s7 + $0x908] sm:$0xff]   ;;  %v7160_v42 = vadd.f32 %v13089_v50, %v6856_v0 }
0x18b5   :  { %10450 = vmatprep.subr.bf16.mxu0 %v11083_v8  ;;  %10472 = vmatprep.subr.bf16.mxu1 %v11084_v18  ;;  %v13121_v47 = vpop.f32.mrf.mxu0  ;;  %v13126_v3 = vpop.f32.mrf.mxu1  ;;  %v11107_v18 = vld [vmem:[%s13459_s7 + $0x940] sm:$0xff]   ;;  %v7113_v60 = vadd.f32 %v13073_v34, %v6848_v23  ;;  %v7156_v6 = vadd.f32 %v13075_v12, %v6856_v0  ;;  %v7356_v50 = vmax.f32 %v7117_v26, 0.0  ;;  %v11111_v34 = vld [vmem:[%s13459_s7 + $0xa78] sm:$0xff]  }
0x18b6   :  { %v7357_v15 = vmax.f32 %v7119_v17, 0.0  ;;  %v7359_v39 = vmax.f32 %v7162_v32, 0.0  ;;  %v11109_v32 = vld [vmem:[%s13459_s7 + $0x900] sm:$0xff]  }
0x18b7   :  { %v7200_v55 = vpop.f32.mrf.mxu0  ;;  %v7243_v52 = vpop.f32.mrf.mxu1  ;;  %v11126_v0 = vld [vmem:[%s13459_s7 + $0xaa0] sm:$0xff]  }
0x18b8   :  { %v7630_v40 = vpack.c.bf16 %v7357_v15, %v7341_v31  ;;  %v7632_v11 = vpack.c.bf16 %v7359_v39, %v7343_v16  ;;  %10451 = vmatpush3.bf16.msra.mxu0 %v11085_v9  ;;  %10473 = vmatpush3.bf16.msra.mxu1 %v11086_v36  ;;  %v7201_v9 = vadd.f32 %v7200_v55, %v6868_v22  ;;  %v11110_v36 = vld [vmem:[%s13459_s7 + $0x980] sm:$0xff]   ;;  %v11112_v31 = vld [vmem:[%s13459_s7 + $0xaf8] sm:$0xff]   ;;  %v7340_v16 = vmax.f32 %v7113_v60, 0.0  ;;  %v11117_v55 = vld [vmem:[%s13459_s7 + $0xa30] sm:$0xff]  }
0x18b9   :  { %10452 = vmatprep.subr.bf16.mxu0 %v11087_v4  ;;  %10474 = vmatprep.subr.bf16.mxu1 %v11088_v41  ;;  %v13149_v49 = vpop.f32.mrf.mxu0  ;;  %v13154_v51 = vpop.f32.mrf.mxu1  ;;  %v7358_v4 = vmax.f32 %v7160_v42, 0.0  ;;  %v7244_v12 = vadd.f32 %v7243_v52, %v6876_v30  ;;  %v7342_v39 = vmax.f32 %v7156_v6, 0.0  ;;  %v11119_v52 = vld [vmem:[%s13459_s7 + $0xa68] sm:$0xff]   ;;  %v11132_v42 = vld [vmem:[%s13459_s7 + $0xad0] sm:$0xff]  }
0x18ba   :  { %8527 = vmatprep.mubr.bf16.mxu0 %v7630_v40  ;;  %8568 = vmatprep.mubr.bf16.mxu1 %v7632_v11  ;;  %v11113_v40 = vld [vmem:[%s13459_s7 + $0xa38] sm:$0xff]   ;;  %v7629_v11 = vpack.c.bf16 %v7356_v50, %v7340_v16  ;;  %v11135_v6 = vld [vmem:[%s13459_s7 + $0xa48] sm:$0xff]   ;;  %v6872_v50 = vrot.slane %v13172_v61, %v11508_v53  ;;  %v11139_v53 = vld [vmem:[%s13459_s7 + $0xa40] sm:$0xff]   ;;  %v6892_v16 = vrot.slane %v13172_v61, %v11474_v54 }
0x18bb   :  { %v7204_v57 = vpop.f32.mrf.mxu0  ;;  %v7247_v8 = vpop.f32.mrf.mxu1  ;;  %v11142_v54 = vld [vmem:[%s13459_s7 + $0xa80] sm:$0xff]  }
0x18bc   :  { %10453 = vmatpush3.bf16.msra.mxu0 %v11089_v28  ;;  %10475 = vmatpush3.bf16.msra.mxu1 %v11090_v45  ;;  %v7205_v20 = vadd.f32 %v7204_v57, %v6868_v22  ;;  %v7248_v17 = vadd.f32 %v7247_v8, %v6876_v30  ;;  %v7345_v28 = vmax.f32 %v7201_v9, 0.0  ;;  %v11114_v45 = vld [vmem:[%s13459_s7 + $0xab8] sm:$0xff]  }
0x18bd   :  { %10454 = vmatprep.subr.bf16.mxu0 %v11091_v21  ;;  %10476 = vmatprep.subr.bf16.mxu1 %v11092_v56  ;;  %v7631_v21 = vpack.c.bf16 %v7358_v4, %v7342_v39  ;;  %v7347_v56 = vmax.f32 %v7244_v12, 0.0  ;;  %v13247_v23 = vpop.f32.mrf.mxu1  ;;  %v11127_v57 = vld [vmem:[%s13459_s7 + $0xa58] sm:$0xff]   ;;  %v6884_v4 = vrot.slane %v13172_v61, %v11484_v5 }
0x18be   :  { %v7361_v15 = vmax.f32 %v7205_v20, 0.0  ;;  %v7363_v41 = vmax.f32 %v7248_v17, 0.0  ;;  %v11129_v22 = vld [vmem:[%s13459_s7 + $0xa18] sm:$0xff]   ;;  %v11134_v20 = vld [vmem:[%s13459_s7 + $0xa90] sm:$0xff]   ;;  %v11136_v17 = vld [vmem:[%s13459_s7 + $0xac8] sm:$0xff]  }
0x18bf   :  { %v7329_v8 = vpop.f32.mrf.mxu1 }
0x18c0   :  { %10455 = vmatpush3.bf16.msra.mxu0 %v11093_v38  ;;  %10477 = vmatpush3.bf16.msra.mxu1 %v11094_v19  ;;  %v11115_v38 = vld [vmem:[%s13459_s7 + $0xa70] sm:$0xff]   ;;  %v7634_v19 = vpack.c.bf16 %v7361_v15, %v7345_v28 }
0x18c1   :  { %10456 = vmatprep.subr.bf16.mxu0 %v11095_v29  ;;  %10478 = vmatprep.subr.bf16.mxu1 %v11096_v33  ;;  %v11116_v29 = vld [vmem:[%s13459_s7 + $0xaf0] sm:$0xff]   ;;  %v7636_v33 = vpack.c.bf16 %v7363_v41, %v7347_v56  ;;  %v13275_v60 = vpop.f32.mrf.mxu1  ;;  %v7242_v41 = vadd.f32 %v13126_v3, %v6872_v50  ;;  %v7330_v3 = vadd.f32 %v7329_v8, %v6892_v16  ;;  %v11154_v8 = vld [vmem:[%s13459_s7 + $0xba8] sm:$0xff]  }
0x18c3   :  { %v7333_v12 = vpop.f32.mrf.mxu1 }
0x18c4   :  { %10457 = vmatpush3.bf16.msra.mxu0 %v11097_v58  ;;  %10479 = vmatpush3.bf16.msra.mxu1 %v11098_v35  ;;  %v11118_v58 = vld [vmem:[%s13459_s7 + $0xab0] sm:$0xff]   ;;  %v11120_v35 = vld [vmem:[%s13459_s7 + $0xae8] sm:$0xff]  }
0x18c5   :  { %10458 = vmatprep.subr.bf16.mxu0 %v11099_v43  ;;  %10480 = vmatprep.subr.bf16.mxu1 %v11100_v63  ;;  %v11121_v43 = vld [vmem:[%s13459_s7 + $0xa28] sm:$0xff]  }
0x18c6   :  { %v11122_v63 = vld [vmem:[%s13459_s7 + $0xaa8] sm:$0xff]  }
0x18c8   :  { %10459 = vmatpush3.bf16.msra.mxu0 %v11101_v59  ;;  %10481 = vmatpush3.bf16.msra.mxu1 %v11102_v2  ;;  %v11123_v59 = vld [vmem:[%s13459_s7 + $0xa60] sm:$0xff]  }
0x18c9   :  { %10460 = vmatprep.subr.bf16.mxu0 %v11103_v24  ;;  %10482 = vmatprep.subr.bf16.mxu1 %v11104_v48  ;;  %v11124_v2 = vld [vmem:[%s13459_s7 + $0xae0] sm:$0xff]   ;;  %v13242_v24 = vpop.f32.mrf.mxu0 }
0x18ca   :  { %v11125_v48 = vld [vmem:[%s13459_s7 + $0xa20] sm:$0xff]  }
0x18cb   :  { %v7286_v26 = vpop.f32.mrf.mxu0 }
0x18cc   :  { %10461 = vmatpush3.bf16.msra.mxu0 %v11105_v62  ;;  %10483 = vmatpush3.bf16.msra.mxu1 %v11106_v10  ;;  %v11128_v62 = vld [vmem:[%s13459_s7 + $0xad8] sm:$0xff]   ;;  %v7287_v28 = vadd.f32 %v7286_v26, %v6884_v4  ;;  %v11152_v26 = vld [vmem:[%s13459_s7 + $0xbe8] sm:$0xff]  }
0x18cd   :  { %10462 = vmatprep.subr.bf16.mxu0 %v11107_v18  ;;  %10484 = vmatprep.subr.bf16.mxu1 %v11108_v27  ;;  %v11130_v10 = vld [vmem:[%s13459_s7 + $0xa98] sm:$0xff]   ;;  %v11131_v18 = vld [vmem:[%s13459_s7 + $0xa50] sm:$0xff]   ;;  %v13270_v30 = vpop.f32.mrf.mxu0 }
0x18ce   :  { %v11133_v27 = vld [vmem:[%s13459_s7 + $0xa10] sm:$0xff]  }
0x18cf   :  { %v7290_v9 = vpop.f32.mrf.mxu0 }
0x18d0   :  { %10463 = vmatpush3.bf16.msra.mxu0 %v11109_v32  ;;  %10485 = vmatpush3.bf16.msra.mxu1 %v11110_v36  ;;  %v6864_v32 = vrot.slane %v13172_v61, %v11438_v25  ;;  %v11137_v36 = vld [vmem:[%s13459_s7 + $0xa08] sm:$0xff]   ;;  %v7291_v39 = vadd.f32 %v7290_v9, %v6884_v4  ;;  %v11164_v9 = vld [vmem:[%s13459_s7 + $0xbd0] sm:$0xff]  }
0x18d1   :  { %10492 = vmatprep.subr.bf16.mxu0 %v11111_v34  ;;  %10514 = vmatprep.subr.bf16.mxu1 %v11112_v31  ;;  %v11138_v25 = vld [vmem:[%s13459_s7 + $0xa88] sm:$0xff]   ;;  %v7246_v31 = vadd.f32 %v13154_v51, %v6872_v50  ;;  %v11163_v50 = vld [vmem:[%s13459_s7 + $0xb50] sm:$0xff]  }
0x18d2   :  { %v7203_v34 = vadd.f32 %v13149_v49, %v6864_v32  ;;  %v11140_v49 = vld [vmem:[%s13459_s7 + $0xac0] sm:$0xff]   ;;  %v7199_v15 = vadd.f32 %v13121_v47, %v6864_v32  ;;  %v11143_v47 = vld [vmem:[%s13459_s7 + $0xb78] sm:$0xff]   ;;  %v11167_v4 = vld [vmem:[%s13459_s7 + $0xb48] sm:$0xff]  }
0x18d3   :  { %8528 = vmatmul.mubr.bf16.vlgmr.msra.gmra.mxu0 %v7629_v11  ;;  %8569 = vmatmul.mubr.bf16.vlgmr.msra.gmra.mxu1 %v7631_v21  ;;  %v11141_v11 = vld [vmem:[%s13459_s7 + $0xa00] sm:$0xff]   ;;  %v11144_v21 = vld [vmem:[%s13459_s7 + $0xbf8] sm:$0xff]  }
0x18d4   :  { %10493 = vmatpush3.bf16.msra.mxu0 %v11113_v40  ;;  %8609 = vmatprep.mubr.bf16.mxu0 %v7634_v19  ;;  %v7334_v40 = vadd.f32 %v7333_v12, %v6892_v16  ;;  %v7360_v51 = vmax.f32 %v7203_v34, 0.0  ;;  %v7344_v56 = vmax.f32 %v7199_v15, 0.0  ;;  %v7346_v19 = vmax.f32 %v7242_v41, 0.0  ;;  %v11162_v32 = vld [vmem:[%s13459_s7 + $0xb98] sm:$0xff]   ;;  %v11166_v34 = vld [vmem:[%s13459_s7 + $0xb90] sm:$0xff]   ;;  %v11168_v12 = vld [vmem:[%s13459_s7 + $0xbc8] sm:$0xff]  }
0x18d5   :  { %10515 = vmatpush3.bf16.msra.mxu1 %v11114_v45  ;;  %8650 = vmatprep.mubr.bf16.mxu1 %v7636_v33  ;;  %v7362_v45 = vmax.f32 %v7246_v31, 0.0  ;;  %v11145_v33 = vld [vmem:[%s13459_s7 + $0xb38] sm:$0xff]   ;;  %v11169_v31 = vld [vmem:[%s13459_s7 + $0xb08] sm:$0xff]   ;;  %v11171_v15 = vld [vmem:[%s13459_s7 + $0xb40] sm:$0xff]  }
0x18d6   :  { %10494 = vmatprep.subr.bf16.mxu0 %v11115_v38  ;;  %10516 = vmatprep.subr.bf16.mxu1 %v11116_v29  ;;  %v7365_v38 = vmax.f32 %v7291_v39, 0.0  ;;  %v7367_v29 = vmax.f32 %v7334_v40, 0.0  ;;  %v11173_v41 = vld [vmem:[%s13459_s7 + $0xb00] sm:$0xff]  }
0x18d8   :  { %10495 = vmatpush3.bf16.msra.mxu0 %v11117_v55  ;;  %v7633_v55 = vpack.c.bf16 %v7360_v51, %v7344_v56 }
0x18d9   :  { %10517 = vmatpush3.bf16.msra.mxu1 %v11118_v58  ;;  %10496 = vmatprep.subr.bf16.mxu0 %v11119_v52  ;;  %v7349_v58 = vmax.f32 %v7287_v28, 0.0  ;;  %v11146_v52 = vld [vmem:[%s13459_s7 + $0xbb8] sm:$0xff]  }
0x18da   :  { %10518 = vmatprep.subr.bf16.mxu1 %v11120_v35  ;;  %v7635_v35 = vpack.c.bf16 %v7362_v45, %v7346_v19 }
0x18dc   :  { %10497 = vmatpush3.bf16.msra.mxu0 %v11121_v43  ;;  %v7351_v43 = vmax.f32 %v7330_v3, 0.0 }
0x18dd   :  { %10519 = vmatpush3.bf16.msra.mxu1 %v11122_v63  ;;  %10498 = vmatprep.subr.bf16.mxu0 %v11123_v59  ;;  %v11147_v63 = vld [vmem:[%s13459_s7 + $0xb70] sm:$0xff]   ;;  %v7638_v59 = vpack.c.bf16 %v7365_v38, %v7349_v58 }
0x18de   :  { %10520 = vmatprep.subr.bf16.mxu1 %v11124_v2  ;;  %v11148_v2 = vld [vmem:[%s13459_s7 + $0xbf0] sm:$0xff]  }
0x18e0   :  { %10499 = vmatpush3.bf16.msra.mxu0 %v11125_v48  ;;  %v7640_v48 = vpack.c.bf16 %v7367_v29, %v7351_v43 }
0x18e1   :  { %10521 = vmatpush3.bf16.msra.mxu1 %v11126_v0  ;;  %10500 = vmatprep.subr.bf16.mxu0 %v11127_v57  ;;  %v11149_v0 = vld [vmem:[%s13459_s7 + $0xb30] sm:$0xff]  }
0x18e2   :  { %10522 = vmatprep.subr.bf16.mxu1 %v11128_v62  ;;  %v11150_v57 = vld [vmem:[%s13459_s7 + $0xbb0] sm:$0xff]   ;;  %v11151_v62 = vld [vmem:[%s13459_s7 + $0xb68] sm:$0xff]  }
0x18e4   :  { %10501 = vmatpush3.bf16.msra.mxu0 %v11129_v22  ;;  %v11153_v22 = vld [vmem:[%s13459_s7 + $0xb28] sm:$0xff]  }
0x18e5   :  { %10523 = vmatpush3.bf16.msra.mxu1 %v11130_v10  ;;  %10502 = vmatprep.subr.bf16.mxu0 %v11131_v18  ;;  %v11155_v10 = vld [vmem:[%s13459_s7 + $0xb60] sm:$0xff]  }
0x18e6   :  { %10524 = vmatprep.subr.bf16.mxu1 %v11132_v42  ;;  %v11156_v18 = vld [vmem:[%s13459_s7 + $0xbe0] sm:$0xff]  }
0x18e7   :  { %v11157_v42 = vld [vmem:[%s13459_s7 + $0xb20] sm:$0xff]  }
0x18e8   :  { %10503 = vmatpush3.bf16.msra.mxu0 %v11133_v27  ;;  %v11158_v27 = vld [vmem:[%s13459_s7 + $0xba0] sm:$0xff]  }
0x18e9   :  { %10525 = vmatpush3.bf16.msra.mxu1 %v11134_v20  ;;  %10504 = vmatprep.subr.bf16.mxu0 %v11135_v6  ;;  %v11159_v20 = vld [vmem:[%s13459_s7 + $0xb58] sm:$0xff]  }
0x18ea   :  { %10526 = vmatprep.subr.bf16.mxu1 %v11136_v17  ;;  %v11160_v6 = vld [vmem:[%s13459_s7 + $0xbd8] sm:$0xff]  }
0x18eb   :  { %v11161_v17 = vld [vmem:[%s13459_s7 + $0xb18] sm:$0xff]  }
0x18ec   :  { %10505 = vmatpush3.bf16.msra.mxu0 %v11137_v36  ;;  %v11165_v36 = vld [vmem:[%s13459_s7 + $0xb10] sm:$0xff]  }
0x18ed   :  { %10527 = vmatpush3.bf16.msra.mxu1 %v11138_v25  ;;  %10506 = vmatprep.subr.bf16.mxu0 %v11139_v53  ;;  %v6880_v25 = vrot.slane %v13172_v61, %v11465_v46  ;;  %v6888_v53 = vrot.slane %v13172_v61, %v11462_v44  ;;  %v11172_v44 = vld [vmem:[%s13459_s7 + $0xbc0] sm:$0xff]  }
0x18ee   :  { %10528 = vmatprep.subr.bf16.mxu1 %v11140_v49  ;;  %v11170_v49 = vld [vmem:[%s13459_s7 + $0xb88] sm:$0xff]  }
0x18ef   :  { %v7289_v16 = vadd.f32 %v13270_v30, %v6880_v25  ;;  %v7332_v39 = vadd.f32 %v13275_v60, %v6888_v53  ;;  %v7285_v61 = vadd.f32 %v13242_v24, %v6880_v25  ;;  %v7328_v30 = vadd.f32 %v13247_v23, %v6888_v53  ;;  %v11174_v60 = vld [vmem:[%s13459_s7 + $0xb80] sm:$0xff]  }
0x18f0   :  { %10507 = vmatpush3.bf16.msra.mxu0 %v11141_v11 }
0x18f1   :  { %10529 = vmatpush3.bf16.msra.mxu1 %v11142_v54  ;;  %10536 = vmatprep.subr.bf16.mxu0 %v11143_v47  ;;  %v7364_v40 = vmax.f32 %v7289_v16, 0.0  ;;  %v7366_v11 = vmax.f32 %v7332_v39, 0.0  ;;  %v7348_v51 = vmax.f32 %v7285_v61, 0.0  ;;  %v7350_v28 = vmax.f32 %v7328_v30, 0.0 }
0x18f2   :  { %10558 = vmatprep.subr.bf16.mxu1 %v11144_v21 }
0x18f3   :  { %8610 = vmatmul.mubr.bf16.vlgmr.msra.gmra.mxu0 %v7633_v55  ;;  %v7637_v24 = vpack.c.bf16 %v7364_v40, %v7348_v51  ;;  %v7639_v23 = vpack.c.bf16 %v7366_v11, %v7350_v28 }
0x18f4   :  { %8651 = vmatmul.mubr.bf16.vlgmr.msra.gmra.mxu1 %v7635_v35  ;;  %10537 = vmatpush3.bf16.msra.mxu0 %v11145_v33 }
0x18f5   :  { %8691 = vmatprep.mubr.bf16.mxu0 %v7638_v59  ;;  %10559 = vmatpush3.bf16.msra.mxu1 %v11146_v52 }
0x18f6   :  { %8732 = vmatprep.mubr.bf16.mxu1 %v7640_v48  ;;  %10538 = vmatprep.subr.bf16.mxu0 %v11147_v63  ;;  %v13426_v63 = vld [vmem:[%s13460_s8 + $0x10] sm:$0xff] }
0x18f7   :  { %10560 = vmatprep.subr.bf16.mxu1 %v11148_v2 }
0x18f8   :  { %10539 = vmatpush3.bf16.msra.mxu0 %v11149_v0 }
0x18f9   :  { %10561 = vmatpush3.bf16.msra.mxu1 %v11150_v57  ;;  %10540 = vmatprep.subr.bf16.mxu0 %v11151_v62 }
0x18fa   :  { %10562 = vmatprep.subr.bf16.mxu1 %v11152_v26 }
0x18fc   :  { %10541 = vmatpush3.bf16.msra.mxu0 %v11153_v22 }
0x18fd   :  { %10563 = vmatpush3.bf16.msra.mxu1 %v11154_v8  ;;  %10542 = vmatprep.subr.bf16.mxu0 %v11155_v10 }
0x18fe   :  { %10564 = vmatprep.subr.bf16.mxu1 %v11156_v18 }
0x1900   :  { %10543 = vmatpush3.bf16.msra.mxu0 %v11157_v42 }
0x1901   :  { %10565 = vmatpush3.bf16.msra.mxu1 %v11158_v27  ;;  %10544 = vmatprep.subr.bf16.mxu0 %v11159_v20 }
0x1902   :  { %10566 = vmatprep.subr.bf16.mxu1 %v11160_v6 }
0x1904   :  { %10545 = vmatpush3.bf16.msra.mxu0 %v11161_v17 }
0x1905   :  { %10567 = vmatpush3.bf16.msra.mxu1 %v11162_v32  ;;  %10546 = vmatprep.subr.bf16.mxu0 %v11163_v50 }
0x1906   :  { %10568 = vmatprep.subr.bf16.mxu1 %v11164_v9 }
0x1908   :  { %10547 = vmatpush3.bf16.msra.mxu0 %v11165_v36 }
0x1909   :  { %10569 = vmatpush3.bf16.msra.mxu1 %v11166_v34  ;;  %10548 = vmatprep.subr.bf16.mxu0 %v11167_v4 }
0x190a   :  { %10570 = vmatprep.subr.bf16.mxu1 %v11168_v12 }
0x190c   :  { %10549 = vmatpush3.bf16.msra.mxu0 %v11169_v31 }
0x190d   :  { %10571 = vmatpush3.bf16.msra.mxu1 %v11170_v49  ;;  %10550 = vmatprep.subr.bf16.mxu0 %v11171_v15 }
0x190e   :  { %10572 = vmatprep.subr.bf16.mxu1 %v11172_v44 }
0x1910   :  { %10551 = vmatpush3.bf16.msra.mxu0 %v11173_v41 }
0x1911   :  { %10573 = vmatpush3.bf16.msra.mxu1 %v11174_v60  ;;  %10738 = vmatprep.subr.bf16.mxu0 %v11301_v1 }
0x1913   :  { %8692 = vmatmul.mubr.bf16.vlgmr.msra.gmra.mxu0 %v7637_v24 }
0x1914   :  { %8733 = vmatmul.mubr.bf16.vlgmr.msra.gmra.mxu1 %v7639_v23  ;;  %10740 = vmatprep.mubr.msk.bf16.mxu0 %vm11302_vm0, %v11301_v1  ;;  %v7644_v1 = vrot.slane %v13426_v63, %v11455_v37 }
0x1973   :  { %v10420_v54 = vpop.f32.mrf.mxu0  ;;  %v10442_v47 = vpop.f32.mrf.mxu1 }
0x1975   :  { %v10421_v45 = vpop.f32.mrf.mxu0  ;;  %v10443_v3 = vpop.f32.mrf.mxu1 }
0x1976   :  { %v10422_v59 = vadd.f32 %v10421_v45, %v10420_v54  ;;  %v10444_v22 = vadd.f32 %v10443_v3, %v10442_v47 }
0x1977   :  { %v10423_v21 = vpop.f32.mrf.mxu0  ;;  %v10445_v56 = vpop.f32.mrf.mxu1 }
0x1978   :  { %v8448_v0 = vadd.f32 %v10422_v59, %v7644_v1 }
0x1979   :  { %v10424_v38 = vpop.f32.mrf.mxu0  ;;  %v10446_v29 = vpop.f32.mrf.mxu1 }
0x197a   :  { %v10425_v57 = vadd.f32 %v10424_v38, %v10423_v21  ;;  %v8489_v10 = vadd.f32 %v10444_v22, %v8448_v0  ;;  %v10447_v20 = vadd.f32 %v10446_v29, %v10445_v56 }
0x197c   :  { %v8451_v18 = vadd.f32 %v10425_v57, %v7644_v1 }
0x197e   :  { %v8492_v32 = vadd.f32 %v10447_v20, %v8451_v18  ;;  %v8780_v20 = vrot.slane %v13426_v63, %v11484_v5  ;;  %v9966_v5 = vld [vmem:[%s13462_s10] ss:$0 sm:$0xff] }
0x1993   :  { %v10464_v19 = vpop.f32.mrf.mxu0  ;;  %v10486_v33 = vpop.f32.mrf.mxu1 }
0x1995   :  { %v10465_v55 = vpop.f32.mrf.mxu0  ;;  %v10487_v58 = vpop.f32.mrf.mxu1 }
0x1996   :  { %v10466_v8 = vadd.f32 %v10465_v55, %v10464_v19  ;;  %v10488_v50 = vadd.f32 %v10487_v58, %v10486_v33 }
0x1997   :  { %v10467_v52 = vpop.f32.mrf.mxu0  ;;  %v10489_v35 = vpop.f32.mrf.mxu1 }
0x1998   :  { %v8530_v6 = vadd.f32 %v10466_v8, %v8489_v10 }
0x1999   :  { %v10468_v43 = vpop.f32.mrf.mxu0  ;;  %v10490_v48 = vpop.f32.mrf.mxu1 }
0x199a   :  { %v10469_v17 = vadd.f32 %v10468_v43, %v10467_v52  ;;  %v8571_v34 = vadd.f32 %v10488_v50, %v8530_v6  ;;  %v10491_v12 = vadd.f32 %v10490_v48, %v10489_v35 }
0x199c   :  { %v8533_v4 = vadd.f32 %v10469_v17, %v8492_v32 }
0x199e   :  { %v8574_v49 = vadd.f32 %v10491_v12, %v8533_v4 }
0x19b3   :  { %v10508_v2 = vpop.f32.mrf.mxu0 }
0x19b4   :  { %v10530_v62 = vpop.f32.mrf.mxu1 }
0x19b5   :  { %v10509_v26 = vpop.f32.mrf.mxu0 }
0x19b6   :  { %v10531_v42 = vpop.f32.mrf.mxu1  ;;  %v10510_v9 = vadd.f32 %v10509_v26, %v10508_v2 }
0x19b7   :  { %v10511_v27 = vpop.f32.mrf.mxu0  ;;  %v10532_v15 = vadd.f32 %v10531_v42, %v10530_v62  ;;  %v11175_v62 = vld [vmem:[%s13461_s9] sm:$0xff]  }
0x19b8   :  { %v10533_v37 = vpop.f32.mrf.mxu1  ;;  %v8612_v25 = vadd.f32 %v10510_v9, %v8571_v34  ;;  %10739 = vmatpush3.bf16.msra.mxu0 %v11175_v62 }
0x19b9   :  { %v10512_v36 = vpop.f32.mrf.mxu0 }
0x19ba   :  { %v10513_v53 = vadd.f32 %v10512_v36, %v10511_v27  ;;  %v10534_v31 = vpop.f32.mrf.mxu1  ;;  %v8653_v61 = vadd.f32 %v10532_v15, %v8612_v25 }
0x19bb   :  { %v10535_v11 = vadd.f32 %v10534_v31, %v10533_v37 }
0x19bc   :  { %v8615_v30 = vadd.f32 %v10513_v53, %v8574_v49 }
0x19be   :  { %v8656_v54 = vadd.f32 %v10535_v11, %v8615_v30 }
0x19d3   :  { %v10552_v16 = vpop.f32.mrf.mxu0 }
0x19d4   :  { %v10574_v39 = vpop.f32.mrf.mxu1 }
0x19d5   :  { %v10553_v44 = vpop.f32.mrf.mxu0 }
0x19d6   :  { %v10554_v41 = vadd.f32 %v10553_v44, %v10552_v16  ;;  %v10575_v40 = vpop.f32.mrf.mxu1 }
0x19d7   :  { %v10555_v60 = vpop.f32.mrf.mxu0  ;;  %v10576_v28 = vadd.f32 %v10575_v40, %v10574_v39 }
0x19d8   :  { %v8694_v51 = vadd.f32 %v10554_v41, %v8653_v61  ;;  %v10577_v24 = vpop.f32.mrf.mxu1 }
0x19d9   :  { %v10556_v23 = vpop.f32.mrf.mxu0 }
0x19da   :  { %v8735_v47 = vadd.f32 %v10576_v28, %v8694_v51  ;;  %v10557_v45 = vadd.f32 %v10556_v23, %v10555_v60  ;;  %v10578_v3 = vpop.f32.mrf.mxu1 }
0x19db   :  { %v10579_v56 = vadd.f32 %v10578_v3, %v10577_v24 }
0x19dc   :  { %v8697_v21 = vadd.f32 %v10557_v45, %v8656_v54  ;;  %v8741_v38 = vadd.f32 %v8735_v47, %v12919_v13 }
0x19de   :  { %v8738_v19 = vadd.f32 %v10579_v56, %v8697_v21  ;;  %v8743_v29 = vsel %vm234_vm2, %v8741_v38, 0.0 }
0x19df   :  { %8744 = vadd.xlane.f32.xlu0 %v8743_v29 }
0x19e0   :  { %v8742_v33 = vadd.f32 %v8738_v19, %v12917_v14 }
0x19e2   :  { %v8746_v55 = vsel %vm234_vm2, %v8742_v33, 0.0 }
0x19e3   :  { %8747 = vadd.xlane.f32.xlu1 %v8746_v55 }
0x1a68   :  { %v8745_v58 = vpop.xlane.xlu0 %8744 }
0x1a69   :  { %v8749_v52 = vmul.f32 0.11111111, %v8745_v58 }
0x1a6b   :  { %v8751_v35 = vsub.f32 %v8741_v38, %v8749_v52 }
0x1a6c   :  { %v8748_v43 = vpop.xlane.xlu1 %8747 }
0x1a6d   :  { %v8750_v1 = vmul.f32 0.11111111, %v8748_v43  ;;  %v8753_v59 = vmul.f32 %v11546_v7, %v8751_v35 }
0x1a6f   :  { %v8752_v2 = vsub.f32 %v8742_v33, %v8750_v1  ;;  %v8755_v48 = vmul.f32 %v8753_v59, %v8753_v59 }
0x1a71   :  { %v8757_v13 = vsel %vm234_vm2, %v8755_v48, 0.0  ;;  %v8754_v0 = vmul.f32 %v11546_v7, %v8752_v2  ;;  %v8774_v7 = vrot.slane %v13426_v63, %v11465_v46 }
0x1a72   :  { %8758 = vadd.xlane.f32.xlu0 %v8757_v13 }
0x1a73   :  { %v8756_v57 = vmul.f32 %v8754_v0, %v8754_v0 }
0x1a75   :  { %v8760_v14 = vsel %vm234_vm2, %v8756_v57, 0.0 }
0x1a76   :  { %8761 = vadd.xlane.f32.xlu1 %v8760_v14 }
0x1afb   :  { %v8759_v26 = vpop.xlane.xlu0 %8758 }
0x1afc   :  { %v8763_v22 = vmul.f32 0.11111111, %v8759_v26 }
0x1afe   :  { %v8765_v8 = vadd.f32 1e-05, %v8763_v22 }
0x1aff   :  { %v8762_v10 = vpop.xlane.xlu1 %8761 }
0x1b00   :  { %11268 = vrsqrt.f32 %v8765_v8  ;;  %v8764_v18 = vmul.f32 0.11111111, %v8762_v10 }
0x1b02   :  { %v8766_v42 = vadd.f32 1e-05, %v8764_v18 }
0x1b04   :  { %11270 = vrsqrt.f32 %v8766_v42 }
0x1b0d   :  { %v11269_v27 = vpop.eup %11268 }
0x1b0e   :  { %v8769_v6 = vmul.f32 %v11269_v27, %v8753_v59 }
0x1b10   :  { %v8775_v17 = vmul.f32 %v8774_v7, %v8769_v6 }
0x1b11   :  { %v11271_v32 = vpop.eup %11270 }
0x1b12   :  { %v8781_v50 = vadd.f32 %v8780_v20, %v8775_v17  ;;  %v8770_v9 = vmul.f32 %v11271_v32, %v8754_v0 }
0x1b14   :  { %v8785_v37 = vpack.c.bf16 %v8781_v50, %v8781_v50  ;;  %v8776_v36 = vmul.f32 %v8774_v7, %v8770_v9 }
0x1b16   :  { %v8782_v34 = vadd.f32 %v8780_v20, %v8776_v36  ;;  %v8796_v4 = vunpack.c.l.b16 %v8785_v37 }
0x1b18   :  { %v8786_v12 = vpack.c.bf16 %v8782_v34, %v8782_v34  ;;  %v8798_v53 = vrot.slane %v8796_v4, 7 }
0x1b1a   :  { %v8797_v25 = vunpack.c.l.b16 %v8786_v12 }
0x1b1c   :  { %v8799_v31 = vrot.slane %v8797_v25, 6 }
0x1b1e   :  { %v8801_v16 = vsel %vm8800_vm4, %v8799_v31, %v8798_v53 }
0x1b1f   :  { %v8802_v46 = vpack.c.b16 %v8801_v16, %v8801_v16 }
0x1b21   :  { %10741 = vmatmul.mubr.msk.bf16.vlgmr.msra.gmra.mxu0 %vm234_vm2, %v8802_v46 }
0x1be1   :  { %v8846_v63 = vpop.f32.mrf.mxu0 }
0x1be2   :  { %v8847_v49 = vadd.f32 %v9966_v5, %v8846_v63 }
0x1be3   :  { %v10742_v15 = vpop.f32.mrf.mxu0 }
0x1be4   :  { %8852 = vst [vmem:[#allocation2] sm:$0x3] %v8847_v49 }
0x1be5   :  { %v8849_v39 = vpop.f32.mrf.mxu0 }
0x1be6   :  { %11290 = shalt.err (!%p11287_p4)
}
0x1be7   :  { %8862 = dma.vmem_to_hbm [thread:$0]  %s8860_s20, 32, %s13463_s11, [#allocation3]   ;;  %v10743_v44 = vpop.f32.mrf.mxu0 }
0x1be8   :  { %11299 = dma.done.wait [#allocation3], 32  }
0x1be9   :  { %11300 = vsyncadd [#allocation3], 4294967264 }
0x1bea   :  { %8866 = vsyncpa [#allocation3], 1 }

</bundles_post_ra>
